<compile_context>
chip_gen: v7x
topology: tpu7x:2x2x1
jax: 0.10.0
libtpu: 0.0.40
codegen_flags: <defaults>
</compile_context>

<pallas_src>
import jax
import jax.numpy as jnp
import numpy as np
from jax.experimental import pallas as pl
from jax.experimental.pallas import tpu as pltpu

# Fully unroll the in-kernel timestep loop for short sequences (straight-line
# code gives the LLO scheduler full cross-iteration visibility).
_STATIC_UNROLL_MAX = 32


def _round_up(x, m):
    return (x + m - 1) // m * m


def _decoder_kernel(emb_ref, hid0_ref, enc_ref,
                    w_ce_ref, w_cc_ref, b_c_ref,
                    w_i_ref, b_i_ref, w_h_ref, b_h_ref,
                    w_out_hbm, b_out_ref,
                    out_ref,
                    ep_ref, h_ref, w_out_vmem, dma_sem):
    Bp, H = hid0_ref.shape
    Tm1 = h_ref.shape[0] // Bp

    # Stream the largest weight (vocab projection) HBM->VMEM while the serial
    # recurrence runs; wait only right before the projection phase.
    w_out_cp = pltpu.make_async_copy(w_out_hbm, w_out_vmem, dma_sem)
    w_out_cp.start()

    # Hoisted embedding half of attn_combine for ALL timesteps at once
    # (bias folded in); per step only the context half remains.
    ep_ref[...] = jnp.dot(emb_ref[...], w_ce_ref[...],
                          preferred_element_type=jnp.float32) + b_c_ref[...]

    def step(t, hid):
        row0 = t * Bp
        if not isinstance(t, int):            # dynamic (fori_loop) fallback
            row0 = pl.multiple_of(row0, 8)    # Bp is a multiple of 8
        rows = pl.ds(row0, Bp)

        enc = enc_ref[...]                                      # (Bp, S, H)

        # --- attention: scores[b, s] = <enc[b, s, :], hid[b, :]> ---
        scores = jnp.sum(enc * hid[:, None, :], axis=2)         # (Bp, S)
        scores = scores - jnp.max(scores, axis=1, keepdims=True)
        p = jnp.exp(scores)
        attn = p * pl.reciprocal(jnp.sum(p, axis=1, keepdims=True), approx=True)
        context = jnp.sum(enc * attn[:, :, None], axis=1)       # (Bp, H)

        # --- attn_combine: emb half precomputed in ep_ref, ctx half here ---
        x = ep_ref[rows, :] + jnp.dot(context, w_cc_ref[...],
                                      preferred_element_type=jnp.float32)

        # --- GRU cell: two fused (Bp,3H) gate matmuls, PyTorch order r,z,n ---
        gi = jnp.dot(x, w_i_ref[...],
                     preferred_element_type=jnp.float32) + b_i_ref[...]
        gh = jnp.dot(hid, w_h_ref[...],
                     preferred_element_type=jnp.float32) + b_h_ref[...]
        r = jax.nn.sigmoid(gi[:, :H] + gh[:, :H])
        z = jax.nn.sigmoid(gi[:, H:2 * H] + gh[:, H:2 * H])
        n = jnp.tanh(gi[:, 2 * H:] + r * gh[:, 2 * H:])
        h_new = (1.0 - z) * n + z * hid

        # Only the projection input is ReLU'd; the carried hidden is not.
        h_ref[rows, :] = jax.nn.relu(h_new)
        return h_new

    hid = hid0_ref[...]                                         # (Bp, H)
    if Tm1 <= _STATIC_UNROLL_MAX:
        for t in range(Tm1):                                    # static unroll
            hid = step(t, hid)
    else:
        # partial unroll keeps LLO scheduling visibility on long sequences
        jax.lax.fori_loop(0, Tm1, step, hid, unroll=4)

    # --- hoisted vocab projection + log-softmax: ONE batched matmul and ONE
    #     lane-dense (Vp = multiple of 128) slab store ---
    w_out_cp.wait()
    logits = jnp.dot(h_ref[...], w_out_vmem[...],
                     preferred_element_type=jnp.float32) + b_out_ref[...]
    m = jnp.max(logits, axis=1, keepdims=True)
    lse = jnp.log(jnp.sum(jnp.exp(logits - m), axis=1, keepdims=True)) + m
    out_ref[...] = logits - lse


def decoder_attn_rnn_forward(embedded, hidden_init, encoder_outputs, params):
    """embedded: (T,B,E) f32 (ReLU'd embeddings); hidden_init: (1,B,H);
       encoder_outputs: (S,B,H). Returns (T-1, B, V) log-probabilities."""
    T, B, E = embedded.shape
    S = encoder_outputs.shape[0]
    H = hidden_init.shape[-1]
    V = params["w_out"].shape[0]
    Tm1 = T - 1
    Bp = _round_up(B, 8)       # fill the 8-sublane vreg height (pad rows = 0)
    Vp = _round_up(V, 128)     # lane-dense projection / output store
    f32 = jnp.float32

    # ---- weight prep (pure layout plumbing; all compute stays in-kernel) ----
    w_comb = params["w_combine"]                      # (H, E+H)
    w_ce = w_comb[:, :E].T                            # (E, H)  embedding half
    w_cc = w_comb[:, E:].T                            # (H, H)  context half
    b_c = params["b_combine"].reshape(1, H)

    w_i = params["w_ih"].T                            # (H, 3H)  gates r|z|n
    w_h = params["w_hh"].T                            # (H, 3H)
    b_i = params["b_ih"].reshape(1, 3 * H)
    b_h = params["b_hh"].reshape(1, 3 * H)

    # Vocab projection padded to a 128-lane multiple; padded columns get a
    # huge negative bias so the in-kernel log-softmax ignores them.
    w_out = jnp.zeros((H, Vp), f32).at[:, :V].set(params["w_out"].T.astype(f32))
    b_out = jnp.full((1, Vp), -1e30, f32).at[0, :V].set(params["b_out"].astype(f32))

    def pad_batch(x, axis):
        pad = [(0, 0)] * x.ndim
        pad[axis] = (0, Bp - B)
        return jnp.pad(x, pad)

    emb2d = pad_batch(embedded[:Tm1], 1).reshape(Tm1 * Bp, E)         # (Tm1*Bp, E)
    hid0 = pad_batch(hidden_init[0], 0)                               # (Bp, H)
    enc = pad_batch(jnp.transpose(encoder_outputs, (1, 0, 2)), 0)     # (Bp, S, H)

    vmem = pltpu.MemorySpace.VMEM
    in_specs = ([pl.BlockSpec(memory_space=vmem)] * 10
                + [pl.BlockSpec(memory_space=pl.ANY),    # w_out: manual DMA
                   pl.BlockSpec(memory_space=vmem)])

    out = pl.pallas_call(
        _decoder_kernel,
        out_shape=jax.ShapeDtypeStruct((Tm1 * Bp, Vp), f32),
        in_specs=in_specs,
        out_specs=pl.BlockSpec(memory_space=vmem),
        scratch_shapes=[
            pltpu.VMEM((Tm1 * Bp, H), f32),   # hoisted emb half of attn_combine
            pltpu.VMEM((Tm1 * Bp, H), f32),   # relu(h_t) slab for the projection
            pltpu.VMEM((H, Vp), f32),         # w_out staged via async copy
            pltpu.SemaphoreType.DMA(()),
        ],
    )(emb2d, hid0, enc, w_ce, w_cc, b_c, w_i, b_i, w_h, b_h, w_out, b_out)

    return out.reshape(Tm1, Bp, Vp)[:, :B, :V]


def reference_forward(embedded, hidden_init, enc, params):
    """Pure-JAX reference mirroring the PyTorch forward exactly."""
    T, B, _ = embedded.shape
    H = hidden_init.shape[-1]
    hid = hidden_init[0]
    outs = []
    for t in range(T - 1):
        scores = jnp.einsum("sbh,bh->bs", enc, hid)               # (B, S)
        attn = jax.nn.softmax(scores, axis=1)
        context = jnp.einsum("sbh,bs->bh", enc, attn)             # (B, H)
        x = (jnp.concatenate([embedded[t], context], axis=1)
             @ params["w_combine"].T + params["b_combine"])
        gi = x @ params["w_ih"].T + params["b_ih"]
        gh = hid @ params["w_hh"].T + params["b_hh"]
        r = jax.nn.sigmoid(gi[:, :H] + gh[:, :H])
        z = jax.nn.sigmoid(gi[:, H:2 * H] + gh[:, H:2 * H])
        n = jnp.tanh(gi[:, 2 * H:] + r * gh[:, 2 * H:])
        hid = (1.0 - z) * n + z * hid
        logits = jax.nn.relu(hid) @ params["w_out"].T + params["b_out"]
        outs.append(jax.nn.log_softmax(logits, axis=1))
    return jnp.stack(outs)


if __name__ == "__main__":
    vocab_size, embed_size, hidden_size = 32, 16, 32
    T, B, S = 8, 2, 6                                             # trg len, batch, src len

    key = jax.random.PRNGKey(0)
    ks = jax.random.split(key, 12)

    # Embedding table (padding_idx=1 -> zero row), like nn.Embedding.
    emb_table = jax.random.normal(ks[0], (vocab_size, embed_size), jnp.float32)
    emb_table = emb_table.at[1].set(0.0)

    def lin_init(k, shape, fan_in):
        bound = 1.0 / np.sqrt(fan_in)
        return jax.random.uniform(k, shape, jnp.float32, -bound, bound)

    params = {
        "w_combine": lin_init(ks[1], (hidden_size, embed_size + hidden_size),
                              embed_size + hidden_size),
        "b_combine": lin_init(ks[2], (hidden_size,), embed_size + hidden_size),
        "w_ih": lin_init(ks[3], (3 * hidden_size, hidden_size), hidden_size),
        "b_ih": lin_init(ks[4], (3 * hidden_size,), hidden_size),
        "w_hh": lin_init(ks[5], (3 * hidden_size, hidden_size), hidden_size),
        "b_hh": lin_init(ks[6], (3 * hidden_size,), hidden_size),
        "w_out": lin_init(ks[7], (vocab_size, hidden_size), hidden_size),
        "b_out": lin_init(ks[8], (vocab_size,), hidden_size),
    }

    batch_trg = jax.random.randint(ks[9], (T, B), 0, vocab_size)            # (T, B) int
    hidden_init = jax.random.normal(ks[10], (1, B, hidden_size), jnp.float32)
    encoder_outputs = jax.random.normal(ks[11], (S, B, hidden_size), jnp.float32)

    # Glue: embedding lookup (gather) + ReLU outside the kernel.
    embedded = jax.nn.relu(emb_table[batch_trg])                            # (T, B, E)

    out = decoder_attn_rnn_forward(embedded, hidden_init, encoder_outputs, params)
    out = jax.block_until_ready(out)

    ref = reference_forward(embedded, hidden_init, encoder_outputs, params)
    # Tolerance relaxed from 1e-4 -> 2e-3 because the attention softmax uses the
    # EUP approximate reciprocal (pl.reciprocal(approx=True)), per the perf review.
    np.testing.assert_allclose(np.asarray(out), np.asarray(ref),
                               rtol=2e-3, atol=2e-3)
    print("KERNEL_OK")
</pallas_src>

<mosaic_0001>
module attributes {stable_mosaic.version = 11 : i64} {
  func.func @_decoder_kernel(%arg0: memref<56x16xf32, #tpu.memory_space<vmem>>, %arg1: memref<8x32xf32, #tpu.memory_space<vmem>>, %arg2: memref<8x6x32xf32, #tpu.memory_space<vmem>>, %arg3: memref<16x32xf32, #tpu.memory_space<vmem>>, %arg4: memref<32x32xf32, #tpu.memory_space<vmem>>, %arg5: memref<1x32xf32, #tpu.memory_space<vmem>>, %arg6: memref<32x96xf32, #tpu.memory_space<vmem>>, %arg7: memref<1x96xf32, #tpu.memory_space<vmem>>, %arg8: memref<32x96xf32, #tpu.memory_space<vmem>>, %arg9: memref<1x96xf32, #tpu.memory_space<vmem>>, %arg10: memref<32x128xf32, #tpu.memory_space<any>>, %arg11: memref<1x128xf32, #tpu.memory_space<vmem>>, %arg12: memref<56x128xf32, #tpu.memory_space<vmem>>, %arg13: memref<56x32xf32, #tpu.memory_space<vmem>>, %arg14: memref<56x32xf32, #tpu.memory_space<vmem>>, %arg15: memref<32x128xf32, #tpu.memory_space<vmem>>, %arg16: memref<!tpu.dma_semaphore, #tpu.memory_space<semaphore_mem>>) attributes {dimension_semantics = [], scalar_prefetch = 0 : i64, scratch_operands = 4 : i64, tpu.core_type = #tpu.core_type<tc>} {
    tpu.enqueue_dma source(%arg10 : memref<32x128xf32, #tpu.memory_space<any>>) target(%arg15 : memref<32x128xf32, #tpu.memory_space<vmem>>) target_semaphore(%arg16 : memref<!tpu.dma_semaphore, #tpu.memory_space<semaphore_mem>>)
    %c0 = arith.constant 0 : index
    %c0_0 = arith.constant 0 : index
    %0 = vector.load %arg0[%c0, %c0_0] : memref<56x16xf32, #tpu.memory_space<vmem>>, vector<56x16xf32>
    %c0_1 = arith.constant 0 : index
    %c0_2 = arith.constant 0 : index
    %1 = vector.load %arg3[%c0_1, %c0_2] : memref<16x32xf32, #tpu.memory_space<vmem>>, vector<16x32xf32>
    %cst = arith.constant dense<0.000000e+00> : vector<56x32xf32>
    %2 = tpu.matmul %0, %1, %cst {dimension_numbers = #tpu.dot_dimension_numbers<[1], [0], [0], [1], [0, 0, 1, 1], [], []>} : vector<56x16xf32>, vector<16x32xf32>, vector<56x32xf32> -> vector<56x32xf32>
    %c0_3 = arith.constant 0 : index
    %c0_4 = arith.constant 0 : index
    %3 = vector.load %arg5[%c0_3, %c0_4] : memref<1x32xf32, #tpu.memory_space<vmem>>, vector<1x32xf32>
    %4 = vector.broadcast %3 : vector<1x32xf32> to vector<56x32xf32>
    %5 = arith.addf %2, %4 : vector<56x32xf32>
    %c0_5 = arith.constant 0 : index
    %c0_6 = arith.constant 0 : index
    %6 = vector.load %arg13[%c0_5, %c0_6] : memref<56x32xf32, #tpu.memory_space<vmem>>, vector<56x32xf32>
    tpu.vector_store %arg13[%c0_5, %c0_6], %5 {strides = array<i32>} : memref<56x32xf32, #tpu.memory_space<vmem>>, vector<56x32xf32>,
    %c0_7 = arith.constant 0 : index
    %c0_8 = arith.constant 0 : index
    %7 = vector.load %arg1[%c0_7, %c0_8] : memref<8x32xf32, #tpu.memory_space<vmem>>, vector<8x32xf32>
    %c0_9 = arith.constant 0 : index
    %c0_10 = arith.constant 0 : index
    %c0_11 = arith.constant 0 : index
    %8 = vector.load %arg2[%c0_9, %c0_10, %c0_11] : memref<8x6x32xf32, #tpu.memory_space<vmem>>, vector<8x6x32xf32>
    %9 = vector.shape_cast %7 : vector<8x32xf32> to vector<8x1x32xf32>
    %10 = vector.broadcast %9 : vector<8x1x32xf32> to vector<8x6x32xf32>
    %11 = arith.mulf %8, %10 : vector<8x6x32xf32>
    %cst_12 = arith.constant dense<0.000000e+00> : vector<8x6xf32>
    %12 = vector.multi_reduction <add>, %11, %cst_12 [2] : vector<8x6x32xf32> to vector<8x6xf32>
    %cst_13 = arith.constant dense<0xFF800000> : vector<8xf32>
    %13 = vector.multi_reduction <maximumf>, %12, %cst_13 [1] : vector<8x6xf32> to vector<8xf32>
    %14 = vector.shape_cast %13 : vector<8xf32> to vector<8x1xf32>
    %15 = vector.broadcast %14 : vector<8x1xf32> to vector<8x6xf32>
    %16 = arith.subf %12, %15 : vector<8x6xf32>
    %17 = math.exp %16 : vector<8x6xf32>
    %cst_14 = arith.constant dense<0.000000e+00> : vector<8xf32>
    %18 = vector.multi_reduction <add>, %17, %cst_14 [1] : vector<8x6xf32> to vector<8xf32>
    %19 = vector.shape_cast %18 : vector<8xf32> to vector<8x1xf32>
    %20 = tpu.reciprocal %19 {approx = true} : vector<8x1xf32> -> vector<8x1xf32>
    %21 = vector.broadcast %20 : vector<8x1xf32> to vector<8x6xf32>
    %22 = arith.mulf %17, %21 : vector<8x6xf32>
    %23 = vector.shape_cast %22 : vector<8x6xf32> to vector<8x6x1xf32>
    %24 = vector.broadcast %23 : vector<8x6x1xf32> to vector<8x6x32xf32>
    %25 = arith.mulf %8, %24 : vector<8x6x32xf32>
    %cst_15 = arith.constant dense<0.000000e+00> : vector<8x32xf32>
    %26 = vector.multi_reduction <add>, %25, %cst_15 [1] : vector<8x6x32xf32> to vector<8x32xf32>
    %c0_16 = arith.constant 0 : index
    %c0_17 = arith.constant 0 : index
    %27 = vector.load %arg13[%c0_16, %c0_17] : memref<56x32xf32, #tpu.memory_space<vmem>>, vector<8x32xf32>
    %c0_18 = arith.constant 0 : index
    %c0_19 = arith.constant 0 : index
    %28 = vector.load %arg4[%c0_18, %c0_19] : memref<32x32xf32, #tpu.memory_space<vmem>>, vector<32x32xf32>
    %cst_20 = arith.constant dense<0.000000e+00> : vector<8x32xf32>
    %29 = tpu.matmul %26, %28, %cst_20 {dimension_numbers = #tpu.dot_dimension_numbers<[1], [0], [0], [1], [0, 0, 1, 1], [], []>} : vector<8x32xf32>, vector<32x32xf32>, vector<8x32xf32> -> vector<8x32xf32>
    %30 = arith.addf %27, %29 : vector<8x32xf32>
    %c0_21 = arith.constant 0 : index
    %c0_22 = arith.constant 0 : index
    %31 = vector.load %arg6[%c0_21, %c0_22] : memref<32x96xf32, #tpu.memory_space<vmem>>, vector<32x96xf32>
    %cst_23 = arith.constant dense<0.000000e+00> : vector<8x96xf32>
    %32 = tpu.matmul %30, %31, %cst_23 {dimension_numbers = #tpu.dot_dimension_numbers<[1], [0], [0], [1], [0, 0, 1, 1], [], []>} : vector<8x32xf32>, vector<32x96xf32>, vector<8x96xf32> -> vector<8x96xf32>
    %c0_24 = arith.constant 0 : index
    %c0_25 = arith.constant 0 : index
    %33 = vector.load %arg7[%c0_24, %c0_25] : memref<1x96xf32, #tpu.memory_space<vmem>>, vector<1x96xf32>
    %34 = vector.broadcast %33 : vector<1x96xf32> to vector<8x96xf32>
    %35 = arith.addf %32, %34 : vector<8x96xf32>
    %c0_26 = arith.constant 0 : index
    %c0_27 = arith.constant 0 : index
    %36 = vector.load %arg8[%c0_26, %c0_27] : memref<32x96xf32, #tpu.memory_space<vmem>>, vector<32x96xf32>
    %cst_28 = arith.constant dense<0.000000e+00> : vector<8x96xf32>
    %37 = tpu.matmul %7, %36, %cst_28 {dimension_numbers = #tpu.dot_dimension_numbers<[1], [0], [0], [1], [0, 0, 1, 1], [], []>} : vector<8x32xf32>, vector<32x96xf32>, vector<8x96xf32> -> vector<8x96xf32>
    %c0_29 = arith.constant 0 : index
    %c0_30 = arith.constant 0 : index
    %38 = vector.load %arg9[%c0_29, %c0_30] : memref<1x96xf32, #tpu.memory_space<vmem>>, vector<1x96xf32>
    %39 = vector.broadcast %38 : vector<1x96xf32> to vector<8x96xf32>
    %40 = arith.addf %37, %39 : vector<8x96xf32>
    %41 = vector.extract_strided_slice %35 {offsets = [0, 0], sizes = [8, 32], strides = [1, 1]} : vector<8x96xf32> to vector<8x32xf32>
    %42 = vector.extract_strided_slice %40 {offsets = [0, 0], sizes = [8, 32], strides = [1, 1]} : vector<8x96xf32> to vector<8x32xf32>
    %43 = arith.addf %41, %42 : vector<8x32xf32>
    %44 = arith.negf %43 : vector<8x32xf32>
    %45 = math.exp %44 : vector<8x32xf32>
    %cst_31 = arith.constant 1.000000e+00 : f32
    %46 = vector.broadcast %cst_31 : f32 to vector<8x32xf32>
    %47 = arith.addf %46, %45 : vector<8x32xf32>
    %48 = arith.divf %46, %47 : vector<8x32xf32>
    %49 = vector.extract_strided_slice %35 {offsets = [0, 32], sizes = [8, 32], strides = [1, 1]} : vector<8x96xf32> to vector<8x32xf32>
    %50 = vector.extract_strided_slice %40 {offsets = [0, 32], sizes = [8, 32], strides = [1, 1]} : vector<8x96xf32> to vector<8x32xf32>
    %51 = arith.addf %49, %50 : vector<8x32xf32>
    %52 = arith.negf %51 : vector<8x32xf32>
    %53 = math.exp %52 : vector<8x32xf32>
    %cst_32 = arith.constant 1.000000e+00 : f32
    %54 = vector.broadcast %cst_32 : f32 to vector<8x32xf32>
    %55 = arith.addf %54, %53 : vector<8x32xf32>
    %56 = arith.divf %54, %55 : vector<8x32xf32>
    %57 = vector.extract_strided_slice %35 {offsets = [0, 64], sizes = [8, 32], strides = [1, 1]} : vector<8x96xf32> to vector<8x32xf32>
    %58 = vector.extract_strided_slice %40 {offsets = [0, 64], sizes = [8, 32], strides = [1, 1]} : vector<8x96xf32> to vector<8x32xf32>
    %59 = arith.mulf %48, %58 : vector<8x32xf32>
    %60 = arith.addf %57, %59 : vector<8x32xf32>
    %61 = math.tanh %60 : vector<8x32xf32>
    %cst_33 = arith.constant 1.000000e+00 : f32
    %62 = vector.broadcast %cst_33 : f32 to vector<8x32xf32>
    %63 = arith.subf %62, %56 : vector<8x32xf32>
    %64 = arith.mulf %63, %61 : vector<8x32xf32>
    %65 = arith.mulf %56, %7 : vector<8x32xf32>
    %66 = arith.addf %64, %65 : vector<8x32xf32>
    %cst_34 = arith.constant 0.000000e+00 : f32
    %67 = vector.broadcast %cst_34 : f32 to vector<8x32xf32>
    %68 = arith.maximumf %66, %67 : vector<8x32xf32>
    %c0_35 = arith.constant 0 : index
    %c0_36 = arith.constant 0 : index
    %69 = vector.load %arg14[%c0_35, %c0_36] : memref<56x32xf32, #tpu.memory_space<vmem>>, vector<8x32xf32>
    tpu.vector_store %arg14[%c0_35, %c0_36], %68 {strides = array<i32>} : memref<56x32xf32, #tpu.memory_space<vmem>>, vector<8x32xf32>,
    %c0_37 = arith.constant 0 : index
    %c0_38 = arith.constant 0 : index
    %c0_39 = arith.constant 0 : index
    %70 = vector.load %arg2[%c0_37, %c0_38, %c0_39] : memref<8x6x32xf32, #tpu.memory_space<vmem>>, vector<8x6x32xf32>
    %71 = vector.shape_cast %66 : vector<8x32xf32> to vector<8x1x32xf32>
    %72 = vector.broadcast %71 : vector<8x1x32xf32> to vector<8x6x32xf32>
    %73 = arith.mulf %70, %72 : vector<8x6x32xf32>
    %cst_40 = arith.constant dense<0.000000e+00> : vector<8x6xf32>
    %74 = vector.multi_reduction <add>, %73, %cst_40 [2] : vector<8x6x32xf32> to vector<8x6xf32>
    %cst_41 = arith.constant dense<0xFF800000> : vector<8xf32>
    %75 = vector.multi_reduction <maximumf>, %74, %cst_41 [1] : vector<8x6xf32> to vector<8xf32>
    %76 = vector.shape_cast %75 : vector<8xf32> to vector<8x1xf32>
    %77 = vector.broadcast %76 : vector<8x1xf32> to vector<8x6xf32>
    %78 = arith.subf %74, %77 : vector<8x6xf32>
    %79 = math.exp %78 : vector<8x6xf32>
    %cst_42 = arith.constant dense<0.000000e+00> : vector<8xf32>
    %80 = vector.multi_reduction <add>, %79, %cst_42 [1] : vector<8x6xf32> to vector<8xf32>
    %81 = vector.shape_cast %80 : vector<8xf32> to vector<8x1xf32>
    %82 = tpu.reciprocal %81 {approx = true} : vector<8x1xf32> -> vector<8x1xf32>
    %83 = vector.broadcast %82 : vector<8x1xf32> to vector<8x6xf32>
    %84 = arith.mulf %79, %83 : vector<8x6xf32>
    %85 = vector.shape_cast %84 : vector<8x6xf32> to vector<8x6x1xf32>
    %86 = vector.broadcast %85 : vector<8x6x1xf32> to vector<8x6x32xf32>
    %87 = arith.mulf %70, %86 : vector<8x6x32xf32>
    %cst_43 = arith.constant dense<0.000000e+00> : vector<8x32xf32>
    %88 = vector.multi_reduction <add>, %87, %cst_43 [1] : vector<8x6x32xf32> to vector<8x32xf32>
    %c8 = arith.constant 8 : index
    %c0_44 = arith.constant 0 : index
    %89 = vector.load %arg13[%c8, %c0_44] : memref<56x32xf32, #tpu.memory_space<vmem>>, vector<8x32xf32>
    %c0_45 = arith.constant 0 : index
    %c0_46 = arith.constant 0 : index
    %90 = vector.load %arg4[%c0_45, %c0_46] : memref<32x32xf32, #tpu.memory_space<vmem>>, vector<32x32xf32>
    %cst_47 = arith.constant dense<0.000000e+00> : vector<8x32xf32>
    %91 = tpu.matmul %88, %90, %cst_47 {dimension_numbers = #tpu.dot_dimension_numbers<[1], [0], [0], [1], [0, 0, 1, 1], [], []>} : vector<8x32xf32>, vector<32x32xf32>, vector<8x32xf32> -> vector<8x32xf32>
    %92 = arith.addf %89, %91 : vector<8x32xf32>
    %c0_48 = arith.constant 0 : index
    %c0_49 = arith.constant 0 : index
    %93 = vector.load %arg6[%c0_48, %c0_49] : memref<32x96xf32, #tpu.memory_space<vmem>>, vector<32x96xf32>
    %cst_50 = arith.constant dense<0.000000e+00> : vector<8x96xf32>
    %94 = tpu.matmul %92, %93, %cst_50 {dimension_numbers = #tpu.dot_dimension_numbers<[1], [0], [0], [1], [0, 0, 1, 1], [], []>} : vector<8x32xf32>, vector<32x96xf32>, vector<8x96xf32> -> vector<8x96xf32>
    %c0_51 = arith.constant 0 : index
    %c0_52 = arith.constant 0 : index
    %95 = vector.load %arg7[%c0_51, %c0_52] : memref<1x96xf32, #tpu.memory_space<vmem>>, vector<1x96xf32>
    %96 = vector.broadcast %95 : vector<1x96xf32> to vector<8x96xf32>
    %97 = arith.addf %94, %96 : vector<8x96xf32>
    %c0_53 = arith.constant 0 : index
    %c0_54 = arith.constant 0 : index
    %98 = vector.load %arg8[%c0_53, %c0_54] : memref<32x96xf32, #tpu.memory_space<vmem>>, vector<32x96xf32>
    %cst_55 = arith.constant dense<0.000000e+00> : vector<8x96xf32>
    %99 = tpu.matmul %66, %98, %cst_55 {dimension_numbers = #tpu.dot_dimension_numbers<[1], [0], [0], [1], [0, 0, 1, 1], [], []>} : vector<8x32xf32>, vector<32x96xf32>, vector<8x96xf32> -> vector<8x96xf32>
    %c0_56 = arith.constant 0 : index
    %c0_57 = arith.constant 0 : index
    %100 = vector.load %arg9[%c0_56, %c0_57] : memref<1x96xf32, #tpu.memory_space<vmem>>, vector<1x96xf32>
    %101 = vector.broadcast %100 : vector<1x96xf32> to vector<8x96xf32>
    %102 = arith.addf %99, %101 : vector<8x96xf32>
    %103 = vector.extract_strided_slice %97 {offsets = [0, 0], sizes = [8, 32], strides = [1, 1]} : vector<8x96xf32> to vector<8x32xf32>
    %104 = vector.extract_strided_slice %102 {offsets = [0, 0], sizes = [8, 32], strides = [1, 1]} : vector<8x96xf32> to vector<8x32xf32>
    %105 = arith.addf %103, %104 : vector<8x32xf32>
    %106 = arith.negf %105 : vector<8x32xf32>
    %107 = math.exp %106 : vector<8x32xf32>
    %cst_58 = arith.constant 1.000000e+00 : f32
    %108 = vector.broadcast %cst_58 : f32 to vector<8x32xf32>
    %109 = arith.addf %108, %107 : vector<8x32xf32>
    %110 = arith.divf %108, %109 : vector<8x32xf32>
    %111 = vector.extract_strided_slice %97 {offsets = [0, 32], sizes = [8, 32], strides = [1, 1]} : vector<8x96xf32> to vector<8x32xf32>
    %112 = vector.extract_strided_slice %102 {offsets = [0, 32], sizes = [8, 32], strides = [1, 1]} : vector<8x96xf32> to vector<8x32xf32>
    %113 = arith.addf %111, %112 : vector<8x32xf32>
    %114 = arith.negf %113 : vector<8x32xf32>
    %115 = math.exp %114 : vector<8x32xf32>
    %cst_59 = arith.constant 1.000000e+00 : f32
    %116 = vector.broadcast %cst_59 : f32 to vector<8x32xf32>
    %117 = arith.addf %116, %115 : vector<8x32xf32>
    %118 = arith.divf %116, %117 : vector<8x32xf32>
    %119 = vector.extract_strided_slice %97 {offsets = [0, 64], sizes = [8, 32], strides = [1, 1]} : vector<8x96xf32> to vector<8x32xf32>
    %120 = vector.extract_strided_slice %102 {offsets = [0, 64], sizes = [8, 32], strides = [1, 1]} : vector<8x96xf32> to vector<8x32xf32>
    %121 = arith.mulf %110, %120 : vector<8x32xf32>
    %122 = arith.addf %119, %121 : vector<8x32xf32>
    %123 = math.tanh %122 : vector<8x32xf32>
    %cst_60 = arith.constant 1.000000e+00 : f32
    %124 = vector.broadcast %cst_60 : f32 to vector<8x32xf32>
    %125 = arith.subf %124, %118 : vector<8x32xf32>
    %126 = arith.mulf %125, %123 : vector<8x32xf32>
    %127 = arith.mulf %118, %66 : vector<8x32xf32>
    %128 = arith.addf %126, %127 : vector<8x32xf32>
    %cst_61 = arith.constant 0.000000e+00 : f32
    %129 = vector.broadcast %cst_61 : f32 to vector<8x32xf32>
    %130 = arith.maximumf %128, %129 : vector<8x32xf32>
    %c8_62 = arith.constant 8 : index
    %c0_63 = arith.constant 0 : index
    %131 = vector.load %arg14[%c8_62, %c0_63] : memref<56x32xf32, #tpu.memory_space<vmem>>, vector<8x32xf32>
    tpu.vector_store %arg14[%c8_62, %c0_63], %130 {strides = array<i32>} : memref<56x32xf32, #tpu.memory_space<vmem>>, vector<8x32xf32>,
    %c0_64 = arith.constant 0 : index
    %c0_65 = arith.constant 0 : index
    %c0_66 = arith.constant 0 : index
    %132 = vector.load %arg2[%c0_64, %c0_65, %c0_66] : memref<8x6x32xf32, #tpu.memory_space<vmem>>, vector<8x6x32xf32>
    %133 = vector.shape_cast %128 : vector<8x32xf32> to vector<8x1x32xf32>
    %134 = vector.broadcast %133 : vector<8x1x32xf32> to vector<8x6x32xf32>
    %135 = arith.mulf %132, %134 : vector<8x6x32xf32>
    %cst_67 = arith.constant dense<0.000000e+00> : vector<8x6xf32>
    %136 = vector.multi_reduction <add>, %135, %cst_67 [2] : vector<8x6x32xf32> to vector<8x6xf32>
    %cst_68 = arith.constant dense<0xFF800000> : vector<8xf32>
    %137 = vector.multi_reduction <maximumf>, %136, %cst_68 [1] : vector<8x6xf32> to vector<8xf32>
    %138 = vector.shape_cast %137 : vector<8xf32> to vector<8x1xf32>
    %139 = vector.broadcast %138 : vector<8x1xf32> to vector<8x6xf32>
    %140 = arith.subf %136, %139 : vector<8x6xf32>
    %141 = math.exp %140 : vector<8x6xf32>
    %cst_69 = arith.constant dense<0.000000e+00> : vector<8xf32>
    %142 = vector.multi_reduction <add>, %141, %cst_69 [1] : vector<8x6xf32> to vector<8xf32>
    %143 = vector.shape_cast %142 : vector<8xf32> to vector<8x1xf32>
    %144 = tpu.reciprocal %143 {approx = true} : vector<8x1xf32> -> vector<8x1xf32>
    %145 = vector.broadcast %144 : vector<8x1xf32> to vector<8x6xf32>
    %146 = arith.mulf %141, %145 : vector<8x6xf32>
    %147 = vector.shape_cast %146 : vector<8x6xf32> to vector<8x6x1xf32>
    %148 = vector.broadcast %147 : vector<8x6x1xf32> to vector<8x6x32xf32>
    %149 = arith.mulf %132, %148 : vector<8x6x32xf32>
    %cst_70 = arith.constant dense<0.000000e+00> : vector<8x32xf32>
    %150 = vector.multi_reduction <add>, %149, %cst_70 [1] : vector<8x6x32xf32> to vector<8x32xf32>
    %c16 = arith.constant 16 : index
    %c0_71 = arith.constant 0 : index
    %151 = vector.load %arg13[%c16, %c0_71] : memref<56x32xf32, #tpu.memory_space<vmem>>, vector<8x32xf32>
    %c0_72 = arith.constant 0 : index
    %c0_73 = arith.constant 0 : index
    %152 = vector.load %arg4[%c0_72, %c0_73] : memref<32x32xf32, #tpu.memory_space<vmem>>, vector<32x32xf32>
    %cst_74 = arith.constant dense<0.000000e+00> : vector<8x32xf32>
    %153 = tpu.matmul %150, %152, %cst_74 {dimension_numbers = #tpu.dot_dimension_numbers<[1], [0], [0], [1], [0, 0, 1, 1], [], []>} : vector<8x32xf32>, vector<32x32xf32>, vector<8x32xf32> -> vector<8x32xf32>
    %154 = arith.addf %151, %153 : vector<8x32xf32>
    %c0_75 = arith.constant 0 : index
    %c0_76 = arith.constant 0 : index
    %155 = vector.load %arg6[%c0_75, %c0_76] : memref<32x96xf32, #tpu.memory_space<vmem>>, vector<32x96xf32>
    %cst_77 = arith.constant dense<0.000000e+00> : vector<8x96xf32>
    %156 = tpu.matmul %154, %155, %cst_77 {dimension_numbers = #tpu.dot_dimension_numbers<[1], [0], [0], [1], [0, 0, 1, 1], [], []>} : vector<8x32xf32>, vector<32x96xf32>, vector<8x96xf32> -> vector<8x96xf32>
    %c0_78 = arith.constant 0 : index
    %c0_79 = arith.constant 0 : index
    %157 = vector.load %arg7[%c0_78, %c0_79] : memref<1x96xf32, #tpu.memory_space<vmem>>, vector<1x96xf32>
    %158 = vector.broadcast %157 : vector<1x96xf32> to vector<8x96xf32>
    %159 = arith.addf %156, %158 : vector<8x96xf32>
    %c0_80 = arith.constant 0 : index
    %c0_81 = arith.constant 0 : index
    %160 = vector.load %arg8[%c0_80, %c0_81] : memref<32x96xf32, #tpu.memory_space<vmem>>, vector<32x96xf32>
    %cst_82 = arith.constant dense<0.000000e+00> : vector<8x96xf32>
    %161 = tpu.matmul %128, %160, %cst_82 {dimension_numbers = #tpu.dot_dimension_numbers<[1], [0], [0], [1], [0, 0, 1, 1], [], []>} : vector<8x32xf32>, vector<32x96xf32>, vector<8x96xf32> -> vector<8x96xf32>
    %c0_83 = arith.constant 0 : index
    %c0_84 = arith.constant 0 : index
    %162 = vector.load %arg9[%c0_83, %c0_84] : memref<1x96xf32, #tpu.memory_space<vmem>>, vector<1x96xf32>
    %163 = vector.broadcast %162 : vector<1x96xf32> to vector<8x96xf32>
    %164 = arith.addf %161, %163 : vector<8x96xf32>
    %165 = vector.extract_strided_slice %159 {offsets = [0, 0], sizes = [8, 32], strides = [1, 1]} : vector<8x96xf32> to vector<8x32xf32>
    %166 = vector.extract_strided_slice %164 {offsets = [0, 0], sizes = [8, 32], strides = [1, 1]} : vector<8x96xf32> to vector<8x32xf32>
    %167 = arith.addf %165, %166 : vector<8x32xf32>
    %168 = arith.negf %167 : vector<8x32xf32>
    %169 = math.exp %168 : vector<8x32xf32>
    %cst_85 = arith.constant 1.000000e+00 : f32
    %170 = vector.broadcast %cst_85 : f32 to vector<8x32xf32>
    %171 = arith.addf %170, %169 : vector<8x32xf32>
    %172 = arith.divf %170, %171 : vector<8x32xf32>
    %173 = vector.extract_strided_slice %159 {offsets = [0, 32], sizes = [8, 32], strides = [1, 1]} : vector<8x96xf32> to vector<8x32xf32>
    %174 = vector.extract_strided_slice %164 {offsets = [0, 32], sizes = [8, 32], strides = [1, 1]} : vector<8x96xf32> to vector<8x32xf32>
    %175 = arith.addf %173, %174 : vector<8x32xf32>
    %176 = arith.negf %175 : vector<8x32xf32>
    %177 = math.exp %176 : vector<8x32xf32>
    %cst_86 = arith.constant 1.000000e+00 : f32
    %178 = vector.broadcast %cst_86 : f32 to vector<8x32xf32>
    %179 = arith.addf %178, %177 : vector<8x32xf32>
    %180 = arith.divf %178, %179 : vector<8x32xf32>
    %181 = vector.extract_strided_slice %159 {offsets = [0, 64], sizes = [8, 32], strides = [1, 1]} : vector<8x96xf32> to vector<8x32xf32>
    %182 = vector.extract_strided_slice %164 {offsets = [0, 64], sizes = [8, 32], strides = [1, 1]} : vector<8x96xf32> to vector<8x32xf32>
    %183 = arith.mulf %172, %182 : vector<8x32xf32>
    %184 = arith.addf %181, %183 : vector<8x32xf32>
    %185 = math.tanh %184 : vector<8x32xf32>
    %cst_87 = arith.constant 1.000000e+00 : f32
    %186 = vector.broadcast %cst_87 : f32 to vector<8x32xf32>
    %187 = arith.subf %186, %180 : vector<8x32xf32>
    %188 = arith.mulf %187, %185 : vector<8x32xf32>
    %189 = arith.mulf %180, %128 : vector<8x32xf32>
    %190 = arith.addf %188, %189 : vector<8x32xf32>
    %cst_88 = arith.constant 0.000000e+00 : f32
    %191 = vector.broadcast %cst_88 : f32 to vector<8x32xf32>
    %192 = arith.maximumf %190, %191 : vector<8x32xf32>
    %c16_89 = arith.constant 16 : index
    %c0_90 = arith.constant 0 : index
    %193 = vector.load %arg14[%c16_89, %c0_90] : memref<56x32xf32, #tpu.memory_space<vmem>>, vector<8x32xf32>
    tpu.vector_store %arg14[%c16_89, %c0_90], %192 {strides = array<i32>} : memref<56x32xf32, #tpu.memory_space<vmem>>, vector<8x32xf32>,
    %c0_91 = arith.constant 0 : index
    %c0_92 = arith.constant 0 : index
    %c0_93 = arith.constant 0 : index
    %194 = vector.load %arg2[%c0_91, %c0_92, %c0_93] : memref<8x6x32xf32, #tpu.memory_space<vmem>>, vector<8x6x32xf32>
    %195 = vector.shape_cast %190 : vector<8x32xf32> to vector<8x1x32xf32>
    %196 = vector.broadcast %195 : vector<8x1x32xf32> to vector<8x6x32xf32>
    %197 = arith.mulf %194, %196 : vector<8x6x32xf32>
    %cst_94 = arith.constant dense<0.000000e+00> : vector<8x6xf32>
    %198 = vector.multi_reduction <add>, %197, %cst_94 [2] : vector<8x6x32xf32> to vector<8x6xf32>
    %cst_95 = arith.constant dense<0xFF800000> : vector<8xf32>
    %199 = vector.multi_reduction <maximumf>, %198, %cst_95 [1] : vector<8x6xf32> to vector<8xf32>
    %200 = vector.shape_cast %199 : vector<8xf32> to vector<8x1xf32>
    %201 = vector.broadcast %200 : vector<8x1xf32> to vector<8x6xf32>
    %202 = arith.subf %198, %201 : vector<8x6xf32>
    %203 = math.exp %202 : vector<8x6xf32>
    %cst_96 = arith.constant dense<0.000000e+00> : vector<8xf32>
    %204 = vector.multi_reduction <add>, %203, %cst_96 [1] : vector<8x6xf32> to vector<8xf32>
    %205 = vector.shape_cast %204 : vector<8xf32> to vector<8x1xf32>
    %206 = tpu.reciprocal %205 {approx = true} : vector<8x1xf32> -> vector<8x1xf32>
    %207 = vector.broadcast %206 : vector<8x1xf32> to vector<8x6xf32>
    %208 = arith.mulf %203, %207 : vector<8x6xf32>
    %209 = vector.shape_cast %208 : vector<8x6xf32> to vector<8x6x1xf32>
    %210 = vector.broadcast %209 : vector<8x6x1xf32> to vector<8x6x32xf32>
    %211 = arith.mulf %194, %210 : vector<8x6x32xf32>
    %cst_97 = arith.constant dense<0.000000e+00> : vector<8x32xf32>
    %212 = vector.multi_reduction <add>, %211, %cst_97 [1] : vector<8x6x32xf32> to vector<8x32xf32>
    %c24 = arith.constant 24 : index
    %c0_98 = arith.constant 0 : index
    %213 = vector.load %arg13[%c24, %c0_98] : memref<56x32xf32, #tpu.memory_space<vmem>>, vector<8x32xf32>
    %c0_99 = arith.constant 0 : index
    %c0_100 = arith.constant 0 : index
    %214 = vector.load %arg4[%c0_99, %c0_100] : memref<32x32xf32, #tpu.memory_space<vmem>>, vector<32x32xf32>
    %cst_101 = arith.constant dense<0.000000e+00> : vector<8x32xf32>
    %215 = tpu.matmul %212, %214, %cst_101 {dimension_numbers = #tpu.dot_dimension_numbers<[1], [0], [0], [1], [0, 0, 1, 1], [], []>} : vector<8x32xf32>, vector<32x32xf32>, vector<8x32xf32> -> vector<8x32xf32>
    %216 = arith.addf %213, %215 : vector<8x32xf32>
    %c0_102 = arith.constant 0 : index
    %c0_103 = arith.constant 0 : index
    %217 = vector.load %arg6[%c0_102, %c0_103] : memref<32x96xf32, #tpu.memory_space<vmem>>, vector<32x96xf32>
    %cst_104 = arith.constant dense<0.000000e+00> : vector<8x96xf32>
    %218 = tpu.matmul %216, %217, %cst_104 {dimension_numbers = #tpu.dot_dimension_numbers<[1], [0], [0], [1], [0, 0, 1, 1], [], []>} : vector<8x32xf32>, vector<32x96xf32>, vector<8x96xf32> -> vector<8x96xf32>
    %c0_105 = arith.constant 0 : index
    %c0_106 = arith.constant 0 : index
    %219 = vector.load %arg7[%c0_105, %c0_106] : memref<1x96xf32, #tpu.memory_space<vmem>>, vector<1x96xf32>
    %220 = vector.broadcast %219 : vector<1x96xf32> to vector<8x96xf32>
    %221 = arith.addf %218, %220 : vector<8x96xf32>
    %c0_107 = arith.constant 0 : index
    %c0_108 = arith.constant 0 : index
    %222 = vector.load %arg8[%c0_107, %c0_108] : memref<32x96xf32, #tpu.memory_space<vmem>>, vector<32x96xf32>
    %cst_109 = arith.constant dense<0.000000e+00> : vector<8x96xf32>
    %223 = tpu.matmul %190, %222, %cst_109 {dimension_numbers = #tpu.dot_dimension_numbers<[1], [0], [0], [1], [0, 0, 1, 1], [], []>} : vector<8x32xf32>, vector<32x96xf32>, vector<8x96xf32> -> vector<8x96xf32>
    %c0_110 = arith.constant 0 : index
    %c0_111 = arith.constant 0 : index
    %224 = vector.load %arg9[%c0_110, %c0_111] : memref<1x96xf32, #tpu.memory_space<vmem>>, vector<1x96xf32>
    %225 = vector.broadcast %224 : vector<1x96xf32> to vector<8x96xf32>
    %226 = arith.addf %223, %225 : vector<8x96xf32>
    %227 = vector.extract_strided_slice %221 {offsets = [0, 0], sizes = [8, 32], strides = [1, 1]} : vector<8x96xf32> to vector<8x32xf32>
    %228 = vector.extract_strided_slice %226 {offsets = [0, 0], sizes = [8, 32], strides = [1, 1]} : vector<8x96xf32> to vector<8x32xf32>
    %229 = arith.addf %227, %228 : vector<8x32xf32>
    %230 = arith.negf %229 : vector<8x32xf32>
    %231 = math.exp %230 : vector<8x32xf32>
    %cst_112 = arith.constant 1.000000e+00 : f32
    %232 = vector.broadcast %cst_112 : f32 to vector<8x32xf32>
    %233 = arith.addf %232, %231 : vector<8x32xf32>
    %234 = arith.divf %232, %233 : vector<8x32xf32>
    %235 = vector.extract_strided_slice %221 {offsets = [0, 32], sizes = [8, 32], strides = [1, 1]} : vector<8x96xf32> to vector<8x32xf32>
    %236 = vector.extract_strided_slice %226 {offsets = [0, 32], sizes = [8, 32], strides = [1, 1]} : vector<8x96xf32> to vector<8x32xf32>
    %237 = arith.addf %235, %236 : vector<8x32xf32>
    %238 = arith.negf %237 : vector<8x32xf32>
    %239 = math.exp %238 : vector<8x32xf32>
    %cst_113 = arith.constant 1.000000e+00 : f32
    %240 = vector.broadcast %cst_113 : f32 to vector<8x32xf32>
    %241 = arith.addf %240, %239 : vector<8x32xf32>
    %242 = arith.divf %240, %241 : vector<8x32xf32>
    %243 = vector.extract_strided_slice %221 {offsets = [0, 64], sizes = [8, 32], strides = [1, 1]} : vector<8x96xf32> to vector<8x32xf32>
    %244 = vector.extract_strided_slice %226 {offsets = [0, 64], sizes = [8, 32], strides = [1, 1]} : vector<8x96xf32> to vector<8x32xf32>
    %245 = arith.mulf %234, %244 : vector<8x32xf32>
    %246 = arith.addf %243, %245 : vector<8x32xf32>
    %247 = math.tanh %246 : vector<8x32xf32>
    %cst_114 = arith.constant 1.000000e+00 : f32
    %248 = vector.broadcast %cst_114 : f32 to vector<8x32xf32>
    %249 = arith.subf %248, %242 : vector<8x32xf32>
    %250 = arith.mulf %249, %247 : vector<8x32xf32>
    %251 = arith.mulf %242, %190 : vector<8x32xf32>
    %252 = arith.addf %250, %251 : vector<8x32xf32>
    %cst_115 = arith.constant 0.000000e+00 : f32
    %253 = vector.broadcast %cst_115 : f32 to vector<8x32xf32>
    %254 = arith.maximumf %252, %253 : vector<8x32xf32>
    %c24_116 = arith.constant 24 : index
    %c0_117 = arith.constant 0 : index
    %255 = vector.load %arg14[%c24_116, %c0_117] : memref<56x32xf32, #tpu.memory_space<vmem>>, vector<8x32xf32>
    tpu.vector_store %arg14[%c24_116, %c0_117], %254 {strides = array<i32>} : memref<56x32xf32, #tpu.memory_space<vmem>>, vector<8x32xf32>,
    %c0_118 = arith.constant 0 : index
    %c0_119 = arith.constant 0 : index
    %c0_120 = arith.constant 0 : index
    %256 = vector.load %arg2[%c0_118, %c0_119, %c0_120] : memref<8x6x32xf32, #tpu.memory_space<vmem>>, vector<8x6x32xf32>
    %257 = vector.shape_cast %252 : vector<8x32xf32> to vector<8x1x32xf32>
    %258 = vector.broadcast %257 : vector<8x1x32xf32> to vector<8x6x32xf32>
    %259 = arith.mulf %256, %258 : vector<8x6x32xf32>
    %cst_121 = arith.constant dense<0.000000e+00> : vector<8x6xf32>
    %260 = vector.multi_reduction <add>, %259, %cst_121 [2] : vector<8x6x32xf32> to vector<8x6xf32>
    %cst_122 = arith.constant dense<0xFF800000> : vector<8xf32>
    %261 = vector.multi_reduction <maximumf>, %260, %cst_122 [1] : vector<8x6xf32> to vector<8xf32>
    %262 = vector.shape_cast %261 : vector<8xf32> to vector<8x1xf32>
    %263 = vector.broadcast %262 : vector<8x1xf32> to vector<8x6xf32>
    %264 = arith.subf %260, %263 : vector<8x6xf32>
    %265 = math.exp %264 : vector<8x6xf32>
    %cst_123 = arith.constant dense<0.000000e+00> : vector<8xf32>
    %266 = vector.multi_reduction <add>, %265, %cst_123 [1] : vector<8x6xf32> to vector<8xf32>
    %267 = vector.shape_cast %266 : vector<8xf32> to vector<8x1xf32>
    %268 = tpu.reciprocal %267 {approx = true} : vector<8x1xf32> -> vector<8x1xf32>
    %269 = vector.broadcast %268 : vector<8x1xf32> to vector<8x6xf32>
    %270 = arith.mulf %265, %269 : vector<8x6xf32>
    %271 = vector.shape_cast %270 : vector<8x6xf32> to vector<8x6x1xf32>
    %272 = vector.broadcast %271 : vector<8x6x1xf32> to vector<8x6x32xf32>
    %273 = arith.mulf %256, %272 : vector<8x6x32xf32>
    %cst_124 = arith.constant dense<0.000000e+00> : vector<8x32xf32>
    %274 = vector.multi_reduction <add>, %273, %cst_124 [1] : vector<8x6x32xf32> to vector<8x32xf32>
    %c32 = arith.constant 32 : index
    %c0_125 = arith.constant 0 : index
    %275 = vector.load %arg13[%c32, %c0_125] : memref<56x32xf32, #tpu.memory_space<vmem>>, vector<8x32xf32>
    %c0_126 = arith.constant 0 : index
    %c0_127 = arith.constant 0 : index
    %276 = vector.load %arg4[%c0_126, %c0_127] : memref<32x32xf32, #tpu.memory_space<vmem>>, vector<32x32xf32>
    %cst_128 = arith.constant dense<0.000000e+00> : vector<8x32xf32>
    %277 = tpu.matmul %274, %276, %cst_128 {dimension_numbers = #tpu.dot_dimension_numbers<[1], [0], [0], [1], [0, 0, 1, 1], [], []>} : vector<8x32xf32>, vector<32x32xf32>, vector<8x32xf32> -> vector<8x32xf32>
    %278 = arith.addf %275, %277 : vector<8x32xf32>
    %c0_129 = arith.constant 0 : index
    %c0_130 = arith.constant 0 : index
    %279 = vector.load %arg6[%c0_129, %c0_130] : memref<32x96xf32, #tpu.memory_space<vmem>>, vector<32x96xf32>
    %cst_131 = arith.constant dense<0.000000e+00> : vector<8x96xf32>
    %280 = tpu.matmul %278, %279, %cst_131 {dimension_numbers = #tpu.dot_dimension_numbers<[1], [0], [0], [1], [0, 0, 1, 1], [], []>} : vector<8x32xf32>, vector<32x96xf32>, vector<8x96xf32> -> vector<8x96xf32>
    %c0_132 = arith.constant 0 : index
    %c0_133 = arith.constant 0 : index
    %281 = vector.load %arg7[%c0_132, %c0_133] : memref<1x96xf32, #tpu.memory_space<vmem>>, vector<1x96xf32>
    %282 = vector.broadcast %281 : vector<1x96xf32> to vector<8x96xf32>
    %283 = arith.addf %280, %282 : vector<8x96xf32>
    %c0_134 = arith.constant 0 : index
    %c0_135 = arith.constant 0 : index
    %284 = vector.load %arg8[%c0_134, %c0_135] : memref<32x96xf32, #tpu.memory_space<vmem>>, vector<32x96xf32>
    %cst_136 = arith.constant dense<0.000000e+00> : vector<8x96xf32>
    %285 = tpu.matmul %252, %284, %cst_136 {dimension_numbers = #tpu.dot_dimension_numbers<[1], [0], [0], [1], [0, 0, 1, 1], [], []>} : vector<8x32xf32>, vector<32x96xf32>, vector<8x96xf32> -> vector<8x96xf32>
    %c0_137 = arith.constant 0 : index
    %c0_138 = arith.constant 0 : index
    %286 = vector.load %arg9[%c0_137, %c0_138] : memref<1x96xf32, #tpu.memory_space<vmem>>, vector<1x96xf32>
    %287 = vector.broadcast %286 : vector<1x96xf32> to vector<8x96xf32>
    %288 = arith.addf %285, %287 : vector<8x96xf32>
    %289 = vector.extract_strided_slice %283 {offsets = [0, 0], sizes = [8, 32], strides = [1, 1]} : vector<8x96xf32> to vector<8x32xf32>
    %290 = vector.extract_strided_slice %288 {offsets = [0, 0], sizes = [8, 32], strides = [1, 1]} : vector<8x96xf32> to vector<8x32xf32>
    %291 = arith.addf %289, %290 : vector<8x32xf32>
    %292 = arith.negf %291 : vector<8x32xf32>
    %293 = math.exp %292 : vector<8x32xf32>
    %cst_139 = arith.constant 1.000000e+00 : f32
    %294 = vector.broadcast %cst_139 : f32 to vector<8x32xf32>
    %295 = arith.addf %294, %293 : vector<8x32xf32>
    %296 = arith.divf %294, %295 : vector<8x32xf32>
    %297 = vector.extract_strided_slice %283 {offsets = [0, 32], sizes = [8, 32], strides = [1, 1]} : vector<8x96xf32> to vector<8x32xf32>
    %298 = vector.extract_strided_slice %288 {offsets = [0, 32], sizes = [8, 32], strides = [1, 1]} : vector<8x96xf32> to vector<8x32xf32>
    %299 = arith.addf %297, %298 : vector<8x32xf32>
    %300 = arith.negf %299 : vector<8x32xf32>
    %301 = math.exp %300 : vector<8x32xf32>
    %cst_140 = arith.constant 1.000000e+00 : f32
    %302 = vector.broadcast %cst_140 : f32 to vector<8x32xf32>
    %303 = arith.addf %302, %301 : vector<8x32xf32>
    %304 = arith.divf %302, %303 : vector<8x32xf32>
    %305 = vector.extract_strided_slice %283 {offsets = [0, 64], sizes = [8, 32], strides = [1, 1]} : vector<8x96xf32> to vector<8x32xf32>
    %306 = vector.extract_strided_slice %288 {offsets = [0, 64], sizes = [8, 32], strides = [1, 1]} : vector<8x96xf32> to vector<8x32xf32>
    %307 = arith.mulf %296, %306 : vector<8x32xf32>
    %308 = arith.addf %305, %307 : vector<8x32xf32>
    %309 = math.tanh %308 : vector<8x32xf32>
    %cst_141 = arith.constant 1.000000e+00 : f32
    %310 = vector.broadcast %cst_141 : f32 to vector<8x32xf32>
    %311 = arith.subf %310, %304 : vector<8x32xf32>
    %312 = arith.mulf %311, %309 : vector<8x32xf32>
    %313 = arith.mulf %304, %252 : vector<8x32xf32>
    %314 = arith.addf %312, %313 : vector<8x32xf32>
    %cst_142 = arith.constant 0.000000e+00 : f32
    %315 = vector.broadcast %cst_142 : f32 to vector<8x32xf32>
    %316 = arith.maximumf %314, %315 : vector<8x32xf32>
    %c32_143 = arith.constant 32 : index
    %c0_144 = arith.constant 0 : index
    %317 = vector.load %arg14[%c32_143, %c0_144] : memref<56x32xf32, #tpu.memory_space<vmem>>, vector<8x32xf32>
    tpu.vector_store %arg14[%c32_143, %c0_144], %316 {strides = array<i32>} : memref<56x32xf32, #tpu.memory_space<vmem>>, vector<8x32xf32>,
    %c0_145 = arith.constant 0 : index
    %c0_146 = arith.constant 0 : index
    %c0_147 = arith.constant 0 : index
    %318 = vector.load %arg2[%c0_145, %c0_146, %c0_147] : memref<8x6x32xf32, #tpu.memory_space<vmem>>, vector<8x6x32xf32>
    %319 = vector.shape_cast %314 : vector<8x32xf32> to vector<8x1x32xf32>
    %320 = vector.broadcast %319 : vector<8x1x32xf32> to vector<8x6x32xf32>
    %321 = arith.mulf %318, %320 : vector<8x6x32xf32>
    %cst_148 = arith.constant dense<0.000000e+00> : vector<8x6xf32>
    %322 = vector.multi_reduction <add>, %321, %cst_148 [2] : vector<8x6x32xf32> to vector<8x6xf32>
    %cst_149 = arith.constant dense<0xFF800000> : vector<8xf32>
    %323 = vector.multi_reduction <maximumf>, %322, %cst_149 [1] : vector<8x6xf32> to vector<8xf32>
    %324 = vector.shape_cast %323 : vector<8xf32> to vector<8x1xf32>
    %325 = vector.broadcast %324 : vector<8x1xf32> to vector<8x6xf32>
    %326 = arith.subf %322, %325 : vector<8x6xf32>
    %327 = math.exp %326 : vector<8x6xf32>
    %cst_150 = arith.constant dense<0.000000e+00> : vector<8xf32>
    %328 = vector.multi_reduction <add>, %327, %cst_150 [1] : vector<8x6xf32> to vector<8xf32>
    %329 = vector.shape_cast %328 : vector<8xf32> to vector<8x1xf32>
    %330 = tpu.reciprocal %329 {approx = true} : vector<8x1xf32> -> vector<8x1xf32>
    %331 = vector.broadcast %330 : vector<8x1xf32> to vector<8x6xf32>
    %332 = arith.mulf %327, %331 : vector<8x6xf32>
    %333 = vector.shape_cast %332 : vector<8x6xf32> to vector<8x6x1xf32>
    %334 = vector.broadcast %333 : vector<8x6x1xf32> to vector<8x6x32xf32>
    %335 = arith.mulf %318, %334 : vector<8x6x32xf32>
    %cst_151 = arith.constant dense<0.000000e+00> : vector<8x32xf32>
    %336 = vector.multi_reduction <add>, %335, %cst_151 [1] : vector<8x6x32xf32> to vector<8x32xf32>
    %c40 = arith.constant 40 : index
    %c0_152 = arith.constant 0 : index
    %337 = vector.load %arg13[%c40, %c0_152] : memref<56x32xf32, #tpu.memory_space<vmem>>, vector<8x32xf32>
    %c0_153 = arith.constant 0 : index
    %c0_154 = arith.constant 0 : index
    %338 = vector.load %arg4[%c0_153, %c0_154] : memref<32x32xf32, #tpu.memory_space<vmem>>, vector<32x32xf32>
    %cst_155 = arith.constant dense<0.000000e+00> : vector<8x32xf32>
    %339 = tpu.matmul %336, %338, %cst_155 {dimension_numbers = #tpu.dot_dimension_numbers<[1], [0], [0], [1], [0, 0, 1, 1], [], []>} : vector<8x32xf32>, vector<32x32xf32>, vector<8x32xf32> -> vector<8x32xf32>
    %340 = arith.addf %337, %339 : vector<8x32xf32>
    %c0_156 = arith.constant 0 : index
    %c0_157 = arith.constant 0 : index
    %341 = vector.load %arg6[%c0_156, %c0_157] : memref<32x96xf32, #tpu.memory_space<vmem>>, vector<32x96xf32>
    %cst_158 = arith.constant dense<0.000000e+00> : vector<8x96xf32>
    %342 = tpu.matmul %340, %341, %cst_158 {dimension_numbers = #tpu.dot_dimension_numbers<[1], [0], [0], [1], [0, 0, 1, 1], [], []>} : vector<8x32xf32>, vector<32x96xf32>, vector<8x96xf32> -> vector<8x96xf32>
    %c0_159 = arith.constant 0 : index
    %c0_160 = arith.constant 0 : index
    %343 = vector.load %arg7[%c0_159, %c0_160] : memref<1x96xf32, #tpu.memory_space<vmem>>, vector<1x96xf32>
    %344 = vector.broadcast %343 : vector<1x96xf32> to vector<8x96xf32>
    %345 = arith.addf %342, %344 : vector<8x96xf32>
    %c0_161 = arith.constant 0 : index
    %c0_162 = arith.constant 0 : index
    %346 = vector.load %arg8[%c0_161, %c0_162] : memref<32x96xf32, #tpu.memory_space<vmem>>, vector<32x96xf32>
    %cst_163 = arith.constant dense<0.000000e+00> : vector<8x96xf32>
    %347 = tpu.matmul %314, %346, %cst_163 {dimension_numbers = #tpu.dot_dimension_numbers<[1], [0], [0], [1], [0, 0, 1, 1], [], []>} : vector<8x32xf32>, vector<32x96xf32>, vector<8x96xf32> -> vector<8x96xf32>
    %c0_164 = arith.constant 0 : index
    %c0_165 = arith.constant 0 : index
    %348 = vector.load %arg9[%c0_164, %c0_165] : memref<1x96xf32, #tpu.memory_space<vmem>>, vector<1x96xf32>
    %349 = vector.broadcast %348 : vector<1x96xf32> to vector<8x96xf32>
    %350 = arith.addf %347, %349 : vector<8x96xf32>
    %351 = vector.extract_strided_slice %345 {offsets = [0, 0], sizes = [8, 32], strides = [1, 1]} : vector<8x96xf32> to vector<8x32xf32>
    %352 = vector.extract_strided_slice %350 {offsets = [0, 0], sizes = [8, 32], strides = [1, 1]} : vector<8x96xf32> to vector<8x32xf32>
    %353 = arith.addf %351, %352 : vector<8x32xf32>
    %354 = arith.negf %353 : vector<8x32xf32>
    %355 = math.exp %354 : vector<8x32xf32>
    %cst_166 = arith.constant 1.000000e+00 : f32
    %356 = vector.broadcast %cst_166 : f32 to vector<8x32xf32>
    %357 = arith.addf %356, %355 : vector<8x32xf32>
    %358 = arith.divf %356, %357 : vector<8x32xf32>
    %359 = vector.extract_strided_slice %345 {offsets = [0, 32], sizes = [8, 32], strides = [1, 1]} : vector<8x96xf32> to vector<8x32xf32>
    %360 = vector.extract_strided_slice %350 {offsets = [0, 32], sizes = [8, 32], strides = [1, 1]} : vector<8x96xf32> to vector<8x32xf32>
    %361 = arith.addf %359, %360 : vector<8x32xf32>
    %362 = arith.negf %361 : vector<8x32xf32>
    %363 = math.exp %362 : vector<8x32xf32>
    %cst_167 = arith.constant 1.000000e+00 : f32
    %364 = vector.broadcast %cst_167 : f32 to vector<8x32xf32>
    %365 = arith.addf %364, %363 : vector<8x32xf32>
    %366 = arith.divf %364, %365 : vector<8x32xf32>
    %367 = vector.extract_strided_slice %345 {offsets = [0, 64], sizes = [8, 32], strides = [1, 1]} : vector<8x96xf32> to vector<8x32xf32>
    %368 = vector.extract_strided_slice %350 {offsets = [0, 64], sizes = [8, 32], strides = [1, 1]} : vector<8x96xf32> to vector<8x32xf32>
    %369 = arith.mulf %358, %368 : vector<8x32xf32>
    %370 = arith.addf %367, %369 : vector<8x32xf32>
    %371 = math.tanh %370 : vector<8x32xf32>
    %cst_168 = arith.constant 1.000000e+00 : f32
    %372 = vector.broadcast %cst_168 : f32 to vector<8x32xf32>
    %373 = arith.subf %372, %366 : vector<8x32xf32>
    %374 = arith.mulf %373, %371 : vector<8x32xf32>
    %375 = arith.mulf %366, %314 : vector<8x32xf32>
    %376 = arith.addf %374, %375 : vector<8x32xf32>
    %cst_169 = arith.constant 0.000000e+00 : f32
    %377 = vector.broadcast %cst_169 : f32 to vector<8x32xf32>
    %378 = arith.maximumf %376, %377 : vector<8x32xf32>
    %c40_170 = arith.constant 40 : index
    %c0_171 = arith.constant 0 : index
    %379 = vector.load %arg14[%c40_170, %c0_171] : memref<56x32xf32, #tpu.memory_space<vmem>>, vector<8x32xf32>
    tpu.vector_store %arg14[%c40_170, %c0_171], %378 {strides = array<i32>} : memref<56x32xf32, #tpu.memory_space<vmem>>, vector<8x32xf32>,
    %c0_172 = arith.constant 0 : index
    %c0_173 = arith.constant 0 : index
    %c0_174 = arith.constant 0 : index
    %380 = vector.load %arg2[%c0_172, %c0_173, %c0_174] : memref<8x6x32xf32, #tpu.memory_space<vmem>>, vector<8x6x32xf32>
    %381 = vector.shape_cast %376 : vector<8x32xf32> to vector<8x1x32xf32>
    %382 = vector.broadcast %381 : vector<8x1x32xf32> to vector<8x6x32xf32>
    %383 = arith.mulf %380, %382 : vector<8x6x32xf32>
    %cst_175 = arith.constant dense<0.000000e+00> : vector<8x6xf32>
    %384 = vector.multi_reduction <add>, %383, %cst_175 [2] : vector<8x6x32xf32> to vector<8x6xf32>
    %cst_176 = arith.constant dense<0xFF800000> : vector<8xf32>
    %385 = vector.multi_reduction <maximumf>, %384, %cst_176 [1] : vector<8x6xf32> to vector<8xf32>
    %386 = vector.shape_cast %385 : vector<8xf32> to vector<8x1xf32>
    %387 = vector.broadcast %386 : vector<8x1xf32> to vector<8x6xf32>
    %388 = arith.subf %384, %387 : vector<8x6xf32>
    %389 = math.exp %388 : vector<8x6xf32>
    %cst_177 = arith.constant dense<0.000000e+00> : vector<8xf32>
    %390 = vector.multi_reduction <add>, %389, %cst_177 [1] : vector<8x6xf32> to vector<8xf32>
    %391 = vector.shape_cast %390 : vector<8xf32> to vector<8x1xf32>
    %392 = tpu.reciprocal %391 {approx = true} : vector<8x1xf32> -> vector<8x1xf32>
    %393 = vector.broadcast %392 : vector<8x1xf32> to vector<8x6xf32>
    %394 = arith.mulf %389, %393 : vector<8x6xf32>
    %395 = vector.shape_cast %394 : vector<8x6xf32> to vector<8x6x1xf32>
    %396 = vector.broadcast %395 : vector<8x6x1xf32> to vector<8x6x32xf32>
    %397 = arith.mulf %380, %396 : vector<8x6x32xf32>
    %cst_178 = arith.constant dense<0.000000e+00> : vector<8x32xf32>
    %398 = vector.multi_reduction <add>, %397, %cst_178 [1] : vector<8x6x32xf32> to vector<8x32xf32>
    %c48 = arith.constant 48 : index
    %c0_179 = arith.constant 0 : index
    %399 = vector.load %arg13[%c48, %c0_179] : memref<56x32xf32, #tpu.memory_space<vmem>>, vector<8x32xf32>
    %c0_180 = arith.constant 0 : index
    %c0_181 = arith.constant 0 : index
    %400 = vector.load %arg4[%c0_180, %c0_181] : memref<32x32xf32, #tpu.memory_space<vmem>>, vector<32x32xf32>
    %cst_182 = arith.constant dense<0.000000e+00> : vector<8x32xf32>
    %401 = tpu.matmul %398, %400, %cst_182 {dimension_numbers = #tpu.dot_dimension_numbers<[1], [0], [0], [1], [0, 0, 1, 1], [], []>} : vector<8x32xf32>, vector<32x32xf32>, vector<8x32xf32> -> vector<8x32xf32>
    %402 = arith.addf %399, %401 : vector<8x32xf32>
    %c0_183 = arith.constant 0 : index
    %c0_184 = arith.constant 0 : index
    %403 = vector.load %arg6[%c0_183, %c0_184] : memref<32x96xf32, #tpu.memory_space<vmem>>, vector<32x96xf32>
    %cst_185 = arith.constant dense<0.000000e+00> : vector<8x96xf32>
    %404 = tpu.matmul %402, %403, %cst_185 {dimension_numbers = #tpu.dot_dimension_numbers<[1], [0], [0], [1], [0, 0, 1, 1], [], []>} : vector<8x32xf32>, vector<32x96xf32>, vector<8x96xf32> -> vector<8x96xf32>
    %c0_186 = arith.constant 0 : index
    %c0_187 = arith.constant 0 : index
    %405 = vector.load %arg7[%c0_186, %c0_187] : memref<1x96xf32, #tpu.memory_space<vmem>>, vector<1x96xf32>
    %406 = vector.broadcast %405 : vector<1x96xf32> to vector<8x96xf32>
    %407 = arith.addf %404, %406 : vector<8x96xf32>
    %c0_188 = arith.constant 0 : index
    %c0_189 = arith.constant 0 : index
    %408 = vector.load %arg8[%c0_188, %c0_189] : memref<32x96xf32, #tpu.memory_space<vmem>>, vector<32x96xf32>
    %cst_190 = arith.constant dense<0.000000e+00> : vector<8x96xf32>
    %409 = tpu.matmul %376, %408, %cst_190 {dimension_numbers = #tpu.dot_dimension_numbers<[1], [0], [0], [1], [0, 0, 1, 1], [], []>} : vector<8x32xf32>, vector<32x96xf32>, vector<8x96xf32> -> vector<8x96xf32>
    %c0_191 = arith.constant 0 : index
    %c0_192 = arith.constant 0 : index
    %410 = vector.load %arg9[%c0_191, %c0_192] : memref<1x96xf32, #tpu.memory_space<vmem>>, vector<1x96xf32>
    %411 = vector.broadcast %410 : vector<1x96xf32> to vector<8x96xf32>
    %412 = arith.addf %409, %411 : vector<8x96xf32>
    %413 = vector.extract_strided_slice %407 {offsets = [0, 0], sizes = [8, 32], strides = [1, 1]} : vector<8x96xf32> to vector<8x32xf32>
    %414 = vector.extract_strided_slice %412 {offsets = [0, 0], sizes = [8, 32], strides = [1, 1]} : vector<8x96xf32> to vector<8x32xf32>
    %415 = arith.addf %413, %414 : vector<8x32xf32>
    %416 = arith.negf %415 : vector<8x32xf32>
    %417 = math.exp %416 : vector<8x32xf32>
    %cst_193 = arith.constant 1.000000e+00 : f32
    %418 = vector.broadcast %cst_193 : f32 to vector<8x32xf32>
    %419 = arith.addf %418, %417 : vector<8x32xf32>
    %420 = arith.divf %418, %419 : vector<8x32xf32>
    %421 = vector.extract_strided_slice %407 {offsets = [0, 32], sizes = [8, 32], strides = [1, 1]} : vector<8x96xf32> to vector<8x32xf32>
    %422 = vector.extract_strided_slice %412 {offsets = [0, 32], sizes = [8, 32], strides = [1, 1]} : vector<8x96xf32> to vector<8x32xf32>
    %423 = arith.addf %421, %422 : vector<8x32xf32>
    %424 = arith.negf %423 : vector<8x32xf32>
    %425 = math.exp %424 : vector<8x32xf32>
    %cst_194 = arith.constant 1.000000e+00 : f32
    %426 = vector.broadcast %cst_194 : f32 to vector<8x32xf32>
    %427 = arith.addf %426, %425 : vector<8x32xf32>
    %428 = arith.divf %426, %427 : vector<8x32xf32>
    %429 = vector.extract_strided_slice %407 {offsets = [0, 64], sizes = [8, 32], strides = [1, 1]} : vector<8x96xf32> to vector<8x32xf32>
    %430 = vector.extract_strided_slice %412 {offsets = [0, 64], sizes = [8, 32], strides = [1, 1]} : vector<8x96xf32> to vector<8x32xf32>
    %431 = arith.mulf %420, %430 : vector<8x32xf32>
    %432 = arith.addf %429, %431 : vector<8x32xf32>
    %433 = math.tanh %432 : vector<8x32xf32>
    %cst_195 = arith.constant 1.000000e+00 : f32
    %434 = vector.broadcast %cst_195 : f32 to vector<8x32xf32>
    %435 = arith.subf %434, %428 : vector<8x32xf32>
    %436 = arith.mulf %435, %433 : vector<8x32xf32>
    %437 = arith.mulf %428, %376 : vector<8x32xf32>
    %438 = arith.addf %436, %437 : vector<8x32xf32>
    %cst_196 = arith.constant 0.000000e+00 : f32
    %439 = vector.broadcast %cst_196 : f32 to vector<8x32xf32>
    %440 = arith.maximumf %438, %439 : vector<8x32xf32>
    %c48_197 = arith.constant 48 : index
    %c0_198 = arith.constant 0 : index
    %441 = vector.load %arg14[%c48_197, %c0_198] : memref<56x32xf32, #tpu.memory_space<vmem>>, vector<8x32xf32>
    tpu.vector_store %arg14[%c48_197, %c0_198], %440 {strides = array<i32>} : memref<56x32xf32, #tpu.memory_space<vmem>>, vector<8x32xf32>,
    tpu.wait_dma2 semaphore(%arg16 : memref<!tpu.dma_semaphore, #tpu.memory_space<semaphore_mem>>) src(%arg10 : memref<32x128xf32, #tpu.memory_space<any>>) dst(%arg15 : memref<32x128xf32, #tpu.memory_space<vmem>>)
    %c0_199 = arith.constant 0 : index
    %c0_200 = arith.constant 0 : index
    %442 = vector.load %arg14[%c0_199, %c0_200] : memref<56x32xf32, #tpu.memory_space<vmem>>, vector<56x32xf32>
    %c0_201 = arith.constant 0 : index
    %c0_202 = arith.constant 0 : index
    %443 = vector.load %arg15[%c0_201, %c0_202] : memref<32x128xf32, #tpu.memory_space<vmem>>, vector<32x128xf32>
    %cst_203 = arith.constant dense<0.000000e+00> : vector<56x128xf32>
    %444 = tpu.matmul %442, %443, %cst_203 {dimension_numbers = #tpu.dot_dimension_numbers<[1], [0], [0], [1], [0, 0, 1, 1], [], []>} : vector<56x32xf32>, vector<32x128xf32>, vector<56x128xf32> -> vector<56x128xf32>
    %c0_204 = arith.constant 0 : index
    %c0_205 = arith.constant 0 : index
    %445 = vector.load %arg11[%c0_204, %c0_205] : memref<1x128xf32, #tpu.memory_space<vmem>>, vector<1x128xf32>
    %446 = vector.broadcast %445 : vector<1x128xf32> to vector<56x128xf32>
    %447 = arith.addf %444, %446 : vector<56x128xf32>
    %cst_206 = arith.constant dense<0xFF800000> : vector<56xf32>
    %448 = vector.multi_reduction <maximumf>, %447, %cst_206 [1] : vector<56x128xf32> to vector<56xf32>
    %449 = vector.shape_cast %448 : vector<56xf32> to vector<56x1xf32>
    %450 = vector.broadcast %449 : vector<56x1xf32> to vector<56x128xf32>
    %451 = arith.subf %447, %450 : vector<56x128xf32>
    %452 = math.exp %451 : vector<56x128xf32>
    %cst_207 = arith.constant dense<0.000000e+00> : vector<56xf32>
    %453 = vector.multi_reduction <add>, %452, %cst_207 [1] : vector<56x128xf32> to vector<56xf32>
    %454 = vector.shape_cast %453 : vector<56xf32> to vector<56x1xf32>
    %455 = math.log %454 : vector<56x1xf32>
    %456 = arith.addf %455, %449 : vector<56x1xf32>
    %457 = vector.broadcast %456 : vector<56x1xf32> to vector<56x128xf32>
    %458 = arith.subf %447, %457 : vector<56x128xf32>
    %c0_208 = arith.constant 0 : index
    %c0_209 = arith.constant 0 : index
    %459 = vector.load %arg12[%c0_208, %c0_209] : memref<56x128xf32, #tpu.memory_space<vmem>>, vector<56x128xf32>
    tpu.vector_store %arg12[%c0_208, %c0_209], %458 {strides = array<i32>} : memref<56x128xf32, #tpu.memory_space<vmem>>, vector<56x128xf32>,
    return
  }
}

</mosaic_0001>

<bundles_post_ra>
// kernel: tpu_custom_call.1
= control target key start
LH: loop header
LB: loop body
LE: loop exit
PB: predicated region body
PF: predicated region fallthrough
CT: control target
= control target key end

     0   :  { %17 = vsyncpa [#allocation7], 0  ;;  %s8625_s0 = inlined_call_operand.vmem [shape: f32[56,16], index: 0, kind: input, shape index: {}]   ;;  %s8626_s1 = inlined_call_operand.hbm [shape: f32[8,32], index: 1, kind: input, shape index: {}]   ;;  %s8627_s2 = inlined_call_operand.vmem [shape: f32[8,6,32], index: 2, kind: input, shape index: {}]   ;;  %s8628_s3 = inlined_call_operand.vmem [shape: f32[16,32], index: 3, kind: input, shape index: {}]   ;;  %s8629_s4 = inlined_call_operand.vmem [shape: f32[32,32], index: 4, kind: input, shape index: {}]   ;;  %s8630_s5 = inlined_call_operand.vmem [shape: f32[1,32], index: 5, kind: input, shape index: {}]   ;;  %s8631_s6 = inlined_call_operand.vmem [shape: f32[32,96], index: 6, kind: input, shape index: {}]   ;;  %s8632_s7 = inlined_call_operand.vmem [shape: f32[1,96], index: 7, kind: input, shape index: {}]   ;;  %s8633_s8 = inlined_call_operand.vmem [shape: f32[32,96], index: 8, kind: input, shape index: {}]   ;;  %s8634_s9 = inlined_call_operand.vmem [shape: f32[1,96], index: 9, kind: input, shape index: {}]   ;;  %s8635_s10 = inlined_call_operand.vmem [shape: f32[32,128], index: 10, kind: input, shape index: {}]   ;;  %s8636_s11 = inlined_call_operand.vmem [shape: f32[1,128], index: 11, kind: input, shape index: {}]   ;;  %s8637_s12 = inlined_call_operand.hbm [shape: f32[56,128], index: 12, kind: output, shape index: {}]  }
   0x1   :  { %18 = vsyncpa [#allocation8], 0  ;;  %s6862_s21 = smov [#allocation6]   ;;  %s6812_s25 = scalar_lea.hbm %s8626_s1, 128 }
   0x2   :  { %s27_s22 = sshll.u32 %s6862_s21, 4  ;;  %p6813_p0 = scmp.ne.s32.totalorder %s8626_s1, %s6812_s25  ;;  %s28_s22 = int_to_ptr.vmem [resolvable:$true] %s27_s22 }
   0x3   :  { %p6816_p1 = scmp.lt.u32.totalorder %s6812_s25, %s8626_s1 }
   0x5   :  { %p6818_p2 = pnand %p6816_p1, %p6813_p0 }
   0x7   :  { %6821 = shalt.err (!%p6818_p2)
}
   0x8   :  { %s6822_s30 = scalar_lea.vmem %s28_s22, 128  ;;  %p6827_p4 = scmp.lt.s32.totalorder %s28_s22, %s28_s22 }
   0x9   :  { %p6823_p3 = scmp.ne.s32.totalorder %s28_s22, %s6822_s30  ;;  %p6828_p5 = scmp.lt.s32.totalorder %s6822_s30, %s6822_s30 }
   0xb   :  { %p6829_p6 = por %p6828_p5, %p6827_p4 }
   0xd   :  { %p6830_p7 = pnand %p6829_p6, %p6823_p3 }
   0xf   :  { %6833 = shalt.err (!%p6830_p7)
}
  0x10   :  { %30 = dma.hbm_to_vmem [thread:$0]  %s8626_s1, 128, %s28_s22, [#allocation7]  }
  0x11   :  { %6856 = dma.done.wait [#allocation7], 128  }
  0x12   :  { %6857 = vsyncadd [#allocation7], 4294967168  ;;  %v6954_v0 = vld [vmem:[%s8635_s10] sm:$0xff]  ;;  %v6959_v1 = vld [vmem:[%s8635_s10 + $0x8] sm:$0xff]  ;;  %v260_v4 = vlaneseq  ;;  %v6863_v5 = vmov 1966171168  }
  0x13   :  { %v6964_v2 = vld [vmem:[%s8635_s10 + $0x10] sm:$0xff]  ;;  %v6969_v3 = vld [vmem:[%s8635_s10 + $0x18] sm:$0xff]  ;;  %v258_v6 = vunpack.c.l.s4 %v6863_v5 }
  0x14   :  { %v6971_v7 = vld [vmem:[#allocation6] sm:$0xff]  ;;  %v6973_v8 = vshrl.u32 %v260_v4, 7  ;;  %v387_v9 = vand.u32 127, %v260_v4 }
  0x15   :  { %v259_v10 = vunpack.c.0.s8 %v258_v6  ;;  %v256_v11 = vcombine.high %v6971_v7, %v6971_v7 }
  0x16   :  { %99 = vsyncadd [#allocation5], 512  ;;  %v6978_v12 = vsub.s32 %v387_v9, %v6973_v8  ;;  %v6986_v15 = vsub.s32 0, %v6973_v8  ;;  %v6994_v21 = vld [vmem:[%s8627_s2] sm:$0x3f]  ;;  %vm353_vm0 = vcmask 259072  }
  0x17   :  { %v6981_v13 = vsub.s32 %v259_v10, %v6973_v8  ;;  %v7002_v26 = vld [vmem:[%s8627_s2 + $0x10] sm:$0x3f]  ;;  %v7007_v27 = vld [vmem:[%s8627_s2 + $0x8] sm:$0x3f]  ;;  %v7022_v35 = vld [vmem:[%s8627_s2 + $0x20] sm:$0x3f] }
  0x18   :  { %v7012_v28 = vld [vmem:[%s8627_s2 + $0x28] sm:$0x3f]  ;;  %v7031_v42 = vld [vmem:[%s8627_s2 + $0x18] sm:$0x3f]  ;;  %v7041_v48 = vld [vmem:[%s8627_s2 + $0x30] sm:$0x3f] }
  0x19   :  { %v263_v14 = vrot.slane %v6971_v7, %v6981_v13  ;;  %v270_v16 = vrot.slane %v256_v11, %v6981_v13  ;;  %v7049_v52 = vld [vmem:[%s8627_s2 + $0x38] sm:$0x3f]  ;;  %vm420_vm1 = vcmask 1041409   ;;  %vm422_vm2 = vcmask 1042434   ;;  %s6868_s20 = smov 64   ;;  %s6870_s1 = smov 32  }
  0x1a   :  { %vm424_vm3 = vcmask 1043459   ;;  %vm426_vm4 = vcmask 1044484   ;;  %vm428_vm5 = vcmask 1045509   ;;  %vm430_vm6 = vcmask 1046534  }
  0x1b   :  { %v279_v17 = vrot.slane %v263_v14, %v6981_v13  ;;  %v271_v18 = vcombine.high %v263_v14, %v263_v14  ;;  %v272_v19 = vcombine.high %v270_v16, %v270_v16  ;;  %v286_v20 = vrot.slane %v270_v16, %v6981_v13 }
  0x1c   :  { %vm432_vm7 = vcmask 1047559   ;;  %vm435_vm8 = vcmask 48128   ;;  %vm6866_vm9 = vmmov 0   ;;  %vm116_vm10 = vcmask 130048  }
  0x1d   :  { %v308_v22 = vrot.slane %v279_v17, %v6986_v15  ;;  %v301_v23 = vcombine.high %v279_v17, %v279_v17  ;;  %v293_v24 = vrot.slane %v271_v18, %v6981_v13  ;;  %v300_v25 = vrot.slane %v272_v19, %v6981_v13 }
  0x1e   :  { %v324_v29 = vrot.slane %v286_v20, %v6986_v15  ;;  %v302_v30 = vcombine.high %v286_v20, %v286_v20  ;;  %vm238_vm11 = vcmask 261120  }
  0x1f   :  { %v345_v31 = vmul.f32 %v308_v22, %v6994_v21  ;;  %v316_v32 = vrot.slane %v301_v23, %v6986_v15  ;;  %v312_v33 = vrot.slane %v293_v24, %v6986_v15  ;;  %v328_v34 = vrot.slane %v300_v25, %v6986_v15 }
  0x20   :  { %v303_v36 = vcombine.high %v293_v24, %v293_v24  ;;  %v304_v37 = vcombine.high %v300_v25, %v300_v25  ;;  %v349_v46 = vmul.f32 %v324_v29, %v7022_v35  ;;  %v332_v47 = vrot.slane %v302_v30, %v6986_v15 }
  0x21   :  { %v354_v38 = vsel %vm353_vm0, %v345_v31, 0.0  ;;  %v347_v39 = vmul.f32 %v316_v32, %v7002_v26  ;;  %v346_v40 = vmul.f32 %v312_v33, %v7007_v27  ;;  %v350_v41 = vmul.f32 %v328_v34, %v7012_v28 }
  0x22   :  { %355 = vadd.xlane.f32.xlu0 %v354_v38  ;;  %v320_v43 = vrot.slane %v303_v36, %v6986_v15  ;;  %v336_v51 = vrot.slane %v304_v37, %v6986_v15  ;;  %v366_v53 = vsel %vm353_vm0, %v349_v46, 0.0  ;;  %v351_v54 = vmul.f32 %v332_v47, %v7041_v48 }
  0x23   :  { %v360_v44 = vsel %vm353_vm0, %v347_v39, 0.0  ;;  %v357_v45 = vsel %vm353_vm0, %v346_v40, 0.0  ;;  %v369_v49 = vsel %vm353_vm0, %v350_v41, 0.0  ;;  %v6864_v32 = vmov 0  }
  0x24   :  { %361 = vadd.xlane.f32.xlu1 %v360_v44  ;;  %v348_v50 = vmul.f32 %v320_v43, %v7031_v42  ;;  %v352_v56 = vmul.f32 %v336_v51, %v7049_v52  ;;  %v372_v57 = vsel %vm353_vm0, %v351_v54, 0.0  ;;  %6614 = vset.pattern.permute.xlu0 %v6864_v32  ;;  %v7074_v33 = vsub.s32 1, %v6973_v8 }
  0x25   :  { %6613 = vset.pattern.permute.xlu1 %v6864_v32  ;;  %v7077_v34 = vsub.s32 2, %v6973_v8  ;;  %v7080_v36 = vsub.s32 3, %v6973_v8  ;;  %v7086_v44 = vsub.s32 4, %v6973_v8 }
  0x26   :  { %358 = vadd.xlane.f32.xlu0 %v357_v45  ;;  %v363_v55 = vsel %vm353_vm0, %v348_v50, 0.0  ;;  %v375_v58 = vsel %vm353_vm0, %v352_v56, 0.0  ;;  %v7090_v50 = vsub.s32 5, %v6973_v8 }
  0x28   :  { %370 = vadd.xlane.f32.xlu1 %v369_v49 }
  0x2a   :  { %367 = vadd.xlane.f32.xlu0 %v366_v53 }
  0x2c   :  { %364 = vadd.xlane.f32.xlu1 %v363_v55  ;;  %v7094_v55 = vsub.s32 6, %v6973_v8 }
  0x2e   :  { %373 = vadd.xlane.f32.xlu0 %v372_v57 }
  0x30   :  { %376 = vadd.xlane.f32.xlu1 %v375_v58 }
  0xaf   :  { %v356_v59 = vpop.xlane.xlu0 %355 }
  0xb0   :  { %v391_v4 = vrot.slane %v356_v59, %v6978_v12 }
  0xb1   :  { %v362_v60 = vpop.xlane.xlu1 %361 }
  0xb2   :  { %v399_v9 = vrot.slane %v362_v60, %v6978_v12 }
  0xb3   :  { %v359_v61 = vpop.xlane.xlu0 %358 }
  0xb4   :  { %v395_v62 = vrot.slane %v359_v61, %v6978_v12 }
  0xb5   :  { %v371_v63 = vpop.xlane.xlu1 %370 }
  0xb6   :  { %v421_v6 = vsel %vm420_vm1, %v395_v62, %v391_v4  ;;  %v411_v18 = vrot.slane %v371_v63, %v6978_v12 }
  0xb7   :  { %v368_v5 = vpop.xlane.xlu0 %367  ;;  %v423_v16 = vsel %vm422_vm2, %v399_v9, %v421_v6 }
  0xb8   :  { %v407_v14 = vrot.slane %v368_v5, %v6978_v12 }
  0xb9   :  { %v365_v10 = vpop.xlane.xlu1 %364 }
  0xba   :  { %v403_v11 = vrot.slane %v365_v10, %v6978_v12 }
  0xbb   :  { %v374_v17 = vpop.xlane.xlu0 %373 }
  0xbc   :  { %v425_v19 = vsel %vm424_vm3, %v403_v11, %v423_v16  ;;  %v415_v20 = vrot.slane %v374_v17, %v6978_v12 }
  0xbd   :  { %v377_v22 = vpop.xlane.xlu1 %376  ;;  %v427_v23 = vsel %vm426_vm4, %v407_v14, %v425_v19 }
  0xbe   :  { %v419_v24 = vrot.slane %v377_v22, %v6978_v12  ;;  %v429_v25 = vsel %vm428_vm5, %v411_v18, %v427_v23 }
  0xbf   :  { %v431_v29 = vsel %vm430_vm6, %v415_v20, %v429_v25 }
  0xc0   :  { %v433_v30 = vsel %vm432_vm7, %v419_v24, %v431_v29 }
  0xc1   :  { %v436_v31 = vsel %vm435_vm8, %v433_v30, -inf }
  0xc2   :  { %437 = vmax.xlane.f32.xlu0 %v436_v31 }
 0x14f   :  { %v438_v37 = vpop.xlane.xlu0 %437 }
 0x150   :  { %v443_v38 = vrot.slane %v438_v37, %v6986_v15  ;;  %v447_v39 = vrot.slane %v438_v37, %v7074_v33  ;;  %v451_v40 = vrot.slane %v438_v37, %v7077_v34  ;;  %v455_v45 = vrot.slane %v438_v37, %v7080_v36 }
 0x151   :  { %v459_v51 = vrot.slane %v438_v37, %v7086_v44  ;;  %v463_v56 = vrot.slane %v438_v37, %v7090_v50 }
 0x152   :  { %v481_v41 = vsub.f32 %v359_v61, %v447_v39  ;;  %v480_v43 = vsub.f32 %v356_v59, %v443_v38  ;;  %v482_v46 = vsub.f32 %v362_v60, %v451_v40  ;;  %v483_v54 = vsub.f32 %v365_v10, %v455_v45 }
 0x153   :  { %v484_v58 = vsub.f32 %v368_v5, %v459_v51  ;;  %v7098_v59 = vsub.s32 7, %v6973_v8  ;;  %v467_v60 = vrot.slane %v438_v37, %v7094_v55  ;;  %v485_v62 = vsub.f32 %v371_v63, %v463_v56 }
 0x154   :  { %v490_v47 = vmul.f32 1.442695, %v481_v41  ;;  %v488_v49 = vmul.f32 1.442695, %v480_v43  ;;  %v492_v53 = vmul.f32 1.442695, %v482_v46 }
 0x155   :  { %v494_v57 = vmul.f32 1.442695, %v483_v54  ;;  %v496_v61 = vmul.f32 1.442695, %v484_v58  ;;  %v471_v9 = vrot.slane %v438_v37, %v7098_v59  ;;  %v498_v10 = vmul.f32 1.442695, %v485_v62 }
 0x156   :  { %6616 = vpow2.f32 %v490_v47  ;;  %v486_v11 = vsub.f32 %v374_v17, %v467_v60 }
 0x157   :  { %6618 = vpow2.f32 %v488_v49  ;;  %v487_v8 = vsub.f32 %v377_v22, %v471_v9 }
 0x158   :  { %6620 = vpow2.f32 %v492_v53  ;;  %v500_v5 = vmul.f32 1.442695, %v486_v11 }
 0x159   :  { %6622 = vpow2.f32 %v494_v57  ;;  %v502_v18 = vmul.f32 1.442695, %v487_v8 }
 0x15a   :  { %6624 = vpow2.f32 %v496_v61 }
 0x15b   :  { %6626 = vpow2.f32 %v498_v10 }
 0x15c   :  { %6628 = vpow2.f32 %v500_v5 }
 0x15d   :  { %6630 = vpow2.f32 %v502_v18 }
 0x160   :  { %v6617_v4 = vpop.eup %6616 }
 0x161   :  { %v6619_v6 = vpop.eup %6618  ;;  %516 = vperm.xlu0 %6614, %v6617_v4  }
 0x162   :  { %513 = vperm.xlu1 %6613, %v6619_v6   ;;  %v6621_v14 = vpop.eup %6620 }
 0x163   :  { %v6623_v16 = vpop.eup %6622 }
 0x164   :  { %v6625_v19 = vpop.eup %6624 }
 0x165   :  { %v6627_v63 = vpop.eup %6626 }
 0x166   :  { %519 = vperm.xlu1 %6613, %v6621_v14   ;;  %v6629_v20 = vpop.eup %6628 }
 0x167   :  { %v6631_v23 = vpop.eup %6630 }
 0x16a   :  { %522 = vperm.xlu1 %6613, %v6623_v16  }
 0x16e   :  { %525 = vperm.xlu1 %6613, %v6625_v19  }
 0x172   :  { %528 = vperm.xlu1 %6613, %v6627_v63  }
 0x176   :  { %531 = vperm.xlu1 %6613, %v6629_v20  }
 0x17a   :  { %534 = vperm.xlu1 %6613, %v6631_v23  }
 0x1e0   :  { %v517_v30 = vpop.permute.xlu0 %516 }
 0x1e1   :  { %v514_v24 = vpop.permute.xlu1 %513  ;;  %v543_v22 = vrot.slane %v517_v30, %v6978_v12 }
 0x1e2   :  { %v539_v32 = vrot.slane %v514_v24, %v6978_v12 }
 0x1e4   :  { %v568_v41 = vsel %vm420_vm1, %v543_v22, %v539_v32  ;;  %v6865_v22 = vmov 0.0|0.0   ;;  %v102_v32 = vld [vmem:[%s8625_s0 + $0x10] sm:$0xff] }
 0x1e5   :  { %v520_v17 = vpop.permute.xlu1 %519  ;;  %6599 = vmatprep.subr.bf16.mxu1 %v6865_v22  ;;  %6464 = vmatprep.subr.bf16.mxu0 %v6865_v22 }
 0x1e6   :  { %v547_v37 = vrot.slane %v520_v17, %v6978_v12 }
 0x1e8   :  { %v569_v45 = vsel %vm422_vm2, %v547_v37, %v568_v41  ;;  %v104_v37 = vld [vmem:[%s8625_s0 + $0x20] sm:$0xff] }
 0x1e9   :  { %v523_v25 = vpop.permute.xlu1 %522  ;;  %v100_v41 = vld [vmem:[%s8625_s0] sm:$0xff] }
 0x1ea   :  { %v551_v38 = vrot.slane %v523_v25, %v6978_v12 }
 0x1ec   :  { %v570_v47 = vsel %vm424_vm3, %v551_v38, %v569_v45  ;;  %v734_v38 = vld [vmem:[%s8629_s4] sm:$0xff]  ;;  %v736_v45 = vld [vmem:[%s8629_s4 + $0x10] sm:$0xff] }
 0x1ed   :  { %v526_v29 = vpop.permute.xlu1 %525 }
 0x1ee   :  { %v555_v39 = vrot.slane %v526_v29, %v6978_v12 }
 0x1f0   :  { %v571_v49 = vsel %vm426_vm4, %v555_v39, %v570_v47  ;;  %v735_v39 = vld [vmem:[%s8629_s4 + $0x8] sm:$0xff] }
 0x1f1   :  { %v529_v31 = vpop.permute.xlu1 %528 }
 0x1f2   :  { %v559_v43 = vrot.slane %v529_v31, %v6978_v12 }
 0x1f4   :  { %v572_v54 = vsel %vm428_vm5, %v559_v43, %v571_v49  ;;  %v105_v43 = vld [vmem:[%s8625_s0 + $0x28] sm:$0xff]  ;;  %v106_v49 = vld [vmem:[%s8625_s0 + $0x30] sm:$0xff] }
 0x1f5   :  { %v532_v40 = vpop.permute.xlu1 %531 }
 0x1f6   :  { %v563_v46 = vrot.slane %v532_v40, %v6978_v12  ;;  %v6468_v40 = vpack.c.bf16 %v735_v39, %v734_v38 }
 0x1f8   :  { %v573_v56 = vsel %vm430_vm6, %v563_v46, %v572_v54  ;;  %v737_v46 = vld [vmem:[%s8629_s4 + $0x18] sm:$0xff] }
 0x1f9   :  { %v535_v51 = vpop.permute.xlu1 %534  ;;  %v6471_v47 = vpack.c.bf16 %v737_v46, %v736_v45 }
 0x1fa   :  { %v567_v53 = vrot.slane %v535_v51, %v6978_v12 }
 0x1fc   :  { %v574_v57 = vsel %vm432_vm7, %v567_v53, %v573_v56 }
 0x1fd   :  { %v576_v58 = vsel %vm435_vm8, %v574_v57, 0.0 }
 0x1fe   :  { %577 = vadd.xlane.f32.xlu1 %v576_v58 }
 0x28b   :  { %v578_v60 = vpop.xlane.xlu1 %577 }
 0x28c   :  { %6632 = vrcp.f32 %v578_v60 }
 0x296   :  { %v6633_v61 = vpop.eup %6632 }
 0x297   :  { %v584_v62 = vrot.slane %v6633_v61, %v6986_v15  ;;  %v588_v10 = vrot.slane %v6633_v61, %v7074_v33  ;;  %v592_v5 = vrot.slane %v6633_v61, %v7077_v34  ;;  %v596_v18 = vrot.slane %v6633_v61, %v7080_v36 }
 0x298   :  { %v600_v17 = vrot.slane %v6633_v61, %v7086_v44  ;;  %v604_v29 = vrot.slane %v6633_v61, %v7090_v50  ;;  %v608_v30 = vrot.slane %v6633_v61, %v7094_v55  ;;  %v612_v31 = vrot.slane %v6633_v61, %v7098_v59 }
 0x299   :  { %v621_v9 = vmul.f32 %v6619_v6, %v584_v62  ;;  %v622_v11 = vmul.f32 %v6617_v4, %v588_v10  ;;  %v623_v8 = vmul.f32 %v6621_v14, %v592_v5  ;;  %v624_v24 = vmul.f32 %v6623_v16, %v596_v18  ;;  %v107_v14 = vld [vmem:[%s8628_s3] sm:$0xff]  ;;  %v108_v16 = vld [vmem:[%s8628_s3 + $0x8] sm:$0xff]  ;;  %s6869_s3 = smov 96  }
 0x29a   :  { %v625_v25 = vmul.f32 %v6625_v19, %v600_v17  ;;  %v626_v6 = vmul.f32 %v6627_v63, %v604_v29  ;;  %v627_v4 = vmul.f32 %v6629_v20, %v608_v30  ;;  %v6465_v19 = vpack.c.bf16 %v108_v16, %v107_v14 }
 0x29b   :  { %631 = vperm.xlu0 %6614, %v621_v9   ;;  %v628_v63 = vmul.f32 %v6631_v23, %v612_v31  ;;  %v6867_v20 = vmov 0.0   ;;  %v103_v23 = vld [vmem:[%s8625_s0 + $0x18] sm:$0xff] }
 0x29c   :  { %6600 = vmatpush3.bf16.msra.mxu1 %v6465_v19  ;;  %6466 = vmatpush3.bf16.msra.mxu0 %v6465_v19 }
 0x29d   :  { %6467 = vmatprep.subr.bf16.mxu1 %v6865_v22  ;;  %6485 = vmatprep.subr.bf16.mxu0 %v6865_v22 }
 0x29e   :  { %6189 = vmatprep.mubr.msk.f32.mxu1 %vm6866_vm9, %v6867_v20  ;;  %6183 = vmatprep.mubr.msk.f32.mxu0 %vm6866_vm9, %v6867_v20 }
 0x29f   :  { %636 = vperm.xlu0 %6614, %v622_v11   ;;  %6190 = vmatmul.mubr.msk.f32.vlgmr.msra.gmra.mrb[0].mxu1 %vm116_vm10, %v102_v32 }
 0x2a0   :  { %6192 = vmatprep.mubr.msk.f32.mxu1 %vm6866_vm9, %v6867_v20  ;;  %6184 = vmatmul.mubr.msk.f32.vlgmr.msra.gmra.mrb[0].mxu0 %vm116_vm10, %v100_v41 }
 0x2a1   :  { %6469 = vmatpush3.bf16.msra.mxu1 %v6468_v40  ;;  %6186 = vmatprep.mubr.msk.f32.mxu0 %vm6866_vm9, %v6867_v20 }
 0x2a2   :  { %6470 = vmatprep.subr.bf16.mxu1 %v6865_v22  ;;  %6487 = vmatpush3.bf16.msra.mxu0 %v6468_v40 }
 0x2a3   :  { %641 = vperm.xlu0 %6614, %v623_v8   ;;  %6193 = vmatmul.mubr.msk.f32.gmra.mrb[2].mxu1 %vm116_vm10, %v103_v23 }
 0x2a4   :  { %6195 = vmatprep.mubr.msk.f32.mxu1 %vm6866_vm9, %v6867_v20  ;;  %6488 = vmatprep.subr.bf16.mxu0 %v6865_v22 }
 0x2a5   :  { %6472 = vmatpush3.bf16.msra.mxu1 %v6471_v47 }
 0x2a6   :  { %6473 = vmatprep.subr.bf16.mxu1 %v6865_v22  ;;  %6490 = vmatpush3.bf16.msra.mxu0 %v6471_v47 }
 0x2a7   :  { %646 = vperm.xlu0 %6614, %v624_v24   ;;  %6196 = vmatmul.mubr.msk.f32.gmra.mrb[4].mxu1 %vm116_vm10, %v104_v37 }
 0x2a8   :  { %6198 = vmatprep.mubr.msk.f32.mxu1 %vm6866_vm9, %v6867_v20  ;;  %6497 = vmatprep.subr.bf16.mxu0 %v6865_v22 }
 0x2ab   :  { %651 = vperm.xlu0 %6614, %v625_v25   ;;  %6199 = vmatmul.mubr.msk.f32.gmra.mrb[6].mxu1 %vm116_vm10, %v105_v43 }
 0x2ac   :  { %6201 = vmatprep.mubr.msk.f32.mxu1 %vm6866_vm9, %v6867_v20 }
 0x2af   :  { %656 = vperm.xlu0 %6614, %v626_v6   ;;  %6202 = vmatmul.mubr.msk.f32.gmra.mrb[8].mxu1 %vm116_vm10, %v106_v49 }
 0x2b0   :  { %6212 = vmatprep.mubr.msk.f32.mxu1 %vm6866_vm9, %v6867_v20 }
 0x2b3   :  { %661 = vperm.xlu0 %6614, %v627_v4  }
 0x2b7   :  { %666 = vperm.xlu0 %6614, %v628_v63  }
 0x31a   :  { %v632_v51 = vpop.permute.xlu0 %631 }
 0x31b   :  { %v669_v57 = vmul.f32 %v632_v51, %v6994_v21 }
 0x31d   :  { %v677_v9 = vsel %vm353_vm0, %v669_v57, 0.0 }
 0x31e   :  { %v637_v53 = vpop.permute.xlu0 %636  ;;  %v678_v18 = vrot.slane %v677_v9, 4 }
 0x31f   :  { %v670_v54 = vmul.f32 %v637_v53, %v7007_v27 }
 0x320   :  { %v679_v29 = vadd.f32 %v678_v18, %v677_v9 }
 0x321   :  { %v684_v60 = vsel %vm353_vm0, %v670_v54, 0.0 }
 0x322   :  { %v642_v56 = vpop.permute.xlu0 %641  ;;  %v685_v11 = vrot.slane %v684_v60, 4  ;;  %v680_v63 = vrot.slane %v679_v29, 2 }
 0x323   :  { %v671_v58 = vmul.f32 %v642_v56, %v7002_v26 }
 0x324   :  { %v686_v17 = vadd.f32 %v685_v11, %v684_v60  ;;  %v681_v45 = vadd.f32 %v680_v63, %v679_v29 }
 0x325   :  { %v691_v61 = vsel %vm353_vm0, %v671_v58, 0.0 }
 0x326   :  { %v647_v62 = vpop.permute.xlu0 %646  ;;  %v692_v5 = vrot.slane %v691_v61, 4 }
 0x327   :  { %v672_v10 = vmul.f32 %v647_v62, %v7031_v42  ;;  %v687_v42 = vrot.slane %v686_v17, 2 }
 0x328   :  { %v693_v26 = vadd.f32 %v692_v5, %v691_v61 }
 0x329   :  { %v698_v8 = vsel %vm353_vm0, %v672_v10, 0.0  ;;  %v688_v39 = vadd.f32 %v687_v42, %v686_v17  ;;  %v827_v42 = vld [vmem:[%s8631_s6 + $0x8] sm:$0xff] }
 0x32a   :  { %v699_v27 = vrot.slane %v698_v8, 4  ;;  %v652_v24 = vpop.permute.xlu0 %651  ;;  %v694_v16 = vrot.slane %v693_v26, 2 }
 0x32b   :  { %v673_v21 = vmul.f32 %v652_v24, %v7022_v35  ;;  %v689_v54 = vrot.slane %v688_v39, 1 }
 0x32c   :  { %v700_v6 = vadd.f32 %v699_v27, %v698_v8  ;;  %v695_v41 = vadd.f32 %v694_v16, %v693_v26 }
 0x32d   :  { %v705_v25 = vsel %vm353_vm0, %v673_v21, 0.0  ;;  %v690_v11 = vadd.f32 %v689_v54, %v688_v39 }
 0x32e   :  { %v706_v30 = vrot.slane %v705_v25, 4  ;;  %v657_v4 = vpop.permute.xlu0 %656  ;;  %v701_v32 = vrot.slane %v700_v6, 2  ;;  %v696_v58 = vrot.slane %v695_v41, 1 }
 0x32f   :  { %v674_v31 = vmul.f32 %v657_v4, %v7012_v28 }
 0x330   :  { %v707_v14 = vadd.f32 %v706_v30, %v705_v25  ;;  %v702_v46 = vadd.f32 %v701_v32, %v700_v6  ;;  %v697_v27 = vadd.f32 %v696_v58, %v695_v41  ;;  %v7235_v41 = vld [vmem:[%s8630_s5] ss:$0 sm:$0xff] }
 0x331   :  { %v712_v19 = vsel %vm353_vm0, %v674_v31, 0.0  ;;  %v826_v31 = vld [vmem:[%s8631_s6] sm:$0xff] }
 0x332   :  { %v713_v23 = vrot.slane %v712_v19, 4  ;;  %v662_v37 = vpop.permute.xlu0 %661  ;;  %v708_v35 = vrot.slane %v707_v14, 2  ;;  %v703_v61 = vrot.slane %v702_v46, 1 }
 0x333   :  { %v675_v38 = vmul.f32 %v662_v37, %v7041_v48  ;;  %v682_v48 = vrot.slane %v681_v45, 1 }
 0x334   :  { %v714_v40 = vadd.f32 %v713_v23, %v712_v19  ;;  %v709_v51 = vadd.f32 %v708_v35, %v707_v14  ;;  %v704_v21 = vadd.f32 %v703_v61, %v702_v46  ;;  %v6474_v23 = vpack.c.bf16 %v827_v42, %v826_v31  ;;  %v828_v35 = vld [vmem:[%s8631_s6 + $0x10] sm:$0xff]  ;;  %v7288_v42 = vld [vmem:[%s8632_s7] ss:$0 sm:$0xff] }
 0x335   :  { %v719_v43 = vsel %vm353_vm0, %v675_v38, 0.0  ;;  %v683_v24 = vadd.f32 %v682_v48, %v681_v45  ;;  %v829_v38 = vld [vmem:[%s8631_s6 + $0x18] sm:$0xff] }
 0x336   :  { %v715_v28 = vrot.slane %v714_v40, 2  ;;  %v720_v47 = vrot.slane %v719_v43, 4  ;;  %v667_v49 = vpop.permute.xlu0 %666  ;;  %v710_v10 = vrot.slane %v709_v51, 1 }
 0x337   :  { %v676_v53 = vmul.f32 %v667_v49, %v7049_v52  ;;  %v746_v25 = vsel %vm420_vm1, %v690_v11, %v683_v24  ;;  %v910_v11 = vld [vmem:[%s8633_s8] sm:$0xff] }
 0x338   :  { %v716_v56 = vadd.f32 %v715_v28, %v714_v40  ;;  %v721_v57 = vadd.f32 %v720_v47, %v719_v43  ;;  %v711_v26 = vadd.f32 %v710_v10, %v709_v51  ;;  %v747_v30 = vsel %vm422_vm2, %v697_v27, %v746_v25 }
 0x339   :  { %v726_v60 = vsel %vm353_vm0, %v676_v53, 0.0  ;;  %v748_v14 = vsel %vm424_vm3, %v704_v21, %v747_v30  ;;  %v6477_v40 = vpack.c.bf16 %v829_v38, %v828_v35 }
 0x33a   :  { %v722_v62 = vrot.slane %v721_v57, 2  ;;  %v727_v9 = vrot.slane %v726_v60, 4  ;;  %v717_v5 = vrot.slane %v716_v56, 1  ;;  %v749_v19 = vsel %vm426_vm4, %v711_v26, %v748_v14 }
 0x33c   :  { %v723_v8 = vadd.f32 %v722_v62, %v721_v57  ;;  %v728_v18 = vadd.f32 %v727_v9, %v726_v60  ;;  %v718_v29 = vadd.f32 %v717_v5, %v716_v56  ;;  %v911_v5 = vld [vmem:[%s8633_s8 + $0x8] sm:$0xff] }
 0x33d   :  { %v7255_v27 = vpack.c.bf16 %v911_v5, %v910_v11 }
 0x33e   :  { %v724_v17 = vrot.slane %v723_v8, 1  ;;  %v729_v52 = vrot.slane %v728_v18, 2  ;;  %v750_v32 = vsel %vm428_vm5, %v718_v29, %v749_v19 }
 0x340   :  { %v730_v6 = vadd.f32 %v729_v52, %v728_v18  ;;  %v725_v4 = vadd.f32 %v724_v17, %v723_v8  ;;  %v912_v17 = vld [vmem:[%s8633_s8 + $0x10] sm:$0xff]  ;;  %v913_v52 = vld [vmem:[%s8633_s8 + $0x18] sm:$0xff] }
 0x341   :  { %v7265_v26 = vpack.c.bf16 %v913_v52, %v912_v17 }
 0x342   :  { %v731_v16 = vrot.slane %v730_v6, 1  ;;  %v751_v37 = vsel %vm430_vm6, %v725_v4, %v750_v32 }
 0x344   :  { %v732_v63 = vadd.f32 %v731_v16, %v730_v6  ;;  %v7281_v6 = vld [vmem:[%s8634_s9] ss:$0 sm:$0xff] }
 0x346   :  { %v752_v39 = vsel %vm432_vm7, %v732_v63, %v751_v37 }
 0x347   :  { %6213 = vmatmul.mubr.msk.f32.vlgmr.msra.gmra.mrb[10].mxu1 %vm238_vm11, %v752_v39 }
 0x348   :  { %6475 = vmatpush3.bf16.msra.mxu1 %v6474_v23  ;;  %6223 = vmatprep.mubr.msk.f32.mxu1 %vm6866_vm9, %v6867_v20 }
 0x349   :  { %6476 = vmatprep.subr.bf16.mxu1 %v6865_v22 }
 0x34c   :  { %6478 = vmatpush3.bf16.msra.mxu1 %v6477_v40 }
 0x34d   :  { %6479 = vmatprep.subr.bf16.mxu1 %v6865_v22 }
 0x372   :  { %v214_v43 = vpop.f32.mrb[0].mxu1 }
 0x373   :  { %v215_v45 = vadd.f32 %v7235_v41, %v214_v43  ;;  %v6191_v46 = vpop.f32.mrb[1].mxu1  ;;  %v204_v56 = vpop.f32.mrb[0].mxu0 }
 0x374   :  { %v205_v57 = vadd.f32 %v7235_v41, %v204_v56  ;;  %v6185_v58 = vpop.f32.mrb[1].mxu0 }
 0x375   :  { %241 = vst.msk [vmem:[#allocation2 + $0x10] sm:$0xff] %vm238_vm11, %v215_v45 }
 0x376   :  { %v219_v28 = vpop.f32.mrb[2].mxu1  ;;  %239 = vst.msk [vmem:[#allocation2] sm:$0xff] %vm238_vm11, %v205_v57 }
 0x377   :  { %v220_v47 = vadd.f32 %v7235_v41, %v219_v28  ;;  %v6194_v49 = vpop.f32.mrb[3].mxu1 }
 0x379   :  { %242 = vst.msk [vmem:[#allocation2 + $0x18] sm:$0xff] %vm238_vm11, %v220_v47 }
 0x37a   :  { %v224_v51 = vpop.f32.mrb[4].mxu1 }
 0x37b   :  { %v225_v53 = vadd.f32 %v7235_v41, %v224_v51  ;;  %v6197_v54 = vpop.f32.mrb[5].mxu1 }
 0x37d   :  { %243 = vst.msk [vmem:[#allocation2 + $0x20] sm:$0xff] %vm238_vm11, %v225_v53  ;;  %v733_v8 = vld [vmem:[#allocation2] sm:$0xff] }
 0x37e   :  { %v229_v60 = vpop.f32.mrb[6].mxu1 }
 0x37f   :  { %v230_v48 = vadd.f32 %v7235_v41, %v229_v60  ;;  %v6200_v61 = vpop.f32.mrb[7].mxu1 }
 0x381   :  { %244 = vst.msk [vmem:[#allocation2 + $0x28] sm:$0xff] %vm238_vm11, %v230_v48 }
 0x382   :  { %v234_v62 = vpop.f32.mrb[8].mxu1 }
 0x383   :  { %v235_v9 = vadd.f32 %v7235_v41, %v234_v62  ;;  %v6203_v10 = vpop.f32.mrb[9].mxu1 }
 0x385   :  { %245 = vst.msk [vmem:[#allocation2 + $0x30] sm:$0xff] %vm238_vm11, %v235_v9 }
 0x41a   :  { %v821_v18 = vpop.f32.mrb[10].mxu1 }
 0x41b   :  { %v825_v24 = vadd.f32 %v821_v18, %v733_v8  ;;  %v6214_v21 = vpop.f32.mrb[11].mxu1 }
 0x41d   :  { %6224 = vmatmul.mubr.msk.f32.vlgmr.msra.gmra.mrb[12].mxu1 %vm238_vm11, %v825_v24 }
 0x41e   :  { %6481 = vmatpush3.bf16.msra.mxu1 %v7255_v27  ;;  %6234 = vmatprep.mubr.msk.f32.mxu1 %vm6866_vm9, %v6867_v20 }
 0x41f   :  { %6482 = vmatprep.subr.bf16.mxu1 %v6865_v22 }
 0x422   :  { %6484 = vmatpush3.bf16.msra.mxu1 %v7265_v26 }
 0x423   :  { %6491 = vmatprep.subr.bf16.mxu1 %v6865_v22 }
 0x425   :  { %6235 = vmatmul.mubr.msk.f32.vlgmr.msra.gmra.mrb[14].mxu1 %vm238_vm11, %v6971_v7 }
 0x426   :  { %6493 = vmatpush3.bf16.msra.mxu1 %v6474_v23  ;;  %6256 = vmatprep.mubr.msk.f32.mxu1 %vm6866_vm9, %v6867_v20 }
 0x427   :  { %6494 = vmatprep.subr.bf16.mxu1 %v6865_v22 }
 0x42a   :  { %6496 = vmatpush3.bf16.msra.mxu1 %v6477_v40 }
 0x42b   :  { %6503 = vmatprep.subr.bf16.mxu1 %v6865_v22 }
 0x4f0   :  { %v906_v25 = vpop.f32.mrb[12].mxu1 }
 0x4f1   :  { %v6225_v29 = vpop.f32.mrb[13].mxu1  ;;  %v907_v14 = vadd.f32 %v7288_v42, %v906_v25  ;;  %v7324_v25 = vld [vmem:[%s8627_s2] sm:$0x3f] }
 0x4f8   :  { %v989_v30 = vpop.f32.mrb[14].mxu1 }
 0x4f9   :  { %v990_v4 = vadd.f32 %v7281_v6, %v989_v30  ;;  %v6236_v31 = vpop.f32.mrb[15].mxu1  ;;  %v7329_v30 = vld [vmem:[%s8627_s2 + $0x8] sm:$0x3f] }
 0x4fb   :  { %1001 = vrot.lane.b32.xlu1 %v990_v4, %s6868_s20  ;;  %v993_v16 = vadd.f32 %v990_v4, %v907_v14 }
 0x4fd   :  { %v6008_v19 = vmul.f32 -1.442695, %v993_v16 }
 0x4ff   :  { %6634 = vpow2.f32 %v6008_v19 }
 0x509   :  { %v6635_v63 = vpop.eup %6634 }
 0x50a   :  { %v997_v32 = vadd.f32 1.0, %v6635_v63 }
 0x50c   :  { %6636 = vrcp.f32 %v997_v32  ;;  %v7342_v32 = vld [vmem:[%s8627_s2 + $0x18] sm:$0x3f] }
 0x516   :  { %v6637_v23 = vpop.eup %6636 }
 0x517   :  { %v1011_v45 = vsub.f32 1.0, %v6637_v23 }
 0x56d   :  { %v1002_v37 = vpop.permute.xlu1 %1001 }
 0x56e   :  { %v1004_v35 = vmul.f32 %v6637_v23, %v1002_v37 }
 0x570   :  { %1006 = vrot.lane.b32.xlu0 %v1004_v35, %s6868_s20 }
 0x5e2   :  { %v1007_v38 = vpop.permute.xlu0 %1006 }
 0x5e3   :  { %v1009_v39 = vadd.f32 %v1007_v38, %v907_v14  ;;  %v7335_v14 = vld [vmem:[%s8627_s2 + $0x10] sm:$0x3f]  ;;  %v7349_v38 = vld [vmem:[%s8627_s2 + $0x20] sm:$0x3f] }
 0x5e5   :  { %6638 = vtanh.f32 %v1009_v39 }
 0x5ef   :  { %v6639_v40 = vpop.eup %6638 }
 0x5f0   :  { %1013 = vrot.lane.b32.xlu0 %v6639_v40, %s6869_s3 }
 0x5f4   :  { %1017 = vrot.lane.b32.xlu0 %v6971_v7, %s6870_s1 }
 0x662   :  { %v1014_v43 = vpop.permute.xlu0 %1013 }
 0x663   :  { %v1016_v28 = vmul.f32 %v1014_v43, %v1011_v45  ;;  %v7356_v45 = vld [vmem:[%s8627_s2 + $0x28] sm:$0x3f] }
 0x666   :  { %v1018_v46 = vpop.permute.xlu0 %1017 }
 0x667   :  { %v1020_v47 = vmul.f32 %v6637_v23, %v1018_v46 }
 0x669   :  { %v7294_v49 = vadd.f32 %v1020_v47, %v1016_v28  ;;  %v7362_v47 = vld [vmem:[%s8627_s2 + $0x30] sm:$0x3f] }
 0x66b   :  { %v1044_v51 = vrot.slane %v7294_v49, %v6981_v13  ;;  %v1037_v53 = vcombine.high %v7294_v49, %v7294_v49 }
 0x66d   :  { %v1060_v54 = vrot.slane %v1044_v51, %v6981_v13  ;;  %v1052_v56 = vcombine.high %v1044_v51, %v1044_v51  ;;  %v1051_v57 = vrot.slane %v1037_v53, %v6981_v13 }
 0x66f   :  { %v1089_v7 = vrot.slane %v1060_v54, %v6986_v15  ;;  %v1074_v58 = vrot.slane %v1052_v56, %v6981_v13  ;;  %v1082_v60 = vcombine.high %v1060_v54, %v1060_v54  ;;  %v1053_v62 = vcombine.high %v1051_v57, %v1051_v57 }
 0x670   :  { %v1067_v10 = vrot.slane %v1051_v57, %v6981_v13  ;;  %v7370_v57 = vld [vmem:[%s8627_s2 + $0x38] sm:$0x3f] }
 0x671   :  { %1118 = vrot.lane.b32.xlu0 %v1089_v7, %s6869_s3  ;;  %v1093_v48 = vrot.slane %v1074_v58, %v6986_v15  ;;  %v1084_v61 = vcombine.high %v1074_v58, %v1074_v58  ;;  %v1097_v9 = vrot.slane %v1082_v60, %v6986_v15  ;;  %v1081_v5 = vrot.slane %v1053_v62, %v6981_v13 }
 0x672   :  { %v1105_v8 = vrot.slane %v1067_v10, %v6986_v15  ;;  %v1083_v18 = vcombine.high %v1067_v10, %v1067_v10 }
 0x673   :  { %1120 = vrot.lane.b32.xlu1 %v1093_v48, %s6869_s3  ;;  %v1101_v11 = vrot.slane %v1084_v61, %v6986_v15  ;;  %v1109_v24 = vrot.slane %v1081_v5, %v6986_v15  ;;  %v1085_v21 = vcombine.high %v1081_v5, %v1081_v5 }
 0x674   :  { %v1113_v17 = vrot.slane %v1083_v18, %v6986_v15 }
 0x675   :  { %1122 = vrot.lane.b32.xlu0 %v1097_v9, %s6869_s3  ;;  %v1117_v52 = vrot.slane %v1085_v21, %v6986_v15 }
 0x677   :  { %1124 = vrot.lane.b32.xlu1 %v1101_v11, %s6869_s3 }
 0x679   :  { %1126 = vrot.lane.b32.xlu0 %v1105_v8, %s6869_s3 }
 0x67b   :  { %1128 = vrot.lane.b32.xlu1 %v1109_v24, %s6869_s3 }
 0x67d   :  { %1130 = vrot.lane.b32.xlu0 %v1113_v17, %s6869_s3 }
 0x67f   :  { %1132 = vrot.lane.b32.xlu1 %v1117_v52, %s6869_s3 }
 0x6e3   :  { %v1119_v29 = vpop.permute.xlu0 %1118 }
 0x6e4   :  { %v1142_v4 = vmul.f32 %v1119_v29, %v7324_v25 }
 0x6e5   :  { %v1121_v31 = vpop.permute.xlu1 %1120 }
 0x6e6   :  { %v1143_v16 = vmul.f32 %v1121_v31, %v7329_v30  ;;  %v1150_v19 = vsel %vm353_vm0, %v1142_v4, 0.0 }
 0x6e7   :  { %v1123_v63 = vpop.permute.xlu0 %1122  ;;  %1151 = vadd.xlane.f32.xlu0 %v1150_v19 }
 0x6e8   :  { %v1144_v23 = vmul.f32 %v1123_v63, %v7335_v14  ;;  %v1153_v37 = vsel %vm353_vm0, %v1143_v16, 0.0 }
 0x6e9   :  { %v1125_v35 = vpop.permute.xlu1 %1124  ;;  %1154 = vadd.xlane.f32.xlu1 %v1153_v37 }
 0x6ea   :  { %v1145_v39 = vmul.f32 %v1125_v35, %v7342_v32  ;;  %v1156_v40 = vsel %vm353_vm0, %v1144_v23, 0.0 }
 0x6eb   :  { %v1127_v43 = vpop.permute.xlu0 %1126  ;;  %1157 = vadd.xlane.f32.xlu0 %v1156_v40 }
 0x6ec   :  { %v1146_v46 = vmul.f32 %v1127_v43, %v7349_v38  ;;  %v1159_v53 = vsel %vm353_vm0, %v1145_v39, 0.0 }
 0x6ed   :  { %v1129_v28 = vpop.permute.xlu1 %1128 }
 0x6ee   :  { %v1147_v51 = vmul.f32 %v1129_v28, %v7356_v45  ;;  %v1162_v54 = vsel %vm353_vm0, %v1146_v46, 0.0 }
 0x6ef   :  { %1160 = vadd.xlane.f32.xlu0 %v1159_v53  ;;  %v1131_v56 = vpop.permute.xlu0 %1130  ;;  %1163 = vadd.xlane.f32.xlu1 %v1162_v54 }
 0x6f0   :  { %v1148_v7 = vmul.f32 %v1131_v56, %v7362_v47  ;;  %v1165_v48 = vsel %vm353_vm0, %v1147_v51, 0.0 }
 0x6f1   :  { %v1133_v58 = vpop.permute.xlu1 %1132 }
 0x6f2   :  { %v1149_v60 = vmul.f32 %v1133_v58, %v7370_v57  ;;  %v1168_v61 = vsel %vm353_vm0, %v1148_v7, 0.0 }
 0x6f3   :  { %1166 = vadd.xlane.f32.xlu0 %v1165_v48  ;;  %1169 = vadd.xlane.f32.xlu1 %v1168_v61 }
 0x6f4   :  { %v1171_v62 = vsel %vm353_vm0, %v1149_v60, 0.0 }
 0x6f7   :  { %1172 = vadd.xlane.f32.xlu0 %v1171_v62 }
 0x774   :  { %v1152_v9 = vpop.xlane.xlu0 %1151 }
 0x775   :  { %v1185_v8 = vrot.slane %v1152_v9, %v6978_v12 }
 0x776   :  { %v1155_v10 = vpop.xlane.xlu1 %1154 }
 0x777   :  { %v1189_v11 = vrot.slane %v1155_v10, %v6978_v12 }
 0x778   :  { %v1158_v5 = vpop.xlane.xlu0 %1157 }
 0x779   :  { %v1193_v18 = vrot.slane %v1158_v5, %v6978_v12  ;;  %v1214_v24 = vsel %vm420_vm1, %v1189_v11, %v1185_v8 }
 0x77b   :  { %v1215_v29 = vsel %vm422_vm2, %v1193_v18, %v1214_v24 }
 0x77c   :  { %v1161_v21 = vpop.xlane.xlu0 %1160  ;;  %v1164_v17 = vpop.xlane.xlu1 %1163 }
 0x77d   :  { %v1197_v52 = vrot.slane %v1161_v21, %v6978_v12  ;;  %v1201_v4 = vrot.slane %v1164_v17, %v6978_v12 }
 0x77f   :  { %v1216_v31 = vsel %vm424_vm3, %v1197_v52, %v1215_v29 }
 0x780   :  { %v1167_v16 = vpop.xlane.xlu0 %1166  ;;  %v1170_v19 = vpop.xlane.xlu1 %1169  ;;  %v1217_v23 = vsel %vm426_vm4, %v1201_v4, %v1216_v31 }
 0x781   :  { %v1205_v63 = vrot.slane %v1167_v16, %v6978_v12  ;;  %v1209_v37 = vrot.slane %v1170_v19, %v6978_v12 }
 0x783   :  { %v1218_v35 = vsel %vm428_vm5, %v1205_v63, %v1217_v23 }
 0x784   :  { %v1173_v39 = vpop.xlane.xlu0 %1172  ;;  %v1219_v43 = vsel %vm430_vm6, %v1209_v37, %v1218_v35 }
 0x785   :  { %v1213_v40 = vrot.slane %v1173_v39, %v6978_v12 }
 0x787   :  { %v1220_v46 = vsel %vm432_vm7, %v1213_v40, %v1219_v43 }
 0x788   :  { %v1222_v28 = vsel %vm435_vm8, %v1220_v46, -inf }
 0x789   :  { %1223 = vmax.xlane.f32.xlu1 %v1222_v28 }
 0x816   :  { %v1224_v51 = vpop.xlane.xlu1 %1223 }
 0x817   :  { %v1229_v53 = vrot.slane %v1224_v51, %v6986_v15  ;;  %v1233_v54 = vrot.slane %v1224_v51, %v7074_v33  ;;  %v1237_v56 = vrot.slane %v1224_v51, %v7077_v34  ;;  %v1241_v7 = vrot.slane %v1224_v51, %v7080_v36 }
 0x818   :  { %v1245_v58 = vrot.slane %v1224_v51, %v7086_v44  ;;  %v1249_v62 = vrot.slane %v1224_v51, %v7090_v50  ;;  %v1253_v24 = vrot.slane %v1224_v51, %v7094_v55  ;;  %v1257_v4 = vrot.slane %v1224_v51, %v7098_v59 }
 0x819   :  { %v1267_v60 = vsub.f32 %v1155_v10, %v1233_v54  ;;  %v1266_v48 = vsub.f32 %v1152_v9, %v1229_v53  ;;  %v1268_v61 = vsub.f32 %v1158_v5, %v1237_v56  ;;  %v1269_v11 = vsub.f32 %v1161_v21, %v1241_v7 }
 0x81a   :  { %v1270_v29 = vsub.f32 %v1164_v17, %v1245_v58  ;;  %v1271_v63 = vsub.f32 %v1167_v16, %v1249_v62  ;;  %v1272_v10 = vsub.f32 %v1170_v19, %v1253_v24  ;;  %v1273_v5 = vsub.f32 %v1173_v39, %v1257_v4 }
 0x81b   :  { %v1276_v8 = vmul.f32 1.442695, %v1267_v60  ;;  %v1274_v18 = vmul.f32 1.442695, %v1266_v48  ;;  %v1278_v52 = vmul.f32 1.442695, %v1268_v61 }
 0x81c   :  { %v1280_v31 = vmul.f32 1.442695, %v1269_v11  ;;  %v1282_v23 = vmul.f32 1.442695, %v1270_v29  ;;  %v1284_v9 = vmul.f32 1.442695, %v1271_v63 }
 0x81d   :  { %6640 = vpow2.f32 %v1276_v8  ;;  %v1286_v21 = vmul.f32 1.442695, %v1272_v10  ;;  %v1288_v37 = vmul.f32 1.442695, %v1273_v5 }
 0x81e   :  { %6642 = vpow2.f32 %v1274_v18 }
 0x81f   :  { %6644 = vpow2.f32 %v1278_v52 }
 0x820   :  { %6646 = vpow2.f32 %v1280_v31 }
 0x821   :  { %6648 = vpow2.f32 %v1282_v23 }
 0x822   :  { %6650 = vpow2.f32 %v1284_v9 }
 0x823   :  { %6652 = vpow2.f32 %v1286_v21 }
 0x824   :  { %6654 = vpow2.f32 %v1288_v37 }
 0x827   :  { %v6641_v35 = vpop.eup %6640 }
 0x828   :  { %v6643_v40 = vpop.eup %6642  ;;  %1302 = vperm.xlu1 %6613, %v6641_v35  }
 0x829   :  { %1299 = vperm.xlu0 %6614, %v6643_v40   ;;  %v6645_v17 = vpop.eup %6644 }
 0x82a   :  { %v6647_v43 = vpop.eup %6646 }
 0x82b   :  { %v6649_v16 = vpop.eup %6648 }
 0x82c   :  { %1305 = vperm.xlu1 %6613, %v6645_v17   ;;  %v6651_v46 = vpop.eup %6650 }
 0x82d   :  { %1308 = vperm.xlu0 %6614, %v6647_v43   ;;  %v6653_v19 = vpop.eup %6652 }
 0x82e   :  { %v6655_v39 = vpop.eup %6654 }
 0x830   :  { %1311 = vperm.xlu1 %6613, %v6649_v16  }
 0x831   :  { %1314 = vperm.xlu0 %6614, %v6651_v46  }
 0x834   :  { %1317 = vperm.xlu1 %6613, %v6653_v19  }
 0x835   :  { %1320 = vperm.xlu0 %6614, %v6655_v39  }
 0x8a7   :  { %v1303_v28 = vpop.permute.xlu1 %1302 }
 0x8a8   :  { %v1300_v51 = vpop.permute.xlu0 %1299  ;;  %v1329_v53 = vrot.slane %v1303_v28, %v6978_v12 }
 0x8a9   :  { %v1325_v54 = vrot.slane %v1300_v51, %v6978_v12 }
 0x8ab   :  { %v1306_v56 = vpop.permute.xlu1 %1305  ;;  %v1354_v60 = vsel %vm420_vm1, %v1329_v53, %v1325_v54 }
 0x8ac   :  { %v1333_v7 = vrot.slane %v1306_v56, %v6978_v12  ;;  %v1309_v58 = vpop.permute.xlu0 %1308 }
 0x8ad   :  { %v1337_v48 = vrot.slane %v1309_v58, %v6978_v12 }
 0x8ae   :  { %v1355_v61 = vsel %vm422_vm2, %v1333_v7, %v1354_v60 }
 0x8af   :  { %v1312_v62 = vpop.permute.xlu1 %1311  ;;  %v1356_v18 = vsel %vm424_vm3, %v1337_v48, %v1355_v61 }
 0x8b0   :  { %v1341_v11 = vrot.slane %v1312_v62, %v6978_v12  ;;  %v1315_v8 = vpop.permute.xlu0 %1314 }
 0x8b1   :  { %v1345_v24 = vrot.slane %v1315_v8, %v6978_v12 }
 0x8b2   :  { %v1357_v52 = vsel %vm426_vm4, %v1341_v11, %v1356_v18 }
 0x8b3   :  { %v1318_v29 = vpop.permute.xlu1 %1317  ;;  %v1358_v23 = vsel %vm428_vm5, %v1345_v24, %v1357_v52 }
 0x8b4   :  { %v1349_v4 = vrot.slane %v1318_v29, %v6978_v12  ;;  %v1321_v31 = vpop.permute.xlu0 %1320 }
 0x8b5   :  { %v1353_v63 = vrot.slane %v1321_v31, %v6978_v12 }
 0x8b6   :  { %v1359_v10 = vsel %vm430_vm6, %v1349_v4, %v1358_v23 }
 0x8b7   :  { %v1360_v9 = vsel %vm432_vm7, %v1353_v63, %v1359_v10 }
 0x8b8   :  { %v1362_v5 = vsel %vm435_vm8, %v1360_v9, 0.0 }
 0x8b9   :  { %1363 = vadd.xlane.f32.xlu1 %v1362_v5 }
 0x946   :  { %v1364_v21 = vpop.xlane.xlu1 %1363 }
 0x947   :  { %6656 = vrcp.f32 %v1364_v21 }
 0x951   :  { %v6657_v37 = vpop.eup %6656 }
 0x952   :  { %v1370_v28 = vrot.slane %v6657_v37, %v6986_v15  ;;  %v1374_v53 = vrot.slane %v6657_v37, %v7074_v33  ;;  %v1378_v56 = vrot.slane %v6657_v37, %v7077_v34  ;;  %v1382_v58 = vrot.slane %v6657_v37, %v7080_v36 }
 0x953   :  { %v1386_v48 = vrot.slane %v6657_v37, %v7086_v44  ;;  %v1390_v62 = vrot.slane %v6657_v37, %v7090_v50  ;;  %v1394_v11 = vrot.slane %v6657_v37, %v7094_v55  ;;  %v1398_v8 = vrot.slane %v6657_v37, %v7098_v59 }
 0x954   :  { %v1407_v51 = vmul.f32 %v6643_v40, %v1370_v28  ;;  %v1408_v54 = vmul.f32 %v6641_v35, %v1374_v53  ;;  %v1409_v7 = vmul.f32 %v6645_v17, %v1378_v56  ;;  %v1410_v60 = vmul.f32 %v6647_v43, %v1382_v58  ;;  %v101_v43 = vld [vmem:[%s8625_s0 + $0x8] sm:$0xff] }
 0x955   :  { %v1411_v61 = vmul.f32 %v6649_v16, %v1386_v48  ;;  %v1412_v40 = vmul.f32 %v6651_v46, %v1390_v62  ;;  %v1413_v35 = vmul.f32 %v6653_v19, %v1394_v11  ;;  %v1414_v17 = vmul.f32 %v6655_v39, %v1398_v8  ;;  %6187 = vmatmul.mubr.msk.f32.gmra.mrb[2].mxu0 %vm116_vm10, %v101_v43 }
 0x956   :  { %1417 = vperm.xlu0 %6614, %v1407_v51   ;;  %6245 = vmatprep.mubr.msk.f32.mxu0 %vm6866_vm9, %v6867_v20 }
 0x95a   :  { %1422 = vperm.xlu0 %6614, %v1408_v54  }
 0x95e   :  { %1427 = vperm.xlu0 %6614, %v1409_v7  }
 0x962   :  { %1432 = vperm.xlu0 %6614, %v1410_v60  }
 0x966   :  { %1437 = vperm.xlu0 %6614, %v1411_v61  }
 0x96a   :  { %1442 = vperm.xlu0 %6614, %v1412_v40  }
 0x96e   :  { %1447 = vperm.xlu0 %6614, %v1413_v35  }
 0x972   :  { %1452 = vperm.xlu0 %6614, %v1414_v17  }
 0x976   :  { %1707 = vrot.lane.b32.xlu0 %v7294_v49, %s6869_s3 }
 0x9d5   :  { %v1418_v16 = vpop.permute.xlu0 %1417 }
 0x9d6   :  { %v1455_v39 = vmul.f32 %v1418_v16, %v7324_v25 }
 0x9d8   :  { %v1463_v31 = vsel %vm353_vm0, %v1455_v39, 0.0 }
 0x9d9   :  { %v1423_v46 = vpop.permute.xlu0 %1422  ;;  %v1464_v5 = vrot.slane %v1463_v31, 4 }
 0x9da   :  { %v1456_v19 = vmul.f32 %v1423_v46, %v7329_v30 }
 0x9db   :  { %v1465_v51 = vadd.f32 %v1464_v5, %v1463_v31 }
 0x9dc   :  { %v1470_v52 = vsel %vm353_vm0, %v1456_v19, 0.0 }
 0x9dd   :  { %v1428_v18 = vpop.permute.xlu0 %1427  ;;  %v1471_v23 = vrot.slane %v1470_v52, 4  ;;  %v1466_v61 = vrot.slane %v1465_v51, 2 }
 0x9de   :  { %v1457_v24 = vmul.f32 %v1428_v18, %v7335_v14 }
 0x9df   :  { %v1472_v37 = vadd.f32 %v1471_v23, %v1470_v52  ;;  %v1467_v46 = vadd.f32 %v1466_v61, %v1465_v51 }
 0x9e0   :  { %v1477_v29 = vsel %vm353_vm0, %v1457_v24, 0.0 }
 0x9e1   :  { %v1433_v4 = vpop.permute.xlu0 %1432  ;;  %v1478_v10 = vrot.slane %v1477_v29, 4 }
 0x9e2   :  { %v1458_v63 = vmul.f32 %v1433_v4, %v7342_v32  ;;  %v1473_v32 = vrot.slane %v1472_v37, 2 }
 0x9e3   :  { %v1479_v14 = vadd.f32 %v1478_v10, %v1477_v29 }
 0x9e4   :  { %v1484_v9 = vsel %vm353_vm0, %v1458_v63, 0.0  ;;  %v1474_v8 = vadd.f32 %v1473_v32, %v1472_v37 }
 0x9e5   :  { %v1485_v30 = vrot.slane %v1484_v9, 4  ;;  %v1438_v21 = vpop.permute.xlu0 %1437  ;;  %v1480_v60 = vrot.slane %v1479_v14, 2 }
 0x9e6   :  { %v1459_v25 = vmul.f32 %v1438_v21, %v7349_v38  ;;  %v1475_v29 = vrot.slane %v1474_v8, 1 }
 0x9e7   :  { %v1486_v53 = vadd.f32 %v1485_v30, %v1484_v9  ;;  %v1481_v43 = vadd.f32 %v1480_v60, %v1479_v14 }
 0x9e8   :  { %v1491_v28 = vsel %vm353_vm0, %v1459_v25, 0.0  ;;  %v1476_v21 = vadd.f32 %v1475_v29, %v1474_v8 }
 0x9e9   :  { %v1492_v54 = vrot.slane %v1491_v28, 4  ;;  %v1443_v56 = vpop.permute.xlu0 %1442  ;;  %v1487_v62 = vrot.slane %v1486_v53, 2  ;;  %v1482_v63 = vrot.slane %v1481_v43, 1 }
 0x9ea   :  { %v1460_v7 = vmul.f32 %v1443_v56, %v7356_v45 }
 0x9eb   :  { %v1493_v58 = vadd.f32 %v1492_v54, %v1491_v28  ;;  %v1488_v19 = vadd.f32 %v1487_v62, %v1486_v53  ;;  %v1483_v28 = vadd.f32 %v1482_v63, %v1481_v43 }
 0x9ec   :  { %v1498_v48 = vsel %vm353_vm0, %v1460_v7, 0.0 }
 0x9ed   :  { %v1499_v40 = vrot.slane %v1498_v48, 4  ;;  %v1448_v11 = vpop.permute.xlu0 %1447  ;;  %v1494_v38 = vrot.slane %v1493_v58, 2  ;;  %v1489_v10 = vrot.slane %v1488_v19, 1 }
 0x9ee   :  { %v1461_v35 = vmul.f32 %v1448_v11, %v7362_v47  ;;  %v1468_v47 = vrot.slane %v1467_v46, 1 }
 0x9ef   :  { %v1500_v17 = vadd.f32 %v1499_v40, %v1498_v48  ;;  %v1495_v24 = vadd.f32 %v1494_v38, %v1493_v58  ;;  %v1490_v53 = vadd.f32 %v1489_v10, %v1488_v19 }
 0x9f0   :  { %v1505_v16 = vsel %vm353_vm0, %v1461_v35, 0.0  ;;  %v1469_v51 = vadd.f32 %v1468_v47, %v1467_v46 }
 0x9f1   :  { %v1501_v45 = vrot.slane %v1500_v17, 2  ;;  %v1506_v18 = vrot.slane %v1505_v16, 4  ;;  %v1453_v39 = vpop.permute.xlu0 %1452  ;;  %v1496_v30 = vrot.slane %v1495_v24, 1 }
 0x9f2   :  { %v1462_v52 = vmul.f32 %v1453_v39, %v7370_v57  ;;  %v1532_v7 = vsel %vm420_vm1, %v1476_v21, %v1469_v51 }
 0x9f3   :  { %v1502_v4 = vadd.f32 %v1501_v45, %v1500_v17  ;;  %v1507_v31 = vadd.f32 %v1506_v18, %v1505_v16  ;;  %v1497_v56 = vadd.f32 %v1496_v30, %v1495_v24  ;;  %v1533_v60 = vsel %vm422_vm2, %v1483_v28, %v1532_v7 }
 0x9f4   :  { %v1512_v23 = vsel %vm353_vm0, %v1462_v52, 0.0  ;;  %v1534_v61 = vsel %vm424_vm3, %v1490_v53, %v1533_v60 }
 0x9f5   :  { %v1508_v9 = vrot.slane %v1507_v31, 2  ;;  %v1513_v5 = vrot.slane %v1512_v23, 4  ;;  %v1503_v25 = vrot.slane %v1502_v4, 1  ;;  %v1535_v40 = vsel %vm426_vm4, %v1497_v56, %v1534_v61  ;;  %v1708_v17 = vpop.permute.xlu0 %1707 }
 0x9f7   :  { %v1509_v37 = vadd.f32 %v1508_v9, %v1507_v31  ;;  %v1514_v14 = vadd.f32 %v1513_v5, %v1512_v23  ;;  %v1504_v32 = vadd.f32 %v1503_v25, %v1502_v4 }
 0x9f9   :  { %v1510_v54 = vrot.slane %v1509_v37, 1  ;;  %v1515_v57 = vrot.slane %v1514_v14, 2  ;;  %v1536_v38 = vsel %vm428_vm5, %v1504_v32, %v1535_v40 }
 0x9fb   :  { %v1516_v58 = vadd.f32 %v1515_v57, %v1514_v14  ;;  %v1511_v48 = vadd.f32 %v1510_v54, %v1509_v37 }
 0x9fd   :  { %v1517_v62 = vrot.slane %v1516_v58, 1  ;;  %v1537_v35 = vsel %vm430_vm6, %v1511_v48, %v1536_v38 }
 0x9ff   :  { %v1518_v11 = vadd.f32 %v1517_v62, %v1516_v58 }
 0xa01   :  { %v1538_v8 = vsel %vm432_vm7, %v1518_v11, %v1537_v35 }
 0xa02   :  { %6246 = vmatmul.mubr.msk.f32.vlgmr.msra.gmra.mrb[4].mxu0 %vm238_vm11, %v1538_v8 }
 0xa03   :  { %6499 = vmatpush3.bf16.msra.mxu0 %v7255_v27  ;;  %6267 = vmatprep.mubr.msk.f32.mxu0 %vm6866_vm9, %v6867_v20 }
 0xa04   :  { %6500 = vmatprep.subr.bf16.mxu0 %v6865_v22 }
 0xa07   :  { %6502 = vmatpush3.bf16.msra.mxu0 %v7265_v26 }
 0xa08   :  { %6509 = vmatprep.subr.bf16.mxu0 %v6865_v22 }
 0xa0a   :  { %6268 = vmatmul.mubr.msk.f32.vlgmr.msra.gmra.mrb[6].mxu0 %vm238_vm11, %v1708_v17 }
 0xa0b   :  { %6289 = vmatprep.mubr.msk.f32.mxu0 %vm6866_vm9, %v6867_v20 }
 0xa28   :  { %v209_v43 = vpop.f32.mrb[2].mxu0 }
 0xa29   :  { %v210_v16 = vadd.f32 %v7235_v41, %v209_v43  ;;  %v6188_v46 = vpop.f32.mrb[3].mxu0 }
 0xa2a   :  { %v7507_v46 = vld [vmem:[%s8627_s2] sm:$0x3f] }
 0xa2b   :  { %240 = vst.msk [vmem:[#allocation2 + $0x8] sm:$0xff] %vm238_vm11, %v210_v16 }
 0xa32   :  { %v1519_v27 = vld [vmem:[#allocation2 + $0x8] sm:$0xff] }
 0xad5   :  { %v1607_v19 = vpop.f32.mrb[4].mxu0 }
 0xad6   :  { %v1611_v45 = vadd.f32 %v1607_v19, %v1519_v27  ;;  %v6247_v18 = vpop.f32.mrb[5].mxu0 }
 0xad7   :  { %v7513_v18 = vld [vmem:[%s8627_s2 + $0x8] sm:$0x3f] }
 0xad8   :  { %6257 = vmatmul.mubr.msk.f32.vlgmr.msra.gmra.mrb[16].mxu1 %vm238_vm11, %v1611_v45 }
 0xad9   :  { %6278 = vmatprep.mubr.msk.f32.mxu1 %vm6866_vm9, %v6867_v20 }
 0xadd   :  { %v1777_v26 = vpop.f32.mrb[6].mxu0 }
 0xade   :  { %v1778_v39 = vadd.f32 %v7281_v6, %v1777_v26  ;;  %v6269_v24 = vpop.f32.mrb[7].mxu0 }
 0xae0   :  { %1789 = vrot.lane.b32.xlu1 %v1778_v39, %s6868_s20 }
 0xb52   :  { %v1790_v10 = vpop.permute.xlu1 %1789 }
 0xbab   :  { %v1692_v52 = vpop.f32.mrb[16].mxu1 }
 0xbac   :  { %v1693_v41 = vadd.f32 %v7288_v42, %v1692_v52  ;;  %v6258_v29 = vpop.f32.mrb[17].mxu1  ;;  %v7524_v52 = vld [vmem:[%s8627_s2 + $0x20] sm:$0x3f] }
 0xbae   :  { %v1781_v4 = vadd.f32 %v1778_v39, %v1693_v41  ;;  %v7519_v39 = vld [vmem:[%s8627_s2 + $0x10] sm:$0x3f] }
 0xbb0   :  { %v6014_v31 = vmul.f32 -1.442695, %v1781_v4 }
 0xbb2   :  { %6658 = vpow2.f32 %v6014_v31 }
 0xbbc   :  { %v6659_v63 = vpop.eup %6658 }
 0xbbd   :  { %v1785_v23 = vadd.f32 1.0, %v6659_v63 }
 0xbbf   :  { %6660 = vrcp.f32 %v1785_v23  ;;  %v7533_v23 = vld [vmem:[%s8627_s2 + $0x18] sm:$0x3f] }
 0xbc9   :  { %v6661_v47 = vpop.eup %6660 }
 0xbca   :  { %v1792_v9 = vmul.f32 %v6661_v47, %v1790_v10  ;;  %v1799_v21 = vsub.f32 1.0, %v6661_v47  ;;  %v1805_v25 = vmul.f32 %v6661_v47, %v7294_v49  ;;  %v7538_v10 = vld [vmem:[%s8627_s2 + $0x30] sm:$0x3f] }
 0xbcc   :  { %1794 = vrot.lane.b32.xlu0 %v1792_v9, %s6868_s20 }
 0xc3e   :  { %v1795_v5 = vpop.permute.xlu0 %1794 }
 0xc3f   :  { %v1797_v6 = vadd.f32 %v1795_v5, %v1693_v41 }
 0xc41   :  { %6662 = vtanh.f32 %v1797_v6 }
 0xc4b   :  { %v6663_v30 = vpop.eup %6662 }
 0xc4c   :  { %1801 = vrot.lane.b32.xlu0 %v6663_v30, %s6869_s3 }
 0xcbe   :  { %v1802_v42 = vpop.permute.xlu0 %1801 }
 0xcbf   :  { %v1804_v37 = vmul.f32 %v1802_v42, %v1799_v21  ;;  %v7547_v42 = vld [vmem:[%s8627_s2 + $0x28] sm:$0x3f] }
 0xcc1   :  { %v7477_v14 = vadd.f32 %v1805_v25, %v1804_v37 }
 0xcc3   :  { %v1829_v28 = vrot.slane %v7477_v14, %v6981_v13  ;;  %v1822_v51 = vcombine.high %v7477_v14, %v7477_v14 }
 0xcc5   :  { %v1845_v53 = vrot.slane %v1829_v28, %v6981_v13  ;;  %v1837_v54 = vcombine.high %v1829_v28, %v1829_v28  ;;  %v1836_v57 = vrot.slane %v1822_v51, %v6981_v13 }
 0xcc7   :  { %v1874_v56 = vrot.slane %v1845_v53, %v6986_v15  ;;  %v1867_v7 = vcombine.high %v1845_v53, %v1845_v53  ;;  %v1859_v32 = vrot.slane %v1837_v54, %v6981_v13  ;;  %v1852_v60 = vrot.slane %v1836_v57, %v6981_v13  ;;  %v7555_v53 = vld [vmem:[%s8627_s2 + $0x38] sm:$0x3f] }
 0xcc8   :  { %v1838_v62 = vcombine.high %v1836_v57, %v1836_v57 }
 0xcc9   :  { %1903 = vrot.lane.b32.xlu0 %v1874_v56, %s6869_s3  ;;  %v1882_v58 = vrot.slane %v1867_v7, %v6986_v15  ;;  %v1878_v48 = vrot.slane %v1859_v32, %v6986_v15  ;;  %v1869_v61 = vcombine.high %v1859_v32, %v1859_v32  ;;  %v1890_v40 = vrot.slane %v1852_v60, %v6986_v15 }
 0xcca   :  { %v1868_v11 = vcombine.high %v1852_v60, %v1852_v60  ;;  %v1866_v35 = vrot.slane %v1838_v62, %v6981_v13 }
 0xccb   :  { %1907 = vrot.lane.b32.xlu1 %v1882_v58, %s6869_s3  ;;  %v1886_v38 = vrot.slane %v1869_v61, %v6986_v15 }
 0xccc   :  { %v1898_v8 = vrot.slane %v1868_v11, %v6986_v15  ;;  %v1894_v17 = vrot.slane %v1866_v35, %v6986_v15  ;;  %v1870_v43 = vcombine.high %v1866_v35, %v1866_v35 }
 0xccd   :  { %1905 = vrot.lane.b32.xlu0 %v1878_v48, %s6869_s3 }
 0xcce   :  { %v1902_v16 = vrot.slane %v1870_v43, %v6986_v15 }
 0xccf   :  { %1911 = vrot.lane.b32.xlu1 %v1890_v40, %s6869_s3 }
 0xcd1   :  { %1909 = vrot.lane.b32.xlu0 %v1886_v38, %s6869_s3 }
 0xcd3   :  { %1915 = vrot.lane.b32.xlu1 %v1898_v8, %s6869_s3 }
 0xcd5   :  { %1913 = vrot.lane.b32.xlu0 %v1894_v17, %s6869_s3 }
 0xcd9   :  { %1917 = vrot.lane.b32.xlu0 %v1902_v16, %s6869_s3 }
 0xd3b   :  { %v1904_v27 = vpop.permute.xlu0 %1903 }
 0xd3c   :  { %v1927_v19 = vmul.f32 %v1904_v27, %v7507_v46 }
 0xd3d   :  { %v1908_v45 = vpop.permute.xlu1 %1907 }
 0xd3e   :  { %v1935_v26 = vsel %vm353_vm0, %v1927_v19, 0.0  ;;  %v1929_v4 = vmul.f32 %v1908_v45, %v7519_v39 }
 0xd3f   :  { %v1906_v24 = vpop.permute.xlu0 %1905  ;;  %1936 = vadd.xlane.f32.xlu1 %v1935_v26 }
 0xd40   :  { %v1928_v41 = vmul.f32 %v1906_v24, %v7513_v18  ;;  %v1941_v21 = vsel %vm353_vm0, %v1929_v4, 0.0 }
 0xd41   :  { %v1912_v29 = vpop.permute.xlu1 %1911 }
 0xd42   :  { %v1931_v31 = vmul.f32 %v1912_v29, %v7524_v52  ;;  %v1938_v63 = vsel %vm353_vm0, %v1928_v41, 0.0 }
 0xd43   :  { %v1910_v47 = vpop.permute.xlu0 %1909  ;;  %1939 = vadd.xlane.f32.xlu0 %v1938_v63 }
 0xd44   :  { %v1947_v9 = vsel %vm353_vm0, %v1931_v31, 0.0  ;;  %v1930_v6 = vmul.f32 %v1910_v47, %v7533_v23 }
 0xd45   :  { %1948 = vadd.xlane.f32.xlu1 %v1947_v9  ;;  %v1916_v5 = vpop.permute.xlu1 %1915 }
 0xd46   :  { %v1933_v30 = vmul.f32 %v1916_v5, %v7538_v10  ;;  %v1944_v51 = vsel %vm353_vm0, %v1930_v6, 0.0 }
 0xd47   :  { %v1914_v25 = vpop.permute.xlu0 %1913  ;;  %1942 = vadd.xlane.f32.xlu0 %v1941_v21 }
 0xd48   :  { %v1953_v37 = vsel %vm353_vm0, %v1933_v30, 0.0  ;;  %v1932_v28 = vmul.f32 %v1914_v25, %v7547_v42 }
 0xd49   :  { %1954 = vadd.xlane.f32.xlu1 %v1953_v37 }
 0xd4a   :  { %v1950_v56 = vsel %vm353_vm0, %v1932_v28, 0.0 }
 0xd4b   :  { %1945 = vadd.xlane.f32.xlu0 %v1944_v51  ;;  %v1918_v54 = vpop.permute.xlu0 %1917 }
 0xd4c   :  { %v1934_v57 = vmul.f32 %v1918_v54, %v7555_v53 }
 0xd4e   :  { %v1956_v7 = vsel %vm353_vm0, %v1934_v57, 0.0 }
 0xd4f   :  { %1951 = vadd.xlane.f32.xlu0 %v1950_v56 }
 0xd53   :  { %1957 = vadd.xlane.f32.xlu0 %v1956_v7 }
 0xdcc   :  { %v1937_v58 = vpop.xlane.xlu1 %1936 }
 0xdcd   :  { %v1970_v62 = vrot.slane %v1937_v58, %v6978_v12 }
 0xdd0   :  { %v1940_v32 = vpop.xlane.xlu0 %1939 }
 0xdd1   :  { %v1974_v48 = vrot.slane %v1940_v32, %v6978_v12 }
 0xdd2   :  { %v1949_v40 = vpop.xlane.xlu1 %1948 }
 0xdd3   :  { %v1999_v38 = vsel %vm420_vm1, %v1974_v48, %v1970_v62  ;;  %v1986_v43 = vrot.slane %v1949_v40, %v6978_v12 }
 0xdd4   :  { %v1943_v60 = vpop.xlane.xlu0 %1942 }
 0xdd5   :  { %v1978_v61 = vrot.slane %v1943_v60, %v6978_v12 }
 0xdd6   :  { %v1955_v27 = vpop.xlane.xlu1 %1954 }
 0xdd7   :  { %v2000_v8 = vsel %vm422_vm2, %v1978_v61, %v1999_v38  ;;  %v1994_v24 = vrot.slane %v1955_v27, %v6978_v12 }
 0xdd8   :  { %v1946_v11 = vpop.xlane.xlu0 %1945 }
 0xdd9   :  { %v1982_v35 = vrot.slane %v1946_v11, %v6978_v12 }
 0xddb   :  { %v2001_v17 = vsel %vm424_vm3, %v1982_v35, %v2000_v8 }
 0xddc   :  { %v1952_v16 = vpop.xlane.xlu0 %1951  ;;  %v2002_v45 = vsel %vm426_vm4, %v1986_v43, %v2001_v17 }
 0xddd   :  { %v1990_v19 = vrot.slane %v1952_v16, %v6978_v12 }
 0xddf   :  { %v2003_v26 = vsel %vm428_vm5, %v1990_v19, %v2002_v45 }
 0xde0   :  { %v1958_v41 = vpop.xlane.xlu0 %1957  ;;  %v2004_v4 = vsel %vm430_vm6, %v1994_v24, %v2003_v26 }
 0xde1   :  { %v1998_v29 = vrot.slane %v1958_v41, %v6978_v12 }
 0xde3   :  { %v2005_v31 = vsel %vm432_vm7, %v1998_v29, %v2004_v4 }
 0xde4   :  { %v2007_v63 = vsel %vm435_vm8, %v2005_v31, -inf }
 0xde5   :  { %2008 = vmax.xlane.f32.xlu1 %v2007_v63 }
 0xe72   :  { %v2009_v47 = vpop.xlane.xlu1 %2008 }
 0xe73   :  { %v2014_v9 = vrot.slane %v2009_v47, %v6986_v15  ;;  %v2018_v5 = vrot.slane %v2009_v47, %v7074_v33  ;;  %v2022_v6 = vrot.slane %v2009_v47, %v7077_v34  ;;  %v2030_v30 = vrot.slane %v2009_v47, %v7086_v44 }
 0xe74   :  { %v2038_v21 = vrot.slane %v2009_v47, %v7094_v55  ;;  %v2026_v54 = vrot.slane %v2009_v47, %v7080_v36  ;;  %v2034_v61 = vrot.slane %v2009_v47, %v7090_v50  ;;  %v2042_v8 = vrot.slane %v2009_v47, %v7098_v59 }
 0xe75   :  { %v2051_v25 = vsub.f32 %v1937_v58, %v2014_v9  ;;  %v2052_v37 = vsub.f32 %v1940_v32, %v2018_v5  ;;  %v2055_v28 = vsub.f32 %v1949_v40, %v2030_v30  ;;  %v2053_v56 = vsub.f32 %v1943_v60, %v2022_v6 }
 0xe76   :  { %v2057_v7 = vsub.f32 %v1955_v27, %v2038_v21  ;;  %v2054_v38 = vsub.f32 %v1946_v11, %v2026_v54  ;;  %v2056_v58 = vsub.f32 %v1952_v16, %v2034_v61  ;;  %v2058_v17 = vsub.f32 %v1958_v41, %v2042_v8 }
 0xe77   :  { %v2059_v51 = vmul.f32 1.442695, %v2051_v25  ;;  %v2061_v57 = vmul.f32 1.442695, %v2052_v37  ;;  %v2067_v48 = vmul.f32 1.442695, %v2055_v28 }
 0xe78   :  { %v2063_v62 = vmul.f32 1.442695, %v2053_v56  ;;  %v2071_v35 = vmul.f32 1.442695, %v2057_v7  ;;  %v2065_v32 = vmul.f32 1.442695, %v2054_v38 }
 0xe79   :  { %6664 = vpow2.f32 %v2059_v51  ;;  %v2069_v60 = vmul.f32 1.442695, %v2056_v58  ;;  %v2073_v19 = vmul.f32 1.442695, %v2058_v17 }
 0xe7a   :  { %6666 = vpow2.f32 %v2061_v57 }
 0xe7b   :  { %6668 = vpow2.f32 %v2067_v48 }
 0xe7c   :  { %6670 = vpow2.f32 %v2063_v62 }
 0xe7d   :  { %6672 = vpow2.f32 %v2071_v35 }
 0xe7e   :  { %6674 = vpow2.f32 %v2065_v32 }
 0xe7f   :  { %6676 = vpow2.f32 %v2069_v60 }
 0xe80   :  { %6678 = vpow2.f32 %v2073_v19 }
 0xe83   :  { %v6665_v40 = vpop.eup %6664 }
 0xe84   :  { %2084 = vperm.xlu0 %6614, %v6665_v40   ;;  %v6667_v43 = vpop.eup %6666 }
 0xe85   :  { %v6669_v27 = vpop.eup %6668  ;;  %2087 = vperm.xlu1 %6613, %v6667_v43  }
 0xe86   :  { %v6671_v11 = vpop.eup %6670 }
 0xe87   :  { %v6673_v45 = vpop.eup %6672 }
 0xe88   :  { %2096 = vperm.xlu0 %6614, %v6669_v27   ;;  %v6675_v26 = vpop.eup %6674 }
 0xe89   :  { %2090 = vperm.xlu1 %6613, %v6671_v11   ;;  %v6677_v16 = vpop.eup %6676 }
 0xe8a   :  { %v6679_v24 = vpop.eup %6678 }
 0xe8c   :  { %2102 = vperm.xlu0 %6614, %v6673_v45  }
 0xe8d   :  { %2093 = vperm.xlu1 %6613, %v6675_v26  }
 0xe91   :  { %2099 = vperm.xlu1 %6613, %v6677_v16  }
 0xe95   :  { %2105 = vperm.xlu1 %6613, %v6679_v24  }
 0xf03   :  { %v2085_v4 = vpop.permute.xlu0 %2084 }
 0xf04   :  { %v2088_v29 = vpop.permute.xlu1 %2087  ;;  %v2110_v63 = vrot.slane %v2085_v4, %v6978_v12 }
 0xf05   :  { %v2114_v31 = vrot.slane %v2088_v29, %v6978_v12 }
 0xf07   :  { %v2097_v9 = vpop.permute.xlu0 %2096  ;;  %v2139_v6 = vsel %vm420_vm1, %v2114_v31, %v2110_v63 }
 0xf08   :  { %v2091_v41 = vpop.permute.xlu1 %2090  ;;  %v2126_v37 = vrot.slane %v2097_v9, %v6978_v12 }
 0xf09   :  { %v2118_v47 = vrot.slane %v2091_v41, %v6978_v12 }
 0xf0b   :  { %v2140_v21 = vsel %vm422_vm2, %v2118_v47, %v2139_v6  ;;  %v2103_v51 = vpop.permute.xlu0 %2102 }
 0xf0c   :  { %v2094_v5 = vpop.permute.xlu1 %2093  ;;  %v2134_v7 = vrot.slane %v2103_v51, %v6978_v12 }
 0xf0d   :  { %v2122_v30 = vrot.slane %v2094_v5, %v6978_v12 }
 0xf0f   :  { %v2141_v25 = vsel %vm424_vm3, %v2122_v30, %v2140_v21  ;;  %v2397_v21 = vld [vmem:[%s8631_s6] sm:$0xff] }
 0xf10   :  { %v2100_v28 = vpop.permute.xlu1 %2099  ;;  %v2142_v57 = vsel %vm426_vm4, %v2126_v37, %v2141_v25  ;;  %v2398_v25 = vld [vmem:[%s8631_s6 + $0x8] sm:$0xff] }
 0xf11   :  { %v2130_v54 = vrot.slane %v2100_v28, %v6978_v12  ;;  %v7636_v37 = vpack.c.bf16 %v2398_v25, %v2397_v21 }
 0xf13   :  { %v2143_v56 = vsel %vm428_vm5, %v2130_v54, %v2142_v57  ;;  %6511 = vmatpush3.bf16.msra.mxu0 %v7636_v37 }
 0xf14   :  { %v2106_v48 = vpop.permute.xlu1 %2105  ;;  %v2144_v62 = vsel %vm430_vm6, %v2134_v7, %v2143_v56  ;;  %6512 = vmatprep.subr.bf16.mxu0 %v6865_v22 }
 0xf15   :  { %v2138_v61 = vrot.slane %v2106_v48, %v6978_v12 }
 0xf17   :  { %v2145_v38 = vsel %vm432_vm7, %v2138_v61, %v2144_v62 }
 0xf18   :  { %v2147_v35 = vsel %vm435_vm8, %v2145_v38, 0.0 }
 0xf19   :  { %2148 = vadd.xlane.f32.xlu0 %v2147_v35 }
 0xfa6   :  { %v2149_v8 = vpop.xlane.xlu0 %2148 }
 0xfa7   :  { %6680 = vrcp.f32 %v2149_v8 }
 0xfb1   :  { %v6681_v32 = vpop.eup %6680 }
 0xfb2   :  { %v2183_v58 = vrot.slane %v6681_v32, %v7098_v59  ;;  %v2155_v60 = vrot.slane %v6681_v32, %v6986_v15  ;;  %v2159_v29 = vrot.slane %v6681_v32, %v7074_v33  ;;  %v2163_v41 = vrot.slane %v6681_v32, %v7077_v34 }
 0xfb3   :  { %v2167_v63 = vrot.slane %v6681_v32, %v7080_v36  ;;  %v2171_v9 = vrot.slane %v6681_v32, %v7086_v44  ;;  %v2179_v6 = vrot.slane %v6681_v32, %v7094_v55 }
 0xfb4   :  { %v2199_v17 = vmul.f32 %v6679_v24, %v2183_v58  ;;  %v2192_v19 = vmul.f32 %v6665_v40, %v2155_v60  ;;  %v2193_v4 = vmul.f32 %v6667_v43, %v2159_v29  ;;  %v2194_v31 = vmul.f32 %v6671_v11, %v2163_v41  ;;  %v2305_v11 = vld [vmem:[%s8629_s4] sm:$0xff] }
 0xfb5   :  { %v2195_v47 = vmul.f32 %v6675_v26, %v2167_v63  ;;  %v2196_v5 = vmul.f32 %v6669_v27, %v2171_v9  ;;  %v2175_v24 = vrot.slane %v6681_v32, %v7090_v50  ;;  %v2198_v43 = vmul.f32 %v6673_v45, %v2179_v6  ;;  %v2306_v27 = vld [vmem:[%s8629_s4 + $0x8] sm:$0xff]  ;;  %v2307_v45 = vld [vmem:[%s8629_s4 + $0x10] sm:$0xff] }
 0xfb6   :  { %2237 = vperm.xlu0 %6614, %v2199_v17   ;;  %2202 = vperm.xlu1 %6613, %v2192_v19   ;;  %v7616_v26 = vpack.c.bf16 %v2306_v27, %v2305_v11 }
 0xfb7   :  { %v2197_v40 = vmul.f32 %v6677_v16, %v2175_v24  ;;  %v2308_v16 = vld [vmem:[%s8629_s4 + $0x18] sm:$0xff] }
 0xfb8   :  { %6505 = vmatpush3.bf16.msra.mxu1 %v7616_v26  ;;  %v7626_v30 = vpack.c.bf16 %v2308_v16, %v2307_v45 }
 0xfb9   :  { %6506 = vmatprep.subr.bf16.mxu1 %v6865_v22 }
 0xfba   :  { %2207 = vperm.xlu1 %6613, %v2193_v4  }
 0xfbc   :  { %6508 = vmatpush3.bf16.msra.mxu1 %v7626_v30 }
 0xfbd   :  { %6515 = vmatprep.subr.bf16.mxu1 %v6865_v22 }
 0xfbe   :  { %2212 = vperm.xlu1 %6613, %v2194_v31  }
 0xfc2   :  { %2217 = vperm.xlu1 %6613, %v2195_v47  }
 0xfc6   :  { %2222 = vperm.xlu1 %6613, %v2196_v5  }
 0xfca   :  { %2227 = vperm.xlu1 %6613, %v2197_v40  }
 0xfce   :  { %2232 = vperm.xlu1 %6613, %v2198_v43  }
 0xfd2   :  { %2492 = vrot.lane.b32.xlu1 %v7477_v14, %s6869_s3 }
0x1035   :  { %v2203_v28 = vpop.permute.xlu1 %2202  ;;  %v2238_v48 = vpop.permute.xlu0 %2237 }
0x1036   :  { %v2240_v57 = vmul.f32 %v2203_v28, %v7507_v46  ;;  %v2247_v8 = vmul.f32 %v2238_v48, %v7555_v53 }
0x1038   :  { %v2248_v62 = vsel %vm353_vm0, %v2240_v57, 0.0  ;;  %v2297_v19 = vsel %vm353_vm0, %v2247_v8, 0.0 }
0x1039   :  { %v2208_v51 = vpop.permute.xlu1 %2207  ;;  %v2249_v60 = vrot.slane %v2248_v62, 4  ;;  %v2298_v47 = vrot.slane %v2297_v19, 4 }
0x103a   :  { %v2241_v54 = vmul.f32 %v2208_v51, %v7513_v18 }
0x103b   :  { %v2250_v41 = vadd.f32 %v2249_v60, %v2248_v62  ;;  %v2299_v27 = vadd.f32 %v2298_v47, %v2297_v19 }
0x103c   :  { %v2255_v56 = vsel %vm353_vm0, %v2241_v54, 0.0 }
0x103d   :  { %v2213_v7 = vpop.permute.xlu1 %2212  ;;  %v2256_v38 = vrot.slane %v2255_v56, 4  ;;  %v2300_v48 = vrot.slane %v2299_v27, 2 }
0x103e   :  { %v2242_v61 = vmul.f32 %v2213_v7, %v7519_v39 }
0x103f   :  { %v2257_v17 = vadd.f32 %v2256_v38, %v2255_v56 }
0x1040   :  { %v2262_v35 = vsel %vm353_vm0, %v2242_v61, 0.0 }
0x1041   :  { %v2263_v32 = vrot.slane %v2262_v35, 4  ;;  %v2218_v58 = vpop.permute.xlu1 %2217  ;;  %v2258_v9 = vrot.slane %v2257_v17, 2 }
0x1042   :  { %v2243_v18 = vmul.f32 %v2218_v58, %v7533_v23  ;;  %v2251_v23 = vrot.slane %v2250_v41, 2 }
0x1043   :  { %v2264_v29 = vadd.f32 %v2263_v32, %v2262_v35  ;;  %v2259_v45 = vadd.f32 %v2258_v9, %v2257_v17  ;;  %v2301_v17 = vadd.f32 %v2300_v48, %v2299_v27 }
0x1044   :  { %v2269_v46 = vsel %vm353_vm0, %v2243_v18, 0.0  ;;  %v2252_v51 = vadd.f32 %v2251_v23, %v2250_v41 }
0x1045   :  { %v2270_v4 = vrot.slane %v2269_v46, 4  ;;  %v2223_v39 = vpop.permute.xlu1 %2222  ;;  %v2265_v5 = vrot.slane %v2264_v29, 2  ;;  %v2260_v61 = vrot.slane %v2259_v45, 1 }
0x1046   :  { %v2244_v31 = vmul.f32 %v2223_v39, %v7524_v52  ;;  %v2253_v8 = vrot.slane %v2252_v51, 1 }
0x1047   :  { %v2271_v63 = vadd.f32 %v2270_v4, %v2269_v46  ;;  %v2266_v21 = vadd.f32 %v2265_v5, %v2264_v29  ;;  %v2261_v46 = vadd.f32 %v2260_v61, %v2259_v45 }
0x1048   :  { %v2276_v53 = vsel %vm353_vm0, %v2244_v31, 0.0 }
0x1049   :  { %v2277_v24 = vrot.slane %v2276_v53, 4  ;;  %v2228_v40 = vpop.permute.xlu1 %2227  ;;  %v2272_v6 = vrot.slane %v2271_v63, 2 }
0x104a   :  { %v2245_v43 = vmul.f32 %v2228_v40, %v7547_v42  ;;  %v2267_v42 = vrot.slane %v2266_v21, 1  ;;  %v2482_v40 = vld [vmem:[%s8633_s8 + $0x8] sm:$0xff] }
0x104b   :  { %v2278_v11 = vadd.f32 %v2277_v24, %v2276_v53  ;;  %v2273_v54 = vadd.f32 %v2272_v6, %v2271_v63  ;;  %v2302_v63 = vrot.slane %v2301_v17, 1  ;;  %v2481_v24 = vld [vmem:[%s8633_s8] sm:$0xff] }
0x104c   :  { %v2283_v16 = vsel %vm353_vm0, %v2245_v43, 0.0  ;;  %v2268_v19 = vadd.f32 %v2267_v42, %v2266_v21  ;;  %v7667_v45 = vpack.c.bf16 %v2482_v40, %v2481_v24  ;;  %v2483_v21 = vld [vmem:[%s8633_s8 + $0x10] sm:$0xff] }
0x104d   :  { %v2279_v25 = vrot.slane %v2278_v11, 2  ;;  %v2284_v52 = vrot.slane %v2283_v16, 4  ;;  %v2233_v28 = vpop.permute.xlu1 %2232  ;;  %v2274_v32 = vrot.slane %v2273_v54, 1 }
0x104e   :  { %v2246_v57 = vmul.f32 %v2233_v28, %v7538_v10  ;;  %v2254_v10 = vadd.f32 %v2253_v8, %v2252_v51 }
0x104f   :  { %v2280_v56 = vadd.f32 %v2279_v25, %v2278_v11  ;;  %v2285_v7 = vadd.f32 %v2284_v52, %v2283_v16  ;;  %v2275_v39 = vadd.f32 %v2274_v32, %v2273_v54  ;;  %v2303_v11 = vadd.f32 %v2302_v63, %v2301_v17  ;;  %v2484_v25 = vld [vmem:[%s8633_s8 + $0x18] sm:$0xff]  ;;  %v2399_v54 = vld [vmem:[%s8631_s6 + $0x10] sm:$0xff] }
0x1050   :  { %v2290_v62 = vsel %vm353_vm0, %v2246_v57, 0.0  ;;  %v2317_v47 = vsel %vm420_vm1, %v2261_v46, %v2254_v10  ;;  %v7679_v28 = vpack.c.bf16 %v2484_v25, %v2483_v21  ;;  %v2400_v57 = vld [vmem:[%s8631_s6 + $0x18] sm:$0xff] }
0x1051   :  { %v2286_v38 = vrot.slane %v2285_v7, 2  ;;  %v2291_v35 = vrot.slane %v2290_v62, 4  ;;  %v2281_v58 = vrot.slane %v2280_v56, 1  ;;  %v2318_v53 = vsel %vm422_vm2, %v2268_v19, %v2317_v47  ;;  %v2493_v51 = vpop.permute.xlu1 %2492 }
0x1052   :  { %v2319_v23 = vsel %vm424_vm3, %v2275_v39, %v2318_v53 }
0x1053   :  { %v2287_v60 = vadd.f32 %v2286_v38, %v2285_v7  ;;  %v2292_v18 = vadd.f32 %v2291_v35, %v2290_v62  ;;  %v2282_v41 = vadd.f32 %v2281_v58, %v2280_v56  ;;  %v6513_v56 = vpack.c.bf16 %v2400_v57, %v2399_v54  ;;  %v7707_v62 = vld [vmem:[%s8634_s9] ss:$0 sm:$0xff] }
0x1055   :  { %v2288_v29 = vrot.slane %v2287_v60, 1  ;;  %v2293_v4 = vrot.slane %v2292_v18, 2  ;;  %v2320_v43 = vsel %vm426_vm4, %v2282_v41, %v2319_v23  ;;  %6514 = vmatpush3.bf16.msra.mxu0 %v6513_v56 }
0x1056   :  { %6521 = vmatprep.subr.bf16.mxu0 %v6865_v22 }
0x1057   :  { %v2294_v31 = vadd.f32 %v2293_v4, %v2292_v18  ;;  %v2289_v9 = vadd.f32 %v2288_v29, %v2287_v60 }
0x1059   :  { %v2295_v5 = vrot.slane %v2294_v31, 1  ;;  %v2321_v27 = vsel %vm428_vm5, %v2289_v9, %v2320_v43 }
0x105b   :  { %v2296_v6 = vadd.f32 %v2295_v5, %v2294_v31 }
0x105d   :  { %v2322_v16 = vsel %vm430_vm6, %v2296_v6, %v2321_v27 }
0x105e   :  { %v2323_v52 = vsel %vm432_vm7, %v2303_v11, %v2322_v16 }
0x105f   :  { %6279 = vmatmul.mubr.msk.f32.vlgmr.msra.gmra.mrb[18].mxu1 %vm238_vm11, %v2323_v52 }
0x1060   :  { %6517 = vmatpush3.bf16.msra.mxu1 %v7667_v45  ;;  %6300 = vmatprep.mubr.msk.f32.mxu1 %vm6866_vm9, %v6867_v20 }
0x1061   :  { %6518 = vmatprep.subr.bf16.mxu1 %v6865_v22 }
0x1064   :  { %6520 = vmatpush3.bf16.msra.mxu1 %v7679_v28 }
0x1065   :  { %6527 = vmatprep.subr.bf16.mxu1 %v6865_v22 }
0x1067   :  { %6301 = vmatmul.mubr.msk.f32.vlgmr.msra.gmra.mrb[20].mxu1 %vm238_vm11, %v2493_v51 }
0x1068   :  { %6529 = vmatpush3.bf16.msra.mxu1 %v7636_v37  ;;  %6322 = vmatprep.mubr.msk.f32.mxu1 %vm6866_vm9, %v6867_v20  ;;  %v2304_v37 = vld [vmem:[#allocation2 + $0x10] sm:$0xff] }
0x1069   :  { %6530 = vmatprep.subr.bf16.mxu1 %v6865_v22 }
0x106c   :  { %6532 = vmatpush3.bf16.msra.mxu1 %v6513_v56 }
0x106d   :  { %6539 = vmatprep.subr.bf16.mxu1 %v6865_v22 }
0x1132   :  { %v2392_v7 = vpop.f32.mrb[18].mxu1 }
0x1133   :  { %v2396_v48 = vadd.f32 %v2392_v7, %v2304_v37  ;;  %v6280_v61 = vpop.f32.mrb[19].mxu1 }
0x1135   :  { %6290 = vmatmul.mubr.msk.f32.vlgmr.msra.gmra.mrb[8].mxu0 %vm238_vm11, %v2396_v48 }
0x1136   :  { %6523 = vmatpush3.bf16.msra.mxu0 %v7616_v26  ;;  %6311 = vmatprep.mubr.msk.f32.mxu0 %vm6866_vm9, %v6867_v20  ;;  %v7716_v26 = vld [vmem:[%s8632_s7] ss:$0 sm:$0xff] }
0x1137   :  { %6524 = vmatprep.subr.bf16.mxu0 %v6865_v22 }
0x113a   :  { %v2562_v42 = vpop.f32.mrb[20].mxu1  ;;  %6526 = vmatpush3.bf16.msra.mxu0 %v7626_v30 }
0x113b   :  { %v2563_v38 = vadd.f32 %v7707_v62, %v2562_v42  ;;  %v6302_v35 = vpop.f32.mrb[21].mxu1  ;;  %6533 = vmatprep.subr.bf16.mxu0 %v6865_v22  ;;  %v7752_v42 = vld [vmem:[%s8627_s2] sm:$0x3f] }
0x113c   :  { %v7757_v35 = vld [vmem:[%s8627_s2 + $0x10] sm:$0x3f] }
0x113d   :  { %2574 = vrot.lane.b32.xlu1 %v2563_v38, %s6868_s20 }
0x11af   :  { %v2575_v19 = vpop.permute.xlu1 %2574 }
0x1208   :  { %v2477_v8 = vpop.f32.mrb[8].mxu0 }
0x1209   :  { %v2478_v32 = vadd.f32 %v7716_v26, %v2477_v8  ;;  %v6291_v58 = vpop.f32.mrb[9].mxu0 }
0x120a   :  { %v7763_v58 = vld [vmem:[%s8627_s2 + $0x8] sm:$0x3f] }
0x120b   :  { %v2566_v60 = vadd.f32 %v2563_v38, %v2478_v32 }
0x120d   :  { %v6020_v18 = vmul.f32 -1.442695, %v2566_v60 }
0x120f   :  { %6682 = vpow2.f32 %v6020_v18 }
0x1219   :  { %v6683_v30 = vpop.eup %6682 }
0x121a   :  { %v2570_v17 = vadd.f32 1.0, %v6683_v30 }
0x121c   :  { %6684 = vrcp.f32 %v2570_v17  ;;  %v7770_v17 = vld [vmem:[%s8627_s2 + $0x20] sm:$0x3f] }
0x1226   :  { %v6685_v46 = vpop.eup %6684 }
0x1227   :  { %v2577_v29 = vmul.f32 %v6685_v46, %v2575_v19  ;;  %v2584_v41 = vsub.f32 1.0, %v6685_v46  ;;  %v2590_v63 = vmul.f32 %v6685_v46, %v7477_v14 }
0x1229   :  { %2579 = vrot.lane.b32.xlu1 %v2577_v29, %s6868_s20  ;;  %v7776_v29 = vld [vmem:[%s8627_s2 + $0x18] sm:$0x3f] }
0x129b   :  { %v2580_v4 = vpop.permute.xlu1 %2579 }
0x129c   :  { %v2582_v10 = vadd.f32 %v2580_v4, %v2478_v32 }
0x129e   :  { %6686 = vtanh.f32 %v2582_v10 }
0x12a8   :  { %v6687_v39 = vpop.eup %6686 }
0x12a9   :  { %2586 = vrot.lane.b32.xlu1 %v6687_v39, %s6869_s3 }
0x131b   :  { %v2587_v31 = vpop.permute.xlu1 %2586 }
0x131c   :  { %v2589_v47 = vmul.f32 %v2587_v31, %v2584_v41  ;;  %v7784_v31 = vld [vmem:[%s8627_s2 + $0x30] sm:$0x3f] }
0x131e   :  { %v7722_v9 = vadd.f32 %v2590_v63, %v2589_v47 }
0x1320   :  { %v2614_v53 = vrot.slane %v7722_v9, %v6981_v13  ;;  %v2607_v5 = vcombine.high %v7722_v9, %v7722_v9 }
0x1322   :  { %v2630_v24 = vrot.slane %v2614_v53, %v6981_v13  ;;  %v2622_v40 = vcombine.high %v2614_v53, %v2614_v53  ;;  %v2621_v23 = vrot.slane %v2607_v5, %v6981_v13  ;;  %v7790_v53 = vld [vmem:[%s8627_s2 + $0x28] sm:$0x3f] }
0x1324   :  { %v2659_v6 = vrot.slane %v2630_v24, %v6986_v15  ;;  %v2652_v43 = vcombine.high %v2630_v24, %v2630_v24  ;;  %v2644_v11 = vrot.slane %v2622_v40, %v6981_v13  ;;  %v2637_v16 = vrot.slane %v2621_v23, %v6981_v13 }
0x1325   :  { %v2623_v52 = vcombine.high %v2621_v23, %v2621_v23 }
0x1326   :  { %2688 = vrot.lane.b32.xlu1 %v2659_v6, %s6869_s3  ;;  %v2667_v27 = vrot.slane %v2652_v43, %v6986_v15  ;;  %v2663_v21 = vrot.slane %v2644_v11, %v6986_v15  ;;  %v2654_v25 = vcombine.high %v2644_v11, %v2644_v11  ;;  %v2675_v51 = vrot.slane %v2637_v16, %v6986_v15  ;;  %v7799_v43 = vld [vmem:[%s8627_s2 + $0x38] sm:$0x3f] }
0x1327   :  { %v2653_v54 = vcombine.high %v2637_v16, %v2637_v16  ;;  %v2651_v56 = vrot.slane %v2623_v52, %v6981_v13 }
0x1328   :  { %2692 = vrot.lane.b32.xlu0 %v2667_v27, %s6869_s3  ;;  %v2671_v57 = vrot.slane %v2654_v25, %v6986_v15 }
0x1329   :  { %v2683_v37 = vrot.slane %v2653_v54, %v6986_v15  ;;  %v2679_v7 = vrot.slane %v2651_v56, %v6986_v15  ;;  %v2655_v48 = vcombine.high %v2651_v56, %v2651_v56 }
0x132a   :  { %2690 = vrot.lane.b32.xlu1 %v2663_v21, %s6869_s3 }
0x132b   :  { %v2687_v61 = vrot.slane %v2655_v48, %v6986_v15 }
0x132c   :  { %2696 = vrot.lane.b32.xlu0 %v2675_v51, %s6869_s3 }
0x132e   :  { %2694 = vrot.lane.b32.xlu1 %v2671_v57, %s6869_s3 }
0x1330   :  { %2700 = vrot.lane.b32.xlu0 %v2683_v37, %s6869_s3 }
0x1332   :  { %2698 = vrot.lane.b32.xlu1 %v2679_v7, %s6869_s3 }
0x1336   :  { %2702 = vrot.lane.b32.xlu1 %v2687_v61, %s6869_s3 }
0x1398   :  { %v2689_v38 = vpop.permute.xlu1 %2688 }
0x1399   :  { %v2712_v8 = vmul.f32 %v2689_v38, %v7752_v42 }
0x139a   :  { %v2693_v32 = vpop.permute.xlu0 %2692 }
0x139b   :  { %v2714_v60 = vmul.f32 %v2693_v32, %v7757_v35  ;;  %v2720_v18 = vsel %vm353_vm0, %v2712_v8, 0.0 }
0x139c   :  { %v2691_v30 = vpop.permute.xlu1 %2690  ;;  %2721 = vadd.xlane.f32.xlu0 %v2720_v18 }
0x139d   :  { %v2713_v46 = vmul.f32 %v2691_v30, %v7763_v58  ;;  %v2726_v10 = vsel %vm353_vm0, %v2714_v60, 0.0 }
0x139e   :  { %v2697_v19 = vpop.permute.xlu0 %2696 }
0x139f   :  { %v2716_v4 = vmul.f32 %v2697_v19, %v7770_v17  ;;  %v2723_v39 = vsel %vm353_vm0, %v2713_v46, 0.0 }
0x13a0   :  { %v2695_v41 = vpop.permute.xlu1 %2694  ;;  %2727 = vadd.xlane.f32.xlu0 %v2726_v10  ;;  %2724 = vadd.xlane.f32.xlu1 %v2723_v39 }
0x13a1   :  { %v2715_v63 = vmul.f32 %v2695_v41, %v7776_v29  ;;  %v2732_v40 = vsel %vm353_vm0, %v2716_v4, 0.0 }
0x13a2   :  { %v2701_v47 = vpop.permute.xlu0 %2700 }
0x13a3   :  { %v2718_v5 = vmul.f32 %v2701_v47, %v7784_v31  ;;  %v2729_v24 = vsel %vm353_vm0, %v2715_v63, 0.0 }
0x13a4   :  { %2730 = vadd.xlane.f32.xlu0 %v2729_v24  ;;  %v2699_v23 = vpop.permute.xlu1 %2698  ;;  %2733 = vadd.xlane.f32.xlu1 %v2732_v40 }
0x13a5   :  { %v2717_v6 = vmul.f32 %v2699_v23, %v7790_v53  ;;  %v2738_v27 = vsel %vm353_vm0, %v2718_v5, 0.0 }
0x13a7   :  { %v2735_v11 = vsel %vm353_vm0, %v2717_v6, 0.0 }
0x13a8   :  { %2736 = vadd.xlane.f32.xlu0 %v2735_v11  ;;  %2739 = vadd.xlane.f32.xlu1 %v2738_v27  ;;  %v2703_v16 = vpop.permute.xlu1 %2702 }
0x13a9   :  { %v2719_v21 = vmul.f32 %v2703_v16, %v7799_v43 }
0x13ab   :  { %v2741_v25 = vsel %vm353_vm0, %v2719_v21, 0.0 }
0x13ac   :  { %2742 = vadd.xlane.f32.xlu0 %v2741_v25 }
0x1429   :  { %v2722_v52 = vpop.xlane.xlu0 %2721 }
0x142a   :  { %v2755_v57 = vrot.slane %v2722_v52, %v6978_v12 }
0x142d   :  { %v2728_v51 = vpop.xlane.xlu0 %2727  ;;  %v2725_v54 = vpop.xlane.xlu1 %2724 }
0x142e   :  { %v2759_v56 = vrot.slane %v2725_v54, %v6978_v12  ;;  %v2763_v37 = vrot.slane %v2728_v51, %v6978_v12 }
0x1430   :  { %v2784_v7 = vsel %vm420_vm1, %v2759_v56, %v2755_v57 }
0x1431   :  { %v2731_v48 = vpop.xlane.xlu0 %2730  ;;  %v2734_v61 = vpop.xlane.xlu1 %2733  ;;  %v2785_v8 = vsel %vm422_vm2, %v2763_v37, %v2784_v7 }
0x1432   :  { %v2767_v38 = vrot.slane %v2731_v48, %v6978_v12  ;;  %v2771_v32 = vrot.slane %v2734_v61, %v6978_v12 }
0x1434   :  { %v2786_v60 = vsel %vm424_vm3, %v2767_v38, %v2785_v8 }
0x1435   :  { %v2737_v18 = vpop.xlane.xlu0 %2736  ;;  %v2740_v30 = vpop.xlane.xlu1 %2739  ;;  %v2787_v19 = vsel %vm426_vm4, %v2771_v32, %v2786_v60 }
0x1436   :  { %v2775_v46 = vrot.slane %v2737_v18, %v6978_v12  ;;  %v2779_v4 = vrot.slane %v2740_v30, %v6978_v12 }
0x1438   :  { %v2788_v10 = vsel %vm428_vm5, %v2775_v46, %v2787_v19 }
0x1439   :  { %v2743_v39 = vpop.xlane.xlu0 %2742  ;;  %v2789_v63 = vsel %vm430_vm6, %v2779_v4, %v2788_v10 }
0x143a   :  { %v2783_v41 = vrot.slane %v2743_v39, %v6978_v12 }
0x143c   :  { %v2790_v47 = vsel %vm432_vm7, %v2783_v41, %v2789_v63 }
0x143d   :  { %v2792_v5 = vsel %vm435_vm8, %v2790_v47, -inf }
0x143e   :  { %2793 = vmax.xlane.f32.xlu1 %v2792_v5 }
0x14cb   :  { %v2794_v24 = vpop.xlane.xlu1 %2793 }
0x14cc   :  { %v2799_v40 = vrot.slane %v2794_v24, %v6986_v15  ;;  %v2803_v23 = vrot.slane %v2794_v24, %v7074_v33  ;;  %v2807_v6 = vrot.slane %v2794_v24, %v7077_v34  ;;  %v2811_v11 = vrot.slane %v2794_v24, %v7080_v36 }
0x14cd   :  { %v2819_v27 = vrot.slane %v2794_v24, %v7090_v50  ;;  %v2815_v57 = vrot.slane %v2794_v24, %v7086_v44  ;;  %v2827_v38 = vrot.slane %v2794_v24, %v7098_v59  ;;  %v2823_v60 = vrot.slane %v2794_v24, %v7094_v55 }
0x14ce   :  { %v2836_v16 = vsub.f32 %v2722_v52, %v2799_v40  ;;  %v2837_v21 = vsub.f32 %v2725_v54, %v2803_v23  ;;  %v2839_v25 = vsub.f32 %v2731_v48, %v2811_v11  ;;  %v2838_v56 = vsub.f32 %v2728_v51, %v2807_v6 }
0x14cf   :  { %v2841_v8 = vsub.f32 %v2737_v18, %v2819_v27  ;;  %v2840_v46 = vsub.f32 %v2734_v61, %v2815_v57  ;;  %v2843_v4 = vsub.f32 %v2743_v39, %v2827_v38  ;;  %v2842_v54 = vsub.f32 %v2740_v30, %v2823_v60 }
0x14d0   :  { %v2844_v37 = vmul.f32 1.442695, %v2836_v16  ;;  %v2846_v7 = vmul.f32 1.442695, %v2837_v21  ;;  %v2850_v32 = vmul.f32 1.442695, %v2839_v25 }
0x14d1   :  { %v2848_v19 = vmul.f32 1.442695, %v2838_v56  ;;  %v2854_v52 = vmul.f32 1.442695, %v2841_v8  ;;  %v2852_v48 = vmul.f32 1.442695, %v2840_v46 }
0x14d2   :  { %6688 = vpow2.f32 %v2844_v37  ;;  %v2858_v51 = vmul.f32 1.442695, %v2843_v4  ;;  %v2856_v10 = vmul.f32 1.442695, %v2842_v54 }
0x14d3   :  { %6690 = vpow2.f32 %v2846_v7 }
0x14d4   :  { %6692 = vpow2.f32 %v2850_v32 }
0x14d5   :  { %6694 = vpow2.f32 %v2848_v19 }
0x14d6   :  { %6696 = vpow2.f32 %v2854_v52 }
0x14d7   :  { %6698 = vpow2.f32 %v2852_v48 }
0x14d8   :  { %6700 = vpow2.f32 %v2858_v51 }
0x14d9   :  { %6702 = vpow2.f32 %v2856_v10 }
0x14dc   :  { %v6689_v41 = vpop.eup %6688 }
0x14dd   :  { %v6691_v63 = vpop.eup %6690  ;;  %2869 = vperm.xlu0 %6614, %v6689_v41  }
0x14de   :  { %2872 = vperm.xlu1 %6613, %v6691_v63   ;;  %v6693_v18 = vpop.eup %6692 }
0x14df   :  { %v6695_v61 = vpop.eup %6694 }
0x14e0   :  { %v6697_v39 = vpop.eup %6696 }
0x14e1   :  { %2878 = vperm.xlu0 %6614, %v6693_v18   ;;  %v6699_v47 = vpop.eup %6698 }
0x14e2   :  { %2875 = vperm.xlu1 %6613, %v6695_v61   ;;  %v6701_v30 = vpop.eup %6700 }
0x14e3   :  { %v6703_v5 = vpop.eup %6702 }
0x14e5   :  { %2884 = vperm.xlu0 %6614, %v6697_v39  }
0x14e6   :  { %2881 = vperm.xlu1 %6613, %v6699_v47  }
0x14e9   :  { %2890 = vperm.xlu0 %6614, %v6701_v30  }
0x14ea   :  { %2887 = vperm.xlu1 %6613, %v6703_v5  }
0x155c   :  { %v2870_v24 = vpop.permute.xlu0 %2869 }
0x155d   :  { %v2873_v40 = vpop.permute.xlu1 %2872  ;;  %v2895_v6 = vrot.slane %v2870_v24, %v6978_v12 }
0x155e   :  { %v2899_v23 = vrot.slane %v2873_v40, %v6978_v12 }
0x1560   :  { %v2879_v11 = vpop.permute.xlu0 %2878  ;;  %v2924_v21 = vsel %vm420_vm1, %v2899_v23, %v2895_v6 }
0x1561   :  { %v2876_v27 = vpop.permute.xlu1 %2875  ;;  %v2907_v25 = vrot.slane %v2879_v11, %v6978_v12 }
0x1562   :  { %v2903_v16 = vrot.slane %v2876_v27, %v6978_v12 }
0x1564   :  { %v2925_v57 = vsel %vm422_vm2, %v2903_v16, %v2924_v21  ;;  %v2885_v56 = vpop.permute.xlu0 %2884 }
0x1565   :  { %v2882_v37 = vpop.permute.xlu1 %2881  ;;  %v2926_v38 = vsel %vm424_vm3, %v2907_v25, %v2925_v57  ;;  %v2915_v8 = vrot.slane %v2885_v56, %v6978_v12 }
0x1566   :  { %v2911_v7 = vrot.slane %v2882_v37, %v6978_v12 }
0x1568   :  { %v2927_v32 = vsel %vm426_vm4, %v2911_v7, %v2926_v38  ;;  %v2891_v60 = vpop.permute.xlu0 %2890 }
0x1569   :  { %v2888_v46 = vpop.permute.xlu1 %2887  ;;  %v2923_v19 = vrot.slane %v2891_v60, %v6978_v12  ;;  %v2928_v52 = vsel %vm428_vm5, %v2915_v8, %v2927_v32 }
0x156a   :  { %v2919_v4 = vrot.slane %v2888_v46, %v6978_v12 }
0x156c   :  { %v2929_v54 = vsel %vm430_vm6, %v2919_v4, %v2928_v52 }
0x156d   :  { %v2930_v48 = vsel %vm432_vm7, %v2923_v19, %v2929_v54 }
0x156e   :  { %v2932_v51 = vsel %vm435_vm8, %v2930_v48, 0.0 }
0x156f   :  { %2933 = vadd.xlane.f32.xlu1 %v2932_v51 }
0x15fc   :  { %v2934_v10 = vpop.xlane.xlu1 %2933 }
0x15fd   :  { %6704 = vrcp.f32 %v2934_v10 }
0x1607   :  { %v6705_v24 = vpop.eup %6704 }
0x1608   :  { %v2940_v40 = vrot.slane %v6705_v24, %v6986_v15  ;;  %v2944_v6 = vrot.slane %v6705_v24, %v7074_v33  ;;  %v2948_v27 = vrot.slane %v6705_v24, %v7077_v34  ;;  %v2952_v21 = vrot.slane %v6705_v24, %v7080_v36 }
0x1609   :  { %v2956_v57 = vrot.slane %v6705_v24, %v7086_v44  ;;  %v2960_v37 = vrot.slane %v6705_v24, %v7090_v50  ;;  %v2964_v7 = vrot.slane %v6705_v24, %v7094_v55  ;;  %v2968_v38 = vrot.slane %v6705_v24, %v7098_v59 }
0x160a   :  { %v2977_v23 = vmul.f32 %v6689_v41, %v2940_v40  ;;  %v2978_v11 = vmul.f32 %v6691_v63, %v2944_v6  ;;  %v2979_v16 = vmul.f32 %v6695_v61, %v2948_v27  ;;  %v2980_v25 = vmul.f32 %v6693_v18, %v2952_v21 }
0x160b   :  { %v2981_v56 = vmul.f32 %v6699_v47, %v2956_v57  ;;  %v2982_v41 = vmul.f32 %v6697_v39, %v2960_v37  ;;  %v2983_v63 = vmul.f32 %v6703_v5, %v2964_v7  ;;  %v2984_v61 = vmul.f32 %v6701_v30, %v2968_v38 }
0x160c   :  { %2987 = vperm.xlu0 %6614, %v2977_v23  }
0x1610   :  { %2992 = vperm.xlu0 %6614, %v2978_v11  }
0x1614   :  { %2997 = vperm.xlu0 %6614, %v2979_v16  }
0x1618   :  { %3002 = vperm.xlu0 %6614, %v2980_v25  }
0x161c   :  { %3007 = vperm.xlu0 %6614, %v2981_v56  }
0x1620   :  { %3012 = vperm.xlu0 %6614, %v2982_v41  }
0x1624   :  { %3017 = vperm.xlu0 %6614, %v2983_v63  }
0x1628   :  { %3022 = vperm.xlu0 %6614, %v2984_v61  }
0x162c   :  { %3277 = vrot.lane.b32.xlu0 %v7722_v9, %s6869_s3 }
0x168b   :  { %v2988_v18 = vpop.permute.xlu0 %2987 }
0x168c   :  { %v3025_v60 = vmul.f32 %v2988_v18, %v7752_v42 }
0x168e   :  { %v3033_v30 = vsel %vm353_vm0, %v3025_v60, 0.0 }
0x168f   :  { %v2993_v8 = vpop.permute.xlu0 %2992  ;;  %v3034_v51 = vrot.slane %v3033_v30, 4 }
0x1690   :  { %v3026_v47 = vmul.f32 %v2993_v8, %v7763_v58 }
0x1691   :  { %v3035_v23 = vadd.f32 %v3034_v51, %v3033_v30 }
0x1692   :  { %v3040_v46 = vsel %vm353_vm0, %v3026_v47, 0.0 }
0x1693   :  { %v2998_v32 = vpop.permute.xlu0 %2997  ;;  %v3041_v52 = vrot.slane %v3040_v46, 4  ;;  %v3036_v56 = vrot.slane %v3035_v23, 2 }
0x1694   :  { %v3027_v39 = vmul.f32 %v2998_v32, %v7757_v35 }
0x1695   :  { %v3042_v24 = vadd.f32 %v3041_v52, %v3040_v46  ;;  %v3037_v47 = vadd.f32 %v3036_v56, %v3035_v23 }
0x1696   :  { %v3047_v5 = vsel %vm353_vm0, %v3027_v39, 0.0 }
0x1697   :  { %v3003_v19 = vpop.permute.xlu0 %3002  ;;  %v3048_v54 = vrot.slane %v3047_v5, 4 }
0x1698   :  { %v3028_v4 = vmul.f32 %v3003_v19, %v7776_v29  ;;  %v3043_v29 = vrot.slane %v3042_v24, 2 }
0x1699   :  { %v3049_v35 = vadd.f32 %v3048_v54, %v3047_v5 }
0x169a   :  { %v3054_v48 = vsel %vm353_vm0, %v3028_v4, 0.0  ;;  %v3044_v38 = vadd.f32 %v3043_v29, %v3042_v24 }
0x169b   :  { %v3055_v58 = vrot.slane %v3054_v48, 4  ;;  %v3008_v10 = vpop.permute.xlu0 %3007  ;;  %v3050_v25 = vrot.slane %v3049_v35, 2 }
0x169c   :  { %v3029_v42 = vmul.f32 %v3008_v10, %v7770_v17  ;;  %v3045_v19 = vrot.slane %v3044_v38, 1 }
0x169d   :  { %v3056_v6 = vadd.f32 %v3055_v58, %v3054_v48  ;;  %v3051_v18 = vadd.f32 %v3050_v25, %v3049_v35 }
0x169e   :  { %v3061_v40 = vsel %vm353_vm0, %v3029_v42, 0.0  ;;  %v3046_v42 = vadd.f32 %v3045_v19, %v3044_v38 }
0x169f   :  { %v3062_v11 = vrot.slane %v3061_v40, 4  ;;  %v3013_v27 = vpop.permute.xlu0 %3012  ;;  %v3057_v37 = vrot.slane %v3056_v6, 2  ;;  %v3052_v52 = vrot.slane %v3051_v18, 1 }
0x16a0   :  { %v3030_v16 = vmul.f32 %v3013_v27, %v7790_v53 }
0x16a1   :  { %v3063_v21 = vadd.f32 %v3062_v11, %v3061_v40  ;;  %v3058_v32 = vadd.f32 %v3057_v37, %v3056_v6  ;;  %v3053_v23 = vadd.f32 %v3052_v52, %v3051_v18 }
0x16a2   :  { %v3068_v57 = vsel %vm353_vm0, %v3030_v16, 0.0 }
0x16a3   :  { %v3069_v41 = vrot.slane %v3068_v57, 4  ;;  %v3018_v7 = vpop.permute.xlu0 %3017  ;;  %v3064_v17 = vrot.slane %v3063_v21, 2  ;;  %v3059_v48 = vrot.slane %v3058_v32, 1 }
0x16a4   :  { %v3031_v63 = vmul.f32 %v3018_v7, %v7784_v31  ;;  %v3038_v31 = vrot.slane %v3037_v47, 1 }
0x16a5   :  { %v3070_v61 = vadd.f32 %v3069_v41, %v3068_v57  ;;  %v3065_v46 = vadd.f32 %v3064_v17, %v3063_v21  ;;  %v3060_v11 = vadd.f32 %v3059_v48, %v3058_v32 }
0x16a6   :  { %v3075_v8 = vsel %vm353_vm0, %v3031_v63, 0.0  ;;  %v3039_v6 = vadd.f32 %v3038_v31, %v3037_v47 }
0x16a7   :  { %v3071_v53 = vrot.slane %v3070_v61, 2  ;;  %v3076_v60 = vrot.slane %v3075_v8, 4  ;;  %v3023_v39 = vpop.permute.xlu0 %3022  ;;  %v3066_v10 = vrot.slane %v3065_v46, 1 }
0x16a8   :  { %v3032_v5 = vmul.f32 %v3023_v39, %v7799_v43  ;;  %v3102_v29 = vsel %vm420_vm1, %v3046_v42, %v3039_v6 }
0x16a9   :  { %v3072_v30 = vadd.f32 %v3071_v53, %v3070_v61  ;;  %v3077_v4 = vadd.f32 %v3076_v60, %v3075_v8  ;;  %v3067_v16 = vadd.f32 %v3066_v10, %v3065_v46  ;;  %v3103_v57 = vsel %vm422_vm2, %v3053_v23, %v3102_v29  ;;  %v3089_v8 = vld [vmem:[#allocation2 + $0x18] sm:$0xff] }
0x16aa   :  { %v3082_v54 = vsel %vm353_vm0, %v3032_v5, 0.0  ;;  %v3104_v37 = vsel %vm424_vm3, %v3060_v11, %v3103_v57 }
0x16ab   :  { %v3078_v51 = vrot.slane %v3077_v4, 2  ;;  %v3083_v58 = vrot.slane %v3082_v54, 4  ;;  %v3073_v24 = vrot.slane %v3072_v30, 1  ;;  %v3105_v7 = vsel %vm426_vm4, %v3067_v16, %v3104_v37  ;;  %v3278_v18 = vpop.permute.xlu0 %3277 }
0x16ad   :  { %v3079_v35 = vadd.f32 %v3078_v51, %v3077_v4  ;;  %v3084_v40 = vadd.f32 %v3083_v58, %v3082_v54  ;;  %v3074_v21 = vadd.f32 %v3073_v24, %v3072_v30 }
0x16af   :  { %v3080_v27 = vrot.slane %v3079_v35, 1  ;;  %v3085_v43 = vrot.slane %v3084_v40, 2  ;;  %v3106_v63 = vsel %vm428_vm5, %v3074_v21, %v3105_v7 }
0x16b1   :  { %v3086_v25 = vadd.f32 %v3085_v43, %v3084_v40  ;;  %v3081_v56 = vadd.f32 %v3080_v27, %v3079_v35 }
0x16b3   :  { %v3087_v41 = vrot.slane %v3086_v25, 1  ;;  %v3107_v38 = vsel %vm430_vm6, %v3081_v56, %v3106_v63 }
0x16b5   :  { %v3088_v17 = vadd.f32 %v3087_v41, %v3086_v25 }
0x16b7   :  { %v3108_v61 = vsel %vm432_vm7, %v3088_v17, %v3107_v38 }
0x16b8   :  { %6312 = vmatmul.mubr.msk.f32.vlgmr.msra.gmra.mrb[10].mxu0 %vm238_vm11, %v3108_v61 }
0x16b9   :  { %6535 = vmatpush3.bf16.msra.mxu0 %v7667_v45  ;;  %6333 = vmatprep.mubr.msk.f32.mxu0 %vm6866_vm9, %v6867_v20 }
0x16ba   :  { %6536 = vmatprep.subr.bf16.mxu0 %v6865_v22 }
0x16bd   :  { %6538 = vmatpush3.bf16.msra.mxu0 %v7679_v28 }
0x16be   :  { %6545 = vmatprep.subr.bf16.mxu0 %v6865_v22 }
0x16c0   :  { %6334 = vmatmul.mubr.msk.f32.vlgmr.msra.gmra.mrb[12].mxu0 %vm238_vm11, %v3278_v18 }
0x16c1   :  { %6355 = vmatprep.mubr.msk.f32.mxu0 %vm6866_vm9, %v6867_v20 }
0x178b   :  { %v3177_v47 = vpop.f32.mrb[10].mxu0 }
0x178c   :  { %v3181_v32 = vadd.f32 %v3177_v47, %v3089_v8  ;;  %v6313_v53 = vpop.f32.mrb[11].mxu0  ;;  %v7927_v47 = vld [vmem:[%s8627_s2] sm:$0x3f] }
0x178e   :  { %6323 = vmatmul.mubr.msk.f32.vlgmr.msra.gmra.mrb[22].mxu1 %vm238_vm11, %v3181_v32 }
0x178f   :  { %6344 = vmatprep.mubr.msk.f32.mxu1 %vm6866_vm9, %v6867_v20 }
0x1793   :  { %v3347_v45 = vpop.f32.mrb[12].mxu0 }
0x1794   :  { %v3348_v28 = vadd.f32 %v7707_v62, %v3347_v45  ;;  %v6335_v60 = vpop.f32.mrb[13].mxu0 }
0x1796   :  { %3359 = vrot.lane.b32.xlu1 %v3348_v28, %s6868_s20 }
0x1808   :  { %v3360_v31 = vpop.permute.xlu1 %3359 }
0x1861   :  { %v3262_v39 = vpop.f32.mrb[22].mxu1 }
0x1862   :  { %v3263_v46 = vadd.f32 %v7716_v26, %v3262_v39  ;;  %v6324_v5 = vpop.f32.mrb[23].mxu1  ;;  %v7939_v39 = vld [vmem:[%s8627_s2 + $0x10] sm:$0x3f] }
0x1863   :  { %v7944_v5 = vld [vmem:[%s8627_s2 + $0x20] sm:$0x3f] }
0x1864   :  { %v3351_v19 = vadd.f32 %v3348_v28, %v3263_v46  ;;  %v7933_v28 = vld [vmem:[%s8627_s2 + $0x8] sm:$0x3f] }
0x1866   :  { %v6026_v30 = vmul.f32 -1.442695, %v3351_v19 }
0x1868   :  { %6706 = vpow2.f32 %v6026_v30 }
0x1872   :  { %v6707_v4 = vpop.eup %6706 }
0x1873   :  { %v3355_v52 = vadd.f32 1.0, %v6707_v4 }
0x1875   :  { %6708 = vrcp.f32 %v3355_v52 }
0x187f   :  { %v6709_v54 = vpop.eup %6708 }
0x1880   :  { %v3362_v48 = vmul.f32 %v6709_v54, %v3360_v31  ;;  %v3369_v10 = vsub.f32 1.0, %v6709_v54  ;;  %v3375_v42 = vmul.f32 %v6709_v54, %v7722_v9  ;;  %v7953_v31 = vld [vmem:[%s8627_s2 + $0x18] sm:$0x3f] }
0x1882   :  { %3364 = vrot.lane.b32.xlu0 %v3362_v48, %s6868_s20 }
0x18f4   :  { %v3365_v51 = vpop.permute.xlu0 %3364 }
0x18f5   :  { %v3367_v62 = vadd.f32 %v3365_v51, %v3263_v46  ;;  %v7958_v51 = vld [vmem:[%s8627_s2 + $0x30] sm:$0x3f] }
0x18f7   :  { %6710 = vtanh.f32 %v3367_v62 }
0x1901   :  { %v6711_v58 = vpop.eup %6710 }
0x1902   :  { %3371 = vrot.lane.b32.xlu0 %v6711_v58, %s6869_s3 }
0x1974   :  { %v3372_v26 = vpop.permute.xlu0 %3371 }
0x1975   :  { %v3374_v24 = vmul.f32 %v3372_v26, %v3369_v10 }
0x1977   :  { %v7897_v35 = vadd.f32 %v3375_v42, %v3374_v24  ;;  %v7967_v24 = vld [vmem:[%s8627_s2 + $0x28] sm:$0x3f] }
0x1979   :  { %v3399_v40 = vrot.slane %v7897_v35, %v6981_v13  ;;  %v3392_v23 = vcombine.high %v7897_v35, %v7897_v35 }
0x197b   :  { %v3415_v6 = vrot.slane %v3399_v40, %v6981_v13  ;;  %v3407_v11 = vcombine.high %v3399_v40, %v3399_v40  ;;  %v3406_v27 = vrot.slane %v3392_v23, %v6981_v13 }
0x197d   :  { %v3444_v43 = vrot.slane %v3415_v6, %v6986_v15  ;;  %v3437_v16 = vcombine.high %v3415_v6, %v3415_v6  ;;  %v3429_v29 = vrot.slane %v3407_v11, %v6981_v13  ;;  %v3422_v25 = vrot.slane %v3406_v27, %v6981_v13 }
0x197e   :  { %v3408_v37 = vcombine.high %v3406_v27, %v3406_v27  ;;  %v7975_v27 = vld [vmem:[%s8627_s2 + $0x38] sm:$0x3f] }
0x197f   :  { %3473 = vrot.lane.b32.xlu0 %v3444_v43, %s6869_s3  ;;  %v3452_v21 = vrot.slane %v3437_v16, %v6986_v15  ;;  %v3448_v57 = vrot.slane %v3429_v29, %v6986_v15  ;;  %v3439_v56 = vcombine.high %v3429_v29, %v3429_v29  ;;  %v3460_v41 = vrot.slane %v3422_v25, %v6986_v15 }
0x1980   :  { %v3438_v7 = vcombine.high %v3422_v25, %v3422_v25  ;;  %v3436_v63 = vrot.slane %v3408_v37, %v6981_v13 }
0x1981   :  { %3477 = vrot.lane.b32.xlu1 %v3452_v21, %s6869_s3  ;;  %v3456_v17 = vrot.slane %v3439_v56, %v6986_v15 }
0x1982   :  { %v3468_v38 = vrot.slane %v3438_v7, %v6986_v15  ;;  %v3464_v61 = vrot.slane %v3436_v63, %v6986_v15  ;;  %v3440_v18 = vcombine.high %v3436_v63, %v3436_v63 }
0x1983   :  { %3475 = vrot.lane.b32.xlu0 %v3448_v57, %s6869_s3 }
0x1984   :  { %v3472_v8 = vrot.slane %v3440_v18, %v6986_v15 }
0x1985   :  { %3481 = vrot.lane.b32.xlu1 %v3460_v41, %s6869_s3 }
0x1987   :  { %3479 = vrot.lane.b32.xlu0 %v3456_v17, %s6869_s3 }
0x1989   :  { %3485 = vrot.lane.b32.xlu1 %v3468_v38, %s6869_s3 }
0x198b   :  { %3483 = vrot.lane.b32.xlu0 %v3464_v61, %s6869_s3 }
0x198f   :  { %3487 = vrot.lane.b32.xlu0 %v3472_v8, %s6869_s3 }
0x19f1   :  { %v3474_v32 = vpop.permute.xlu0 %3473 }
0x19f2   :  { %v3497_v53 = vmul.f32 %v3474_v32, %v7927_v47 }
0x19f3   :  { %v3478_v45 = vpop.permute.xlu1 %3477 }
0x19f4   :  { %v3505_v60 = vsel %vm353_vm0, %v3497_v53, 0.0  ;;  %v3499_v4 = vmul.f32 %v3478_v45, %v7939_v39 }
0x19f5   :  { %v3476_v46 = vpop.permute.xlu0 %3475  ;;  %3506 = vadd.xlane.f32.xlu1 %v3505_v60 }
0x19f6   :  { %v3498_v19 = vmul.f32 %v3476_v46, %v7933_v28  ;;  %v3511_v42 = vsel %vm353_vm0, %v3499_v4, 0.0 }
0x19f7   :  { %v3482_v30 = vpop.permute.xlu1 %3481 }
0x19f8   :  { %v3501_v52 = vmul.f32 %v3482_v30, %v7944_v5  ;;  %v3508_v54 = vsel %vm353_vm0, %v3498_v19, 0.0 }
0x19f9   :  { %v3480_v48 = vpop.permute.xlu0 %3479  ;;  %3509 = vadd.xlane.f32.xlu0 %v3508_v54 }
0x19fa   :  { %v3517_v62 = vsel %vm353_vm0, %v3501_v52, 0.0  ;;  %v3500_v10 = vmul.f32 %v3480_v48, %v7953_v31 }
0x19fb   :  { %3518 = vadd.xlane.f32.xlu1 %v3517_v62  ;;  %v3486_v58 = vpop.permute.xlu1 %3485 }
0x19fc   :  { %v3503_v26 = vmul.f32 %v3486_v58, %v7958_v51  ;;  %v3514_v11 = vsel %vm353_vm0, %v3500_v10, 0.0 }
0x19fd   :  { %v3484_v40 = vpop.permute.xlu0 %3483  ;;  %3512 = vadd.xlane.f32.xlu0 %v3511_v42 }
0x19fe   :  { %v3523_v23 = vsel %vm353_vm0, %v3503_v26, 0.0  ;;  %v3502_v6 = vmul.f32 %v3484_v40, %v7967_v24 }
0x19ff   :  { %3524 = vadd.xlane.f32.xlu1 %v3523_v23 }
0x1a00   :  { %v3520_v29 = vsel %vm353_vm0, %v3502_v6, 0.0 }
0x1a01   :  { %3515 = vadd.xlane.f32.xlu0 %v3514_v11  ;;  %v3488_v43 = vpop.permute.xlu0 %3487 }
0x1a02   :  { %v3504_v16 = vmul.f32 %v3488_v43, %v7975_v27 }
0x1a04   :  { %v3526_v21 = vsel %vm353_vm0, %v3504_v16, 0.0 }
0x1a05   :  { %3521 = vadd.xlane.f32.xlu0 %v3520_v29 }
0x1a09   :  { %3527 = vadd.xlane.f32.xlu0 %v3526_v21 }
0x1a82   :  { %v3507_v57 = vpop.xlane.xlu1 %3506 }
0x1a83   :  { %v3540_v7 = vrot.slane %v3507_v57, %v6978_v12 }
0x1a86   :  { %v3510_v25 = vpop.xlane.xlu0 %3509 }
0x1a87   :  { %v3544_v37 = vrot.slane %v3510_v25, %v6978_v12 }
0x1a88   :  { %v3519_v17 = vpop.xlane.xlu1 %3518 }
0x1a89   :  { %v3569_v38 = vsel %vm420_vm1, %v3544_v37, %v3540_v7  ;;  %v3556_v32 = vrot.slane %v3519_v17, %v6978_v12 }
0x1a8a   :  { %v3513_v56 = vpop.xlane.xlu0 %3512 }
0x1a8b   :  { %v3548_v41 = vrot.slane %v3513_v56, %v6978_v12 }
0x1a8c   :  { %v3525_v45 = vpop.xlane.xlu1 %3524 }
0x1a8d   :  { %v3570_v18 = vsel %vm422_vm2, %v3548_v41, %v3569_v38  ;;  %v3564_v30 = vrot.slane %v3525_v45, %v6978_v12 }
0x1a8e   :  { %v3516_v63 = vpop.xlane.xlu0 %3515 }
0x1a8f   :  { %v3552_v61 = vrot.slane %v3516_v63, %v6978_v12 }
0x1a91   :  { %v3571_v8 = vsel %vm424_vm3, %v3552_v61, %v3570_v18 }
0x1a92   :  { %v3522_v53 = vpop.xlane.xlu0 %3521  ;;  %v3572_v46 = vsel %vm426_vm4, %v3556_v32, %v3571_v8 }
0x1a93   :  { %v3560_v60 = vrot.slane %v3522_v53, %v6978_v12 }
0x1a95   :  { %v3573_v19 = vsel %vm428_vm5, %v3560_v60, %v3572_v46 }
0x1a96   :  { %v3528_v4 = vpop.xlane.xlu0 %3527  ;;  %v3574_v54 = vsel %vm430_vm6, %v3564_v30, %v3573_v19 }
0x1a97   :  { %v3568_v52 = vrot.slane %v3528_v4, %v6978_v12 }
0x1a99   :  { %v3575_v48 = vsel %vm432_vm7, %v3568_v52, %v3574_v54 }
0x1a9a   :  { %v3577_v62 = vsel %vm435_vm8, %v3575_v48, -inf }
0x1a9b   :  { %3578 = vmax.xlane.f32.xlu1 %v3577_v62 }
0x1b28   :  { %v3579_v58 = vpop.xlane.xlu1 %3578 }
0x1b29   :  { %v3584_v10 = vrot.slane %v3579_v58, %v6986_v15  ;;  %v3588_v26 = vrot.slane %v3579_v58, %v7074_v33  ;;  %v3592_v42 = vrot.slane %v3579_v58, %v7077_v34  ;;  %v3600_v40 = vrot.slane %v3579_v58, %v7086_v44 }
0x1b2a   :  { %v3608_v23 = vrot.slane %v3579_v58, %v7094_v55  ;;  %v3596_v43 = vrot.slane %v3579_v58, %v7080_v36  ;;  %v3604_v38 = vrot.slane %v3579_v58, %v7090_v50  ;;  %v3612_v32 = vrot.slane %v3579_v58, %v7098_v59 }
0x1b2b   :  { %v3621_v6 = vsub.f32 %v3507_v57, %v3584_v10  ;;  %v3622_v11 = vsub.f32 %v3510_v25, %v3588_v26  ;;  %v3623_v16 = vsub.f32 %v3513_v56, %v3592_v42  ;;  %v3625_v29 = vsub.f32 %v3519_v17, %v3600_v40 }
0x1b2c   :  { %v3627_v41 = vsub.f32 %v3525_v45, %v3608_v23  ;;  %v3624_v61 = vsub.f32 %v3516_v63, %v3596_v43  ;;  %v3626_v57 = vsub.f32 %v3522_v53, %v3604_v38  ;;  %v3628_v56 = vsub.f32 %v3528_v4, %v3612_v32 }
0x1b2d   :  { %v3629_v21 = vmul.f32 1.442695, %v3621_v6  ;;  %v3631_v37 = vmul.f32 1.442695, %v3622_v11  ;;  %v3637_v7 = vmul.f32 1.442695, %v3625_v29 }
0x1b2e   :  { %v3633_v18 = vmul.f32 1.442695, %v3623_v16  ;;  %v3641_v8 = vmul.f32 1.442695, %v3627_v41  ;;  %v3635_v25 = vmul.f32 1.442695, %v3624_v61 }
0x1b2f   :  { %6712 = vpow2.f32 %v3629_v21  ;;  %v3639_v17 = vmul.f32 1.442695, %v3626_v57  ;;  %v3643_v46 = vmul.f32 1.442695, %v3628_v56 }
0x1b30   :  { %6714 = vpow2.f32 %v3631_v37 }
0x1b31   :  { %6716 = vpow2.f32 %v3637_v7 }
0x1b32   :  { %6718 = vpow2.f32 %v3633_v18 }
0x1b33   :  { %6720 = vpow2.f32 %v3641_v8 }
0x1b34   :  { %6722 = vpow2.f32 %v3635_v25 }
0x1b35   :  { %6724 = vpow2.f32 %v3639_v17 }
0x1b36   :  { %6726 = vpow2.f32 %v3643_v46 }
0x1b39   :  { %v6713_v60 = vpop.eup %6712 }
0x1b3a   :  { %v6715_v45 = vpop.eup %6714  ;;  %3654 = vperm.xlu0 %6614, %v6713_v60  }
0x1b3b   :  { %3657 = vperm.xlu1 %6613, %v6715_v45   ;;  %v6717_v63 = vpop.eup %6716 }
0x1b3c   :  { %v6719_v19 = vpop.eup %6718 }
0x1b3d   :  { %v6721_v30 = vpop.eup %6720 }
0x1b3e   :  { %3666 = vperm.xlu0 %6614, %v6717_v63   ;;  %v6723_v52 = vpop.eup %6722 }
0x1b3f   :  { %3660 = vperm.xlu1 %6613, %v6719_v19   ;;  %v6725_v53 = vpop.eup %6724 }
0x1b40   :  { %v6727_v4 = vpop.eup %6726 }
0x1b42   :  { %3672 = vperm.xlu0 %6614, %v6721_v30  }
0x1b43   :  { %3663 = vperm.xlu1 %6613, %v6723_v52  }
0x1b47   :  { %3669 = vperm.xlu1 %6613, %v6725_v53  }
0x1b4b   :  { %3675 = vperm.xlu1 %6613, %v6727_v4  }
0x1bb9   :  { %v3655_v48 = vpop.permute.xlu0 %3654 }
0x1bba   :  { %v3658_v54 = vpop.permute.xlu1 %3657  ;;  %v3680_v10 = vrot.slane %v3655_v48, %v6978_v12 }
0x1bbb   :  { %v3684_v58 = vrot.slane %v3658_v54, %v6978_v12 }
0x1bbd   :  { %v3667_v42 = vpop.permute.xlu0 %3666  ;;  %v3709_v23 = vsel %vm420_vm1, %v3684_v58, %v3680_v10 }
0x1bbe   :  { %v3661_v62 = vpop.permute.xlu1 %3660  ;;  %v3696_v16 = vrot.slane %v3667_v42, %v6978_v12 }
0x1bbf   :  { %v3688_v26 = vrot.slane %v3661_v62, %v6978_v12 }
0x1bc1   :  { %v3710_v11 = vsel %vm422_vm2, %v3688_v26, %v3709_v23  ;;  %v3673_v21 = vpop.permute.xlu0 %3672 }
0x1bc2   :  { %v3664_v40 = vpop.permute.xlu1 %3663  ;;  %v3704_v38 = vrot.slane %v3673_v21, %v6978_v12 }
0x1bc3   :  { %v3692_v6 = vrot.slane %v3664_v40, %v6978_v12 }
0x1bc5   :  { %v3711_v43 = vsel %vm424_vm3, %v3692_v6, %v3710_v11 }
0x1bc6   :  { %v3670_v29 = vpop.permute.xlu1 %3669  ;;  %v3712_v41 = vsel %vm426_vm4, %v3696_v16, %v3711_v43  ;;  %v3967_v16 = vld [vmem:[%s8631_s6] sm:$0xff] }
0x1bc7   :  { %v3700_v37 = vrot.slane %v3670_v29, %v6978_v12  ;;  %v3968_v29 = vld [vmem:[%s8631_s6 + $0x8] sm:$0xff] }
0x1bc8   :  { %v8056_v21 = vpack.c.bf16 %v3968_v29, %v3967_v16 }
0x1bc9   :  { %v3713_v7 = vsel %vm428_vm5, %v3700_v37, %v3712_v41 }
0x1bca   :  { %v3676_v61 = vpop.permute.xlu1 %3675  ;;  %v3714_v8 = vsel %vm430_vm6, %v3704_v38, %v3713_v7  ;;  %6547 = vmatpush3.bf16.msra.mxu0 %v8056_v21 }
0x1bcb   :  { %v3708_v18 = vrot.slane %v3676_v61, %v6978_v12  ;;  %6548 = vmatprep.subr.bf16.mxu0 %v6865_v22 }
0x1bcd   :  { %v3715_v32 = vsel %vm432_vm7, %v3708_v18, %v3714_v8 }
0x1bce   :  { %v3717_v57 = vsel %vm435_vm8, %v3715_v32, 0.0 }
0x1bcf   :  { %3718 = vadd.xlane.f32.xlu0 %v3717_v57 }
0x1c5c   :  { %v3719_v25 = vpop.xlane.xlu0 %3718 }
0x1c5d   :  { %6728 = vrcp.f32 %v3719_v25 }
0x1c67   :  { %v6729_v56 = vpop.eup %6728 }
0x1c68   :  { %v3753_v17 = vrot.slane %v6729_v56, %v7098_v59  ;;  %v3725_v46 = vrot.slane %v6729_v56, %v6986_v15  ;;  %v3729_v62 = vrot.slane %v6729_v56, %v7074_v33  ;;  %v3733_v10 = vrot.slane %v6729_v56, %v7077_v34 }
0x1c69   :  { %v3737_v42 = vrot.slane %v6729_v56, %v7080_v36  ;;  %v3741_v23 = vrot.slane %v6729_v56, %v7086_v44  ;;  %v3749_v11 = vrot.slane %v6729_v56, %v7094_v55 }
0x1c6a   :  { %v3769_v54 = vmul.f32 %v6727_v4, %v3753_v17  ;;  %v3762_v48 = vmul.f32 %v6713_v60, %v3725_v46  ;;  %v3763_v58 = vmul.f32 %v6715_v45, %v3729_v62  ;;  %v3764_v26 = vmul.f32 %v6719_v19, %v3733_v10  ;;  %v3875_v19 = vld [vmem:[%s8629_s4] sm:$0xff] }
0x1c6b   :  { %v3765_v40 = vmul.f32 %v6723_v52, %v3737_v42  ;;  %v3766_v6 = vmul.f32 %v6717_v63, %v3741_v23  ;;  %v3745_v4 = vrot.slane %v6729_v56, %v7090_v50  ;;  %v3768_v45 = vmul.f32 %v6721_v30, %v3749_v11  ;;  %v3876_v63 = vld [vmem:[%s8629_s4 + $0x8] sm:$0xff]  ;;  %v3878_v30 = vld [vmem:[%s8629_s4 + $0x18] sm:$0xff] }
0x1c6c   :  { %3807 = vperm.xlu0 %6614, %v3769_v54   ;;  %3772 = vperm.xlu1 %6613, %v3762_v48   ;;  %v8036_v52 = vpack.c.bf16 %v3876_v63, %v3875_v19 }
0x1c6d   :  { %v3767_v60 = vmul.f32 %v6725_v53, %v3745_v4  ;;  %v3877_v53 = vld [vmem:[%s8629_s4 + $0x10] sm:$0xff] }
0x1c6e   :  { %6541 = vmatpush3.bf16.msra.mxu1 %v8036_v52  ;;  %v8045_v43 = vpack.c.bf16 %v3878_v30, %v3877_v53 }
0x1c6f   :  { %6542 = vmatprep.subr.bf16.mxu1 %v6865_v22 }
0x1c70   :  { %3777 = vperm.xlu1 %6613, %v3763_v58  }
0x1c72   :  { %6544 = vmatpush3.bf16.msra.mxu1 %v8045_v43 }
0x1c73   :  { %6551 = vmatprep.subr.bf16.mxu1 %v6865_v22 }
0x1c74   :  { %3782 = vperm.xlu1 %6613, %v3764_v26  }
0x1c78   :  { %3787 = vperm.xlu1 %6613, %v3765_v40  }
0x1c7c   :  { %3792 = vperm.xlu1 %6613, %v3766_v6  }
0x1c80   :  { %3797 = vperm.xlu1 %6613, %v3767_v60  }
0x1c84   :  { %3802 = vperm.xlu1 %6613, %v3768_v45  }
0x1c88   :  { %4062 = vrot.lane.b32.xlu1 %v7897_v35, %s6869_s3 }
0x1ceb   :  { %v3773_v37 = vpop.permute.xlu1 %3772  ;;  %v3808_v8 = vpop.permute.xlu0 %3807 }
0x1cec   :  { %v3810_v38 = vmul.f32 %v3773_v37, %v7927_v47  ;;  %v3817_v17 = vmul.f32 %v3808_v8, %v7975_v27 }
0x1cee   :  { %v3818_v57 = vsel %vm353_vm0, %v3810_v38, 0.0  ;;  %v3867_v58 = vsel %vm353_vm0, %v3817_v17, 0.0 }
0x1cef   :  { %v3778_v41 = vpop.permute.xlu1 %3777  ;;  %v3819_v48 = vrot.slane %v3818_v57, 4  ;;  %v3868_v6 = vrot.slane %v3867_v58, 4 }
0x1cf0   :  { %v3811_v7 = vmul.f32 %v3778_v41, %v7933_v28 }
0x1cf1   :  { %v3820_v42 = vadd.f32 %v3819_v48, %v3818_v57  ;;  %v3869_v30 = vadd.f32 %v3868_v6, %v3867_v58 }
0x1cf2   :  { %v3825_v61 = vsel %vm353_vm0, %v3811_v7, 0.0 }
0x1cf3   :  { %v3783_v18 = vpop.permute.xlu1 %3782  ;;  %v3826_v25 = vrot.slane %v3825_v61, 4  ;;  %v3870_v57 = vrot.slane %v3869_v30, 2 }
0x1cf4   :  { %v3812_v32 = vmul.f32 %v3783_v18, %v7939_v39 }
0x1cf5   :  { %v3827_v62 = vadd.f32 %v3826_v25, %v3825_v61  ;;  %v3871_v58 = vadd.f32 %v3870_v57, %v3869_v30 }
0x1cf6   :  { %v3832_v56 = vsel %vm353_vm0, %v3812_v32, 0.0 }
0x1cf7   :  { %v3833_v46 = vrot.slane %v3832_v56, 4  ;;  %v3788_v54 = vpop.permute.xlu1 %3787  ;;  %v3828_v4 = vrot.slane %v3827_v62, 2 }
0x1cf8   :  { %v3813_v28 = vmul.f32 %v3788_v54, %v7953_v31  ;;  %v3821_v31 = vrot.slane %v3820_v42, 2 }
0x1cf9   :  { %v3834_v10 = vadd.f32 %v3833_v46, %v3832_v56  ;;  %v3829_v16 = vadd.f32 %v3828_v4, %v3827_v62  ;;  %v3872_v4 = vrot.slane %v3871_v58, 1 }
0x1cfa   :  { %v3839_v47 = vsel %vm353_vm0, %v3813_v28, 0.0  ;;  %v3822_v38 = vadd.f32 %v3821_v31, %v3820_v42  ;;  %v4051_v31 = vld [vmem:[%s8633_s8] sm:$0xff] }
0x1cfb   :  { %v3840_v26 = vrot.slane %v3839_v47, 4  ;;  %v3793_v39 = vpop.permute.xlu1 %3792  ;;  %v3835_v60 = vrot.slane %v3834_v10, 2  ;;  %v3830_v25 = vrot.slane %v3829_v16, 1 }
0x1cfc   :  { %v3814_v40 = vmul.f32 %v3793_v39, %v7944_v5  ;;  %v3823_v54 = vrot.slane %v3822_v38, 1 }
0x1cfd   :  { %v3841_v23 = vadd.f32 %v3840_v26, %v3839_v47  ;;  %v3836_v37 = vadd.f32 %v3835_v60, %v3834_v10  ;;  %v3831_v10 = vadd.f32 %v3830_v25, %v3829_v16  ;;  %v3873_v16 = vadd.f32 %v3872_v4, %v3871_v58 }
0x1cfe   :  { %v3846_v27 = vsel %vm353_vm0, %v3814_v40, 0.0 }
0x1cff   :  { %v3847_v11 = vrot.slane %v3846_v27, 4  ;;  %v3798_v45 = vpop.permute.xlu1 %3797  ;;  %v3842_v19 = vrot.slane %v3841_v23, 2 }
0x1d00   :  { %v3815_v63 = vmul.f32 %v3798_v45, %v7967_v24  ;;  %v3837_v24 = vrot.slane %v3836_v37, 1 }
0x1d01   :  { %v3848_v53 = vadd.f32 %v3847_v11, %v3846_v27  ;;  %v3843_v61 = vadd.f32 %v3842_v19, %v3841_v23  ;;  %v4052_v19 = vld [vmem:[%s8633_s8 + $0x8] sm:$0xff] }
0x1d02   :  { %v3853_v29 = vsel %vm353_vm0, %v3815_v63, 0.0  ;;  %v3838_v26 = vadd.f32 %v3837_v24, %v3836_v37  ;;  %v8087_v37 = vpack.c.bf16 %v4052_v19, %v4051_v31 }
0x1d03   :  { %v3849_v41 = vrot.slane %v3848_v53, 2  ;;  %v3854_v5 = vrot.slane %v3853_v29, 4  ;;  %v3803_v7 = vpop.permute.xlu1 %3802  ;;  %v3844_v48 = vrot.slane %v3843_v61, 1 }
0x1d04   :  { %v3816_v18 = vmul.f32 %v3803_v7, %v7958_v51  ;;  %v3824_v51 = vadd.f32 %v3823_v54, %v3822_v38  ;;  %v4054_v7 = vld [vmem:[%s8633_s8 + $0x18] sm:$0xff] }
0x1d05   :  { %v3850_v8 = vadd.f32 %v3849_v41, %v3848_v53  ;;  %v3855_v32 = vadd.f32 %v3854_v5, %v3853_v29  ;;  %v3845_v40 = vadd.f32 %v3844_v48, %v3843_v61  ;;  %v4053_v5 = vld [vmem:[%s8633_s8 + $0x10] sm:$0xff] }
0x1d06   :  { %v3860_v56 = vsel %vm353_vm0, %v3816_v18, 0.0  ;;  %v3887_v27 = vsel %vm420_vm1, %v3831_v10, %v3824_v51  ;;  %v8099_v61 = vpack.c.bf16 %v4054_v7, %v4053_v5 }
0x1d07   :  { %v3856_v17 = vrot.slane %v3855_v32, 2  ;;  %v3861_v46 = vrot.slane %v3860_v56, 4  ;;  %v3851_v28 = vrot.slane %v3850_v8, 1  ;;  %v3888_v11 = vsel %vm422_vm2, %v3838_v26, %v3887_v27  ;;  %v4063_v18 = vpop.permute.xlu1 %4062 }
0x1d08   :  { %v3889_v63 = vsel %vm424_vm3, %v3845_v40, %v3888_v11 }
0x1d09   :  { %v3857_v62 = vadd.f32 %v3856_v17, %v3855_v32  ;;  %v3862_v47 = vadd.f32 %v3861_v46, %v3860_v56  ;;  %v3852_v23 = vadd.f32 %v3851_v28, %v3850_v8  ;;  %v3969_v8 = vld [vmem:[%s8631_s6 + $0x10] sm:$0xff]  ;;  %v3970_v32 = vld [vmem:[%s8631_s6 + $0x18] sm:$0xff]  ;;  %v8127_v17 = vld [vmem:[%s8634_s9] ss:$0 sm:$0xff] }
0x1d0a   :  { %v6549_v57 = vpack.c.bf16 %v3970_v32, %v3969_v8 }
0x1d0b   :  { %v3858_v39 = vrot.slane %v3857_v62, 1  ;;  %v3863_v42 = vrot.slane %v3862_v47, 2  ;;  %v3890_v53 = vsel %vm426_vm4, %v3852_v23, %v3889_v63 }
0x1d0c   :  { %6550 = vmatpush3.bf16.msra.mxu0 %v6549_v57 }
0x1d0d   :  { %v3864_v6 = vadd.f32 %v3863_v42, %v3862_v47  ;;  %v3859_v60 = vadd.f32 %v3858_v39, %v3857_v62  ;;  %6557 = vmatprep.subr.bf16.mxu0 %v6865_v22 }
0x1d0f   :  { %v3865_v45 = vrot.slane %v3864_v6, 1  ;;  %v3891_v29 = vsel %vm428_vm5, %v3859_v60, %v3890_v53 }
0x1d11   :  { %v3866_v30 = vadd.f32 %v3865_v45, %v3864_v6 }
0x1d13   :  { %v3892_v41 = vsel %vm430_vm6, %v3866_v30, %v3891_v29 }
0x1d14   :  { %v3893_v38 = vsel %vm432_vm7, %v3873_v16, %v3892_v41 }
0x1d15   :  { %6345 = vmatmul.mubr.msk.f32.vlgmr.msra.gmra.mrb[24].mxu1 %vm238_vm11, %v3893_v38 }
0x1d16   :  { %6553 = vmatpush3.bf16.msra.mxu1 %v8087_v37  ;;  %6366 = vmatprep.mubr.msk.f32.mxu1 %vm6866_vm9, %v6867_v20 }
0x1d17   :  { %6554 = vmatprep.subr.bf16.mxu1 %v6865_v22 }
0x1d1a   :  { %6556 = vmatpush3.bf16.msra.mxu1 %v8099_v61 }
0x1d1b   :  { %6563 = vmatprep.subr.bf16.mxu1 %v6865_v22 }
0x1d1d   :  { %6367 = vmatmul.mubr.msk.f32.vlgmr.msra.gmra.mrb[26].mxu1 %vm238_vm11, %v4063_v18 }
0x1d1e   :  { %6565 = vmatpush3.bf16.msra.mxu1 %v8056_v21  ;;  %6388 = vmatprep.mubr.msk.f32.mxu1 %vm6866_vm9, %v6867_v20  ;;  %v3874_v21 = vld [vmem:[#allocation2 + $0x20] sm:$0xff] }
0x1d1f   :  { %6566 = vmatprep.subr.bf16.mxu1 %v6865_v22 }
0x1d22   :  { %6568 = vmatpush3.bf16.msra.mxu1 %v6549_v57 }
0x1d23   :  { %6575 = vmatprep.subr.bf16.mxu1 %v6865_v22 }
0x1de8   :  { %v3962_v25 = vpop.f32.mrb[24].mxu1 }
0x1de9   :  { %v3966_v56 = vadd.f32 %v3962_v25, %v3874_v21  ;;  %v6346_v24 = vpop.f32.mrb[25].mxu1 }
0x1deb   :  { %6356 = vmatmul.mubr.msk.f32.vlgmr.msra.gmra.mrb[14].mxu0 %vm238_vm11, %v3966_v56 }
0x1dec   :  { %6559 = vmatpush3.bf16.msra.mxu0 %v8036_v52  ;;  %6377 = vmatprep.mubr.msk.f32.mxu0 %vm6866_vm9, %v6867_v20  ;;  %v8136_v52 = vld [vmem:[%s8632_s7] ss:$0 sm:$0xff] }
0x1ded   :  { %6560 = vmatprep.subr.bf16.mxu0 %v6865_v22 }
0x1df0   :  { %v4132_v46 = vpop.f32.mrb[26].mxu1  ;;  %6562 = vmatpush3.bf16.msra.mxu0 %v8045_v43 }
0x1df1   :  { %v4133_v54 = vadd.f32 %v8127_v17, %v4132_v46  ;;  %v6368_v48 = vpop.f32.mrb[27].mxu1  ;;  %6569 = vmatprep.subr.bf16.mxu0 %v6865_v22 }
0x1df2   :  { %v8172_v48 = vld [vmem:[%s8627_s2] sm:$0x3f] }
0x1df3   :  { %4144 = vrot.lane.b32.xlu1 %v4133_v54, %s6868_s20 }
0x1e65   :  { %v4145_v42 = vpop.permute.xlu1 %4144 }
0x1ebe   :  { %v4047_v28 = vpop.f32.mrb[14].mxu0 }
0x1ebf   :  { %v4048_v62 = vadd.f32 %v8136_v52, %v4047_v28  ;;  %v6357_v47 = vpop.f32.mrb[15].mxu0 }
0x1ec1   :  { %v4136_v58 = vadd.f32 %v4133_v54, %v4048_v62 }
0x1ec3   :  { %v6032_v10 = vmul.f32 -1.442695, %v4136_v58 }
0x1ec5   :  { %6730 = vpow2.f32 %v6032_v10  ;;  %v8183_v10 = vld [vmem:[%s8627_s2 + $0x8] sm:$0x3f] }
0x1ecf   :  { %v6731_v43 = vpop.eup %6730 }
0x1ed0   :  { %v4140_v26 = vadd.f32 1.0, %v6731_v43 }
0x1ed2   :  { %6732 = vrcp.f32 %v4140_v26 }
0x1edc   :  { %v6733_v39 = vpop.eup %6732 }
0x1edd   :  { %v4147_v51 = vmul.f32 %v6733_v39, %v4145_v42  ;;  %v4154_v4 = vsub.f32 1.0, %v6733_v39  ;;  %v4160_v60 = vmul.f32 %v6733_v39, %v7897_v35  ;;  %v8190_v42 = vld [vmem:[%s8627_s2 + $0x20] sm:$0x3f] }
0x1edf   :  { %4149 = vrot.lane.b32.xlu1 %v4147_v51, %s6868_s20 }
0x1f51   :  { %v4150_v40 = vpop.permute.xlu1 %4149 }
0x1f52   :  { %v4152_v23 = vadd.f32 %v4150_v40, %v4048_v62  ;;  %v8177_v62 = vld [vmem:[%s8627_s2 + $0x10] sm:$0x3f] }
0x1f54   :  { %6734 = vtanh.f32 %v4152_v23  ;;  %v8196_v23 = vld [vmem:[%s8627_s2 + $0x18] sm:$0x3f] }
0x1f5e   :  { %v6735_v6 = vpop.eup %6734 }
0x1f5f   :  { %4156 = vrot.lane.b32.xlu1 %v6735_v6, %s6869_s3 }
0x1fd1   :  { %v4157_v27 = vpop.permute.xlu1 %4156 }
0x1fd2   :  { %v4159_v11 = vmul.f32 %v4157_v27, %v4154_v4 }
0x1fd4   :  { %v8142_v45 = vadd.f32 %v4160_v60, %v4159_v11  ;;  %v8204_v11 = vld [vmem:[%s8627_s2 + $0x30] sm:$0x3f] }
0x1fd6   :  { %v4184_v31 = vrot.slane %v8142_v45, %v6981_v13  ;;  %v4177_v19 = vcombine.high %v8142_v45, %v8142_v45 }
0x1fd8   :  { %v4200_v63 = vrot.slane %v4184_v31, %v6981_v13  ;;  %v4192_v53 = vcombine.high %v4184_v31, %v4184_v31  ;;  %v4191_v30 = vrot.slane %v4177_v19, %v6981_v13 }
0x1fda   :  { %v4229_v16 = vrot.slane %v4200_v63, %v6986_v15  ;;  %v4222_v29 = vcombine.high %v4200_v63, %v4200_v63  ;;  %v4214_v41 = vrot.slane %v4192_v53, %v6981_v13  ;;  %v4207_v7 = vrot.slane %v4191_v30, %v6981_v13  ;;  %v8210_v63 = vld [vmem:[%s8627_s2 + $0x28] sm:$0x3f] }
0x1fdb   :  { %v4193_v8 = vcombine.high %v4191_v30, %v4191_v30 }
0x1fdc   :  { %4258 = vrot.lane.b32.xlu1 %v4229_v16, %s6869_s3  ;;  %v4237_v5 = vrot.slane %v4222_v29, %v6986_v15  ;;  %v4233_v38 = vrot.slane %v4214_v41, %v6986_v15  ;;  %v4224_v18 = vcombine.high %v4214_v41, %v4214_v41  ;;  %v4245_v32 = vrot.slane %v4207_v7, %v6986_v15 }
0x1fdd   :  { %v4223_v57 = vcombine.high %v4207_v7, %v4207_v7  ;;  %v4221_v25 = vrot.slane %v4193_v8, %v6981_v13 }
0x1fde   :  { %4262 = vrot.lane.b32.xlu0 %v4237_v5, %s6869_s3  ;;  %v4241_v21 = vrot.slane %v4224_v18, %v6986_v15  ;;  %v8219_v5 = vld [vmem:[%s8627_s2 + $0x38] sm:$0x3f] }
0x1fdf   :  { %v4253_v56 = vrot.slane %v4223_v57, %v6986_v15  ;;  %v4249_v24 = vrot.slane %v4221_v25, %v6986_v15  ;;  %v4225_v46 = vcombine.high %v4221_v25, %v4221_v25 }
0x1fe0   :  { %4260 = vrot.lane.b32.xlu1 %v4233_v38, %s6869_s3 }
0x1fe1   :  { %v4257_v54 = vrot.slane %v4225_v46, %v6986_v15 }
0x1fe2   :  { %4266 = vrot.lane.b32.xlu0 %v4245_v32, %s6869_s3 }
0x1fe4   :  { %4264 = vrot.lane.b32.xlu1 %v4241_v21, %s6869_s3 }
0x1fe6   :  { %4270 = vrot.lane.b32.xlu0 %v4253_v56, %s6869_s3 }
0x1fe8   :  { %4268 = vrot.lane.b32.xlu1 %v4249_v24, %s6869_s3 }
0x1fec   :  { %4272 = vrot.lane.b32.xlu1 %v4257_v54, %s6869_s3 }
0x204e   :  { %v4259_v28 = vpop.permute.xlu1 %4258 }
0x204f   :  { %v4282_v47 = vmul.f32 %v4259_v28, %v8172_v48 }
0x2050   :  { %v4263_v58 = vpop.permute.xlu0 %4262 }
0x2051   :  { %v4284_v43 = vmul.f32 %v4263_v58, %v8177_v62  ;;  %v4290_v26 = vsel %vm353_vm0, %v4282_v47, 0.0 }
0x2052   :  { %v4261_v39 = vpop.permute.xlu1 %4260  ;;  %4291 = vadd.xlane.f32.xlu0 %v4290_v26 }
0x2053   :  { %v4283_v51 = vmul.f32 %v4261_v39, %v8183_v10  ;;  %v4296_v4 = vsel %vm353_vm0, %v4284_v43, 0.0 }
0x2054   :  { %v4267_v40 = vpop.permute.xlu0 %4266 }
0x2055   :  { %v4286_v6 = vmul.f32 %v4267_v40, %v8190_v42  ;;  %v4293_v27 = vsel %vm353_vm0, %v4283_v51, 0.0 }
0x2056   :  { %v4265_v60 = vpop.permute.xlu1 %4264  ;;  %4297 = vadd.xlane.f32.xlu0 %v4296_v4  ;;  %4294 = vadd.xlane.f32.xlu1 %v4293_v27 }
0x2057   :  { %v4285_v31 = vmul.f32 %v4265_v60, %v8196_v23  ;;  %v4302_v16 = vsel %vm353_vm0, %v4286_v6, 0.0 }
0x2058   :  { %v4271_v19 = vpop.permute.xlu0 %4270 }
0x2059   :  { %v4288_v53 = vmul.f32 %v4271_v19, %v8204_v11  ;;  %v4299_v30 = vsel %vm353_vm0, %v4285_v31, 0.0 }
0x205a   :  { %4300 = vadd.xlane.f32.xlu0 %v4299_v30  ;;  %v4269_v29 = vpop.permute.xlu1 %4268  ;;  %4303 = vadd.xlane.f32.xlu1 %v4302_v16 }
0x205b   :  { %v4287_v41 = vmul.f32 %v4269_v29, %v8210_v63  ;;  %v4308_v38 = vsel %vm353_vm0, %v4288_v53, 0.0 }
0x205d   :  { %v4305_v7 = vsel %vm353_vm0, %v4287_v41, 0.0 }
0x205e   :  { %4306 = vadd.xlane.f32.xlu0 %v4305_v7  ;;  %4309 = vadd.xlane.f32.xlu1 %v4308_v38  ;;  %v4273_v18 = vpop.permute.xlu1 %4272 }
0x205f   :  { %v4289_v8 = vmul.f32 %v4273_v18, %v8219_v5 }
0x2061   :  { %v4311_v32 = vsel %vm353_vm0, %v4289_v8, 0.0 }
0x2062   :  { %4312 = vadd.xlane.f32.xlu0 %v4311_v32 }
0x20df   :  { %v4292_v57 = vpop.xlane.xlu0 %4291 }
0x20e0   :  { %v4325_v56 = vrot.slane %v4292_v57, %v6978_v12 }
0x20e3   :  { %v4298_v21 = vpop.xlane.xlu0 %4297  ;;  %v4295_v25 = vpop.xlane.xlu1 %4294 }
0x20e4   :  { %v4329_v24 = vrot.slane %v4295_v25, %v6978_v12  ;;  %v4333_v46 = vrot.slane %v4298_v21, %v6978_v12 }
0x20e6   :  { %v4354_v54 = vsel %vm420_vm1, %v4329_v24, %v4325_v56 }
0x20e7   :  { %v4301_v28 = vpop.xlane.xlu0 %4300  ;;  %v4304_v47 = vpop.xlane.xlu1 %4303  ;;  %v4355_v43 = vsel %vm422_vm2, %v4333_v46, %v4354_v54 }
0x20e8   :  { %v4337_v58 = vrot.slane %v4301_v28, %v6978_v12  ;;  %v4341_v26 = vrot.slane %v4304_v47, %v6978_v12 }
0x20ea   :  { %v4356_v39 = vsel %vm424_vm3, %v4337_v58, %v4355_v43 }
0x20eb   :  { %v4307_v51 = vpop.xlane.xlu0 %4306  ;;  %v4310_v40 = vpop.xlane.xlu1 %4309  ;;  %v4357_v4 = vsel %vm426_vm4, %v4341_v26, %v4356_v39 }
0x20ec   :  { %v4345_v6 = vrot.slane %v4307_v51, %v6978_v12  ;;  %v4349_v27 = vrot.slane %v4310_v40, %v6978_v12 }
0x20ee   :  { %v4358_v60 = vsel %vm428_vm5, %v4345_v6, %v4357_v4 }
0x20ef   :  { %v4313_v31 = vpop.xlane.xlu0 %4312  ;;  %v4359_v53 = vsel %vm430_vm6, %v4349_v27, %v4358_v60 }
0x20f0   :  { %v4353_v19 = vrot.slane %v4313_v31, %v6978_v12 }
0x20f2   :  { %v4360_v30 = vsel %vm432_vm7, %v4353_v19, %v4359_v53 }
0x20f3   :  { %v4362_v16 = vsel %vm435_vm8, %v4360_v30, -inf }
0x20f4   :  { %4363 = vmax.xlane.f32.xlu1 %v4362_v16 }
0x2181   :  { %v4364_v29 = vpop.xlane.xlu1 %4363 }
0x2182   :  { %v4369_v41 = vrot.slane %v4364_v29, %v6986_v15  ;;  %v4373_v7 = vrot.slane %v4364_v29, %v7074_v33  ;;  %v4377_v38 = vrot.slane %v4364_v29, %v7077_v34  ;;  %v4381_v18 = vrot.slane %v4364_v29, %v7080_v36 }
0x2183   :  { %v4389_v8 = vrot.slane %v4364_v29, %v7090_v50  ;;  %v4385_v46 = vrot.slane %v4364_v29, %v7086_v44  ;;  %v4397_v26 = vrot.slane %v4364_v29, %v7098_v59  ;;  %v4393_v4 = vrot.slane %v4364_v29, %v7094_v55 }
0x2184   :  { %v4406_v32 = vsub.f32 %v4292_v57, %v4369_v41  ;;  %v4407_v56 = vsub.f32 %v4295_v25, %v4373_v7  ;;  %v4409_v24 = vsub.f32 %v4301_v28, %v4381_v18  ;;  %v4408_v54 = vsub.f32 %v4298_v21, %v4377_v38 }
0x2185   :  { %v4411_v39 = vsub.f32 %v4307_v51, %v4389_v8  ;;  %v4410_v27 = vsub.f32 %v4304_v47, %v4385_v46  ;;  %v4413_v19 = vsub.f32 %v4313_v31, %v4397_v26  ;;  %v4412_v25 = vsub.f32 %v4310_v40, %v4393_v4 }
0x2186   :  { %v4414_v58 = vmul.f32 1.442695, %v4406_v32  ;;  %v4416_v43 = vmul.f32 1.442695, %v4407_v56  ;;  %v4420_v6 = vmul.f32 1.442695, %v4409_v24 }
0x2187   :  { %v4418_v60 = vmul.f32 1.442695, %v4408_v54  ;;  %v4424_v57 = vmul.f32 1.442695, %v4411_v39  ;;  %v4422_v28 = vmul.f32 1.442695, %v4410_v27 }
0x2188   :  { %6736 = vpow2.f32 %v4414_v58  ;;  %v4428_v21 = vmul.f32 1.442695, %v4413_v19  ;;  %v4426_v53 = vmul.f32 1.442695, %v4412_v25 }
0x2189   :  { %6738 = vpow2.f32 %v4416_v43 }
0x218a   :  { %6740 = vpow2.f32 %v4420_v6 }
0x218b   :  { %6742 = vpow2.f32 %v4418_v60 }
0x218c   :  { %6744 = vpow2.f32 %v4424_v57 }
0x218d   :  { %6746 = vpow2.f32 %v4422_v28 }
0x218e   :  { %6748 = vpow2.f32 %v4428_v21 }
0x218f   :  { %6750 = vpow2.f32 %v4426_v53 }
0x2192   :  { %v6737_v30 = vpop.eup %6736 }
0x2193   :  { %v6739_v16 = vpop.eup %6738  ;;  %4439 = vperm.xlu0 %6614, %v6737_v30  }
0x2194   :  { %4442 = vperm.xlu1 %6613, %v6739_v16   ;;  %v6741_v51 = vpop.eup %6740 }
0x2195   :  { %v6743_v47 = vpop.eup %6742 }
0x2196   :  { %v6745_v31 = vpop.eup %6744 }
0x2197   :  { %4448 = vperm.xlu0 %6614, %v6741_v51   ;;  %v6747_v29 = vpop.eup %6746 }
0x2198   :  { %4445 = vperm.xlu1 %6613, %v6743_v47   ;;  %v6749_v40 = vpop.eup %6748 }
0x2199   :  { %v6751_v41 = vpop.eup %6750 }
0x219b   :  { %4454 = vperm.xlu0 %6614, %v6745_v31  }
0x219c   :  { %4451 = vperm.xlu1 %6613, %v6747_v29  }
0x219f   :  { %4460 = vperm.xlu0 %6614, %v6749_v40  }
0x21a0   :  { %4457 = vperm.xlu1 %6613, %v6751_v41  }
0x2212   :  { %v4440_v7 = vpop.permute.xlu0 %4439 }
0x2213   :  { %v4443_v38 = vpop.permute.xlu1 %4442  ;;  %v4465_v8 = vrot.slane %v4440_v7, %v6978_v12 }
0x2214   :  { %v4469_v18 = vrot.slane %v4443_v38, %v6978_v12 }
0x2216   :  { %v4449_v32 = vpop.permute.xlu0 %4448  ;;  %v4494_v46 = vsel %vm420_vm1, %v4469_v18, %v4465_v8 }
0x2217   :  { %v4446_v56 = vpop.permute.xlu1 %4445  ;;  %v4477_v54 = vrot.slane %v4449_v32, %v6978_v12 }
0x2218   :  { %v4473_v24 = vrot.slane %v4446_v56, %v6978_v12 }
0x221a   :  { %v4495_v58 = vsel %vm422_vm2, %v4473_v24, %v4494_v46  ;;  %v4455_v43 = vpop.permute.xlu0 %4454 }
0x221b   :  { %v4452_v26 = vpop.permute.xlu1 %4451  ;;  %v4496_v6 = vsel %vm424_vm3, %v4477_v54, %v4495_v58  ;;  %v4485_v4 = vrot.slane %v4455_v43, %v6978_v12 }
0x221c   :  { %v4481_v39 = vrot.slane %v4452_v26, %v6978_v12 }
0x221e   :  { %v4497_v27 = vsel %vm426_vm4, %v4481_v39, %v4496_v6  ;;  %v4461_v60 = vpop.permute.xlu0 %4460 }
0x221f   :  { %v4458_v19 = vpop.permute.xlu1 %4457  ;;  %v4493_v57 = vrot.slane %v4461_v60, %v6978_v12  ;;  %v4498_v28 = vsel %vm428_vm5, %v4485_v4, %v4497_v27 }
0x2220   :  { %v4489_v25 = vrot.slane %v4458_v19, %v6978_v12 }
0x2222   :  { %v4499_v21 = vsel %vm430_vm6, %v4489_v25, %v4498_v28 }
0x2223   :  { %v4500_v53 = vsel %vm432_vm7, %v4493_v57, %v4499_v21 }
0x2224   :  { %v4502_v7 = vsel %vm435_vm8, %v4500_v53, 0.0 }
0x2225   :  { %4503 = vadd.xlane.f32.xlu1 %v4502_v7 }
0x22b2   :  { %v4504_v38 = vpop.xlane.xlu1 %4503 }
0x22b3   :  { %6752 = vrcp.f32 %v4504_v38 }
0x22bd   :  { %v6753_v18 = vpop.eup %6752 }
0x22be   :  { %v4510_v8 = vrot.slane %v6753_v18, %v6986_v15  ;;  %v4514_v56 = vrot.slane %v6753_v18, %v7074_v33  ;;  %v4518_v46 = vrot.slane %v6753_v18, %v7077_v34  ;;  %v4522_v58 = vrot.slane %v6753_v18, %v7080_v36 }
0x22bf   :  { %v4526_v26 = vrot.slane %v6753_v18, %v7086_v44  ;;  %v4530_v6 = vrot.slane %v6753_v18, %v7090_v50  ;;  %v4534_v4 = vrot.slane %v6753_v18, %v7094_v55  ;;  %v4538_v27 = vrot.slane %v6753_v18, %v7098_v59 }
0x22c0   :  { %v4547_v32 = vmul.f32 %v6737_v30, %v4510_v8  ;;  %v4548_v24 = vmul.f32 %v6739_v16, %v4514_v56  ;;  %v4549_v54 = vmul.f32 %v6743_v47, %v4518_v46  ;;  %v4550_v43 = vmul.f32 %v6741_v51, %v4522_v58 }
0x22c1   :  { %v4551_v39 = vmul.f32 %v6747_v29, %v4526_v26  ;;  %v4552_v30 = vmul.f32 %v6745_v31, %v4530_v6  ;;  %v4553_v16 = vmul.f32 %v6751_v41, %v4534_v4  ;;  %v4554_v47 = vmul.f32 %v6749_v40, %v4538_v27 }
0x22c2   :  { %4557 = vperm.xlu0 %6614, %v4547_v32  }
0x22c6   :  { %4562 = vperm.xlu0 %6614, %v4548_v24  }
0x22ca   :  { %4567 = vperm.xlu0 %6614, %v4549_v54  }
0x22ce   :  { %4572 = vperm.xlu0 %6614, %v4550_v43  }
0x22d2   :  { %4577 = vperm.xlu0 %6614, %v4551_v39  }
0x22d6   :  { %4582 = vperm.xlu0 %6614, %v4552_v30  }
0x22da   :  { %4587 = vperm.xlu0 %6614, %v4553_v16  }
0x22de   :  { %4592 = vperm.xlu0 %6614, %v4554_v47  }
0x22e2   :  { %4847 = vrot.lane.b32.xlu0 %v8142_v45, %s6869_s3 }
0x2341   :  { %v4558_v51 = vpop.permute.xlu0 %4557 }
0x2342   :  { %v4595_v57 = vmul.f32 %v4558_v51, %v8172_v48 }
0x2344   :  { %v4603_v40 = vsel %vm353_vm0, %v4595_v57, 0.0 }
0x2345   :  { %v4563_v60 = vpop.permute.xlu0 %4562  ;;  %v4604_v18 = vrot.slane %v4603_v40, 4 }
0x2346   :  { %v4596_v29 = vmul.f32 %v4563_v60, %v8183_v10 }
0x2347   :  { %v4605_v24 = vadd.f32 %v4604_v18, %v4603_v40 }
0x2348   :  { %v4610_v25 = vsel %vm353_vm0, %v4596_v29, 0.0 }
0x2349   :  { %v4568_v19 = vpop.permute.xlu0 %4567  ;;  %v4611_v53 = vrot.slane %v4610_v25, 4  ;;  %v4606_v30 = vrot.slane %v4605_v24, 2 }
0x234a   :  { %v4597_v31 = vmul.f32 %v4568_v19, %v8177_v62 }
0x234b   :  { %v4612_v32 = vadd.f32 %v4611_v53, %v4610_v25  ;;  %v4607_v57 = vadd.f32 %v4606_v30, %v4605_v24 }
0x234c   :  { %v4617_v41 = vsel %vm353_vm0, %v4597_v31, 0.0 }
0x234d   :  { %v4573_v28 = vpop.permute.xlu0 %4572  ;;  %v4618_v7 = vrot.slane %v4617_v41, 4 }
0x234e   :  { %v4598_v21 = vmul.f32 %v4573_v28, %v8196_v23  ;;  %v4613_v23 = vrot.slane %v4612_v32, 2 }
0x234f   :  { %v4619_v62 = vadd.f32 %v4618_v7, %v4617_v41 }
0x2350   :  { %v4624_v38 = vsel %vm353_vm0, %v4598_v21, 0.0  ;;  %v4614_v51 = vadd.f32 %v4613_v23, %v4612_v32 }
0x2351   :  { %v4625_v10 = vrot.slane %v4624_v38, 4  ;;  %v4578_v8 = vpop.permute.xlu0 %4577  ;;  %v4620_v39 = vrot.slane %v4619_v62, 2 }
0x2352   :  { %v4599_v48 = vmul.f32 %v4578_v8, %v8190_v42  ;;  %v4615_v21 = vrot.slane %v4614_v51, 1 }
0x2353   :  { %v4626_v46 = vadd.f32 %v4625_v10, %v4624_v38  ;;  %v4621_v29 = vadd.f32 %v4620_v39, %v4619_v62 }
0x2354   :  { %v4631_v56 = vsel %vm353_vm0, %v4599_v48, 0.0  ;;  %v4616_v62 = vadd.f32 %v4615_v21, %v4614_v51 }
0x2355   :  { %v4632_v54 = vrot.slane %v4631_v56, 4  ;;  %v4583_v58 = vpop.permute.xlu0 %4582  ;;  %v4627_v4 = vrot.slane %v4626_v46, 2  ;;  %v4622_v38 = vrot.slane %v4621_v29, 1 }
0x2356   :  { %v4600_v43 = vmul.f32 %v4583_v58, %v8210_v63 }
0x2357   :  { %v4633_v26 = vadd.f32 %v4632_v54, %v4631_v56  ;;  %v4628_v31 = vadd.f32 %v4627_v4, %v4626_v46  ;;  %v4623_v54 = vadd.f32 %v4622_v38, %v4621_v29 }
0x2358   :  { %v4638_v6 = vsel %vm353_vm0, %v4600_v43, 0.0 }
0x2359   :  { %v4639_v16 = vrot.slane %v4638_v6, 4  ;;  %v4588_v27 = vpop.permute.xlu0 %4587  ;;  %v4634_v42 = vrot.slane %v4633_v26, 2  ;;  %v4629_v10 = vrot.slane %v4628_v31, 1 }
0x235a   :  { %v4601_v47 = vmul.f32 %v4588_v27, %v8204_v11  ;;  %v4608_v11 = vrot.slane %v4607_v57, 1 }
0x235b   :  { %v4640_v60 = vadd.f32 %v4639_v16, %v4638_v6  ;;  %v4635_v28 = vadd.f32 %v4634_v42, %v4633_v26  ;;  %v4630_v43 = vadd.f32 %v4629_v10, %v4628_v31  ;;  %v4659_v31 = vld [vmem:[#allocation2 + $0x28] sm:$0xff] }
0x235c   :  { %v4645_v19 = vsel %vm353_vm0, %v4601_v47, 0.0  ;;  %v4609_v58 = vadd.f32 %v4608_v11, %v4607_v57 }
0x235d   :  { %v4641_v63 = vrot.slane %v4640_v60, 2  ;;  %v4646_v25 = vrot.slane %v4645_v19, 4  ;;  %v4593_v41 = vpop.permute.xlu0 %4592  ;;  %v4636_v32 = vrot.slane %v4635_v28, 1 }
0x235e   :  { %v4602_v40 = vmul.f32 %v4593_v41, %v8219_v5  ;;  %v4672_v39 = vsel %vm420_vm1, %v4616_v62, %v4609_v58 }
0x235f   :  { %v4642_v53 = vadd.f32 %v4641_v63, %v4640_v60  ;;  %v4647_v7 = vadd.f32 %v4646_v25, %v4645_v19  ;;  %v4637_v26 = vadd.f32 %v4636_v32, %v4635_v28  ;;  %v4673_v4 = vsel %vm422_vm2, %v4623_v54, %v4672_v39 }
0x2360   :  { %v4652_v18 = vsel %vm353_vm0, %v4602_v40, 0.0  ;;  %v4674_v27 = vsel %vm424_vm3, %v4630_v43, %v4673_v4 }
0x2361   :  { %v4648_v8 = vrot.slane %v4647_v7, 2  ;;  %v4653_v48 = vrot.slane %v4652_v18, 4  ;;  %v4643_v56 = vrot.slane %v4642_v53, 1  ;;  %v4675_v47 = vsel %vm426_vm4, %v4637_v26, %v4674_v27  ;;  %v4848_v57 = vpop.permute.xlu0 %4847 }
0x2363   :  { %v4649_v24 = vadd.f32 %v4648_v8, %v4647_v7  ;;  %v4654_v46 = vadd.f32 %v4653_v48, %v4652_v18  ;;  %v4644_v6 = vadd.f32 %v4643_v56, %v4642_v53 }
0x2365   :  { %v4650_v23 = vrot.slane %v4649_v24, 1  ;;  %v4655_v5 = vrot.slane %v4654_v46, 2  ;;  %v4676_v60 = vsel %vm428_vm5, %v4644_v6, %v4675_v47 }
0x2367   :  { %v4656_v30 = vadd.f32 %v4655_v5, %v4654_v46  ;;  %v4651_v16 = vadd.f32 %v4650_v23, %v4649_v24 }
0x2369   :  { %v4657_v42 = vrot.slane %v4656_v30, 1  ;;  %v4677_v29 = vsel %vm430_vm6, %v4651_v16, %v4676_v60 }
0x236b   :  { %v4658_v51 = vadd.f32 %v4657_v42, %v4656_v30 }
0x236d   :  { %v4678_v19 = vsel %vm432_vm7, %v4658_v51, %v4677_v29 }
0x236e   :  { %6378 = vmatmul.mubr.msk.f32.vlgmr.msra.gmra.mrb[16].mxu0 %vm238_vm11, %v4678_v19 }
0x236f   :  { %6571 = vmatpush3.bf16.msra.mxu0 %v8087_v37  ;;  %6399 = vmatprep.mubr.msk.f32.mxu0 %vm6866_vm9, %v6867_v20 }
0x2370   :  { %6572 = vmatprep.subr.bf16.mxu0 %v6865_v22 }
0x2373   :  { %6574 = vmatpush3.bf16.msra.mxu0 %v8099_v61 }
0x2374   :  { %6581 = vmatprep.subr.bf16.mxu0 %v6865_v22 }
0x2376   :  { %6400 = vmatmul.mubr.msk.f32.vlgmr.msra.gmra.mrb[18].mxu0 %vm238_vm11, %v4848_v57 }
0x2377   :  { %6421 = vmatprep.mubr.msk.f32.mxu0 %vm6866_vm9, %v6867_v20 }
0x2441   :  { %v4747_v63 = vpop.f32.mrb[16].mxu0 }
0x2442   :  { %v4751_v25 = vadd.f32 %v4747_v63, %v4659_v31  ;;  %v6379_v41 = vpop.f32.mrb[17].mxu0 }
0x2443   :  { %v8347_v41 = vld [vmem:[%s8627_s2] sm:$0x3f] }
0x2444   :  { %6389 = vmatmul.mubr.msk.f32.vlgmr.msra.gmra.mrb[28].mxu1 %vm238_vm11, %v4751_v25 }
0x2445   :  { %6410 = vmatprep.mubr.msk.f32.mxu1 %vm6866_vm9, %v6867_v20 }
0x2449   :  { %v4917_v37 = vpop.f32.mrb[18].mxu0 }
0x244a   :  { %v4918_v61 = vadd.f32 %v8127_v17, %v4917_v37  ;;  %v6401_v28 = vpop.f32.mrb[19].mxu0 }
0x244b   :  { %v8353_v28 = vld [vmem:[%s8627_s2 + $0x8] sm:$0x3f] }
0x244c   :  { %4929 = vrot.lane.b32.xlu1 %v4918_v61, %s6868_s20 }
0x24be   :  { %v4930_v8 = vpop.permute.xlu1 %4929 }
0x2517   :  { %v4832_v40 = vpop.f32.mrb[28].mxu1 }
0x2518   :  { %v4833_v21 = vadd.f32 %v8136_v52, %v4832_v40  ;;  %v6390_v53 = vpop.f32.mrb[29].mxu1 }
0x251a   :  { %v4921_v7 = vadd.f32 %v4918_v61, %v4833_v21 }
0x251c   :  { %v6038_v38 = vmul.f32 -1.442695, %v4921_v7  ;;  %v8364_v7 = vld [vmem:[%s8627_s2 + $0x20] sm:$0x3f] }
0x251e   :  { %6754 = vpow2.f32 %v6038_v38 }
0x2528   :  { %v6755_v18 = vpop.eup %6754 }
0x2529   :  { %v4925_v11 = vadd.f32 1.0, %v6755_v18 }
0x252b   :  { %6756 = vrcp.f32 %v4925_v11 }
0x2535   :  { %v6757_v10 = vpop.eup %6756 }
0x2536   :  { %v4932_v48 = vmul.f32 %v6757_v10, %v4930_v8  ;;  %v4939_v56 = vsub.f32 1.0, %v6757_v10  ;;  %v4945_v24 = vmul.f32 %v6757_v10, %v8142_v45 }
0x2538   :  { %4934 = vrot.lane.b32.xlu0 %v4932_v48, %s6868_s20  ;;  %v8373_v48 = vld [vmem:[%s8627_s2 + $0x18] sm:$0x3f] }
0x25aa   :  { %v4935_v32 = vpop.permute.xlu0 %4934 }
0x25ab   :  { %v4937_v17 = vadd.f32 %v4935_v32, %v4833_v21  ;;  %v8359_v21 = vld [vmem:[%s8627_s2 + $0x10] sm:$0x3f] }
0x25ad   :  { %6758 = vtanh.f32 %v4937_v17  ;;  %v8378_v17 = vld [vmem:[%s8627_s2 + $0x30] sm:$0x3f] }
0x25b7   :  { %v6759_v62 = vpop.eup %6758 }
0x25b8   :  { %4941 = vrot.lane.b32.xlu0 %v6759_v62, %s6869_s3 }
0x262a   :  { %v4942_v52 = vpop.permute.xlu0 %4941 }
0x262b   :  { %v4944_v46 = vmul.f32 %v4942_v52, %v4939_v56 }
0x262d   :  { %v8317_v54 = vadd.f32 %v4945_v24, %v4944_v46 }
0x262f   :  { %v4969_v58 = vrot.slane %v8317_v54, %v6981_v13  ;;  %v4962_v43 = vcombine.high %v8317_v54, %v8317_v54 }
0x2631   :  { %v4985_v23 = vrot.slane %v4969_v58, %v6981_v13  ;;  %v4977_v5 = vcombine.high %v4969_v58, %v4969_v58  ;;  %v4976_v26 = vrot.slane %v4962_v43, %v6981_v13  ;;  %v8387_v58 = vld [vmem:[%s8627_s2 + $0x28] sm:$0x3f] }
0x2633   :  { %v5014_v39 = vrot.slane %v4985_v23, %v6986_v15  ;;  %v5007_v6 = vcombine.high %v4985_v23, %v4985_v23  ;;  %v4999_v30 = vrot.slane %v4977_v5, %v6981_v13  ;;  %v4992_v16 = vrot.slane %v4976_v26, %v6981_v13 }
0x2634   :  { %v4978_v47 = vcombine.high %v4976_v26, %v4976_v26 }
0x2635   :  { %5043 = vrot.lane.b32.xlu0 %v5014_v39, %s6869_s3  ;;  %v5022_v4 = vrot.slane %v5007_v6, %v6986_v15  ;;  %v5018_v27 = vrot.slane %v4999_v30, %v6986_v15  ;;  %v5009_v42 = vcombine.high %v4999_v30, %v4999_v30  ;;  %v5030_v51 = vrot.slane %v4992_v16, %v6986_v15  ;;  %v8395_v39 = vld [vmem:[%s8627_s2 + $0x38] sm:$0x3f] }
0x2636   :  { %v5008_v60 = vcombine.high %v4992_v16, %v4992_v16  ;;  %v5006_v19 = vrot.slane %v4978_v47, %v6981_v13 }
0x2637   :  { %5047 = vrot.lane.b32.xlu1 %v5022_v4, %s6869_s3  ;;  %v5026_v29 = vrot.slane %v5009_v42, %v6986_v15 }
0x2638   :  { %v5038_v57 = vrot.slane %v5008_v60, %v6986_v15  ;;  %v5034_v31 = vrot.slane %v5006_v19, %v6986_v15  ;;  %v5010_v63 = vcombine.high %v5006_v19, %v5006_v19 }
0x2639   :  { %5045 = vrot.lane.b32.xlu0 %v5018_v27, %s6869_s3 }
0x263a   :  { %v5042_v25 = vrot.slane %v5010_v63, %v6986_v15 }
0x263b   :  { %5051 = vrot.lane.b32.xlu1 %v5030_v51, %s6869_s3 }
0x263d   :  { %5049 = vrot.lane.b32.xlu0 %v5026_v29, %s6869_s3 }
0x263f   :  { %5055 = vrot.lane.b32.xlu1 %v5038_v57, %s6869_s3 }
0x2641   :  { %5053 = vrot.lane.b32.xlu0 %v5034_v31, %s6869_s3 }
0x2645   :  { %5057 = vrot.lane.b32.xlu0 %v5042_v25, %s6869_s3 }
0x26a7   :  { %v5044_v13 = vpop.permute.xlu0 %5043 }
0x26a8   :  { %v5067_v37 = vmul.f32 %v5044_v13, %v8347_v41 }
0x26a9   :  { %v5048_v61 = vpop.permute.xlu1 %5047 }
0x26aa   :  { %v5075_v40 = vsel %vm353_vm0, %v5067_v37, 0.0  ;;  %v5069_v11 = vmul.f32 %v5048_v61, %v8359_v21 }
0x26ab   :  { %v5046_v53 = vpop.permute.xlu0 %5045  ;;  %5076 = vadd.xlane.f32.xlu1 %v5075_v40 }
0x26ac   :  { %v5068_v38 = vmul.f32 %v5046_v53, %v8353_v28  ;;  %v5081_v46 = vsel %vm353_vm0, %v5069_v11, 0.0 }
0x26ad   :  { %v5052_v18 = vpop.permute.xlu1 %5051 }
0x26ae   :  { %v5071_v10 = vmul.f32 %v5052_v18, %v8364_v7  ;;  %v5078_v8 = vsel %vm353_vm0, %v5068_v38, 0.0 }
0x26af   :  { %v5050_v32 = vpop.permute.xlu0 %5049  ;;  %5079 = vadd.xlane.f32.xlu0 %v5078_v8 }
0x26b0   :  { %v5087_v62 = vsel %vm353_vm0, %v5071_v10, 0.0  ;;  %v5070_v52 = vmul.f32 %v5050_v32, %v8373_v48 }
0x26b1   :  { %5088 = vadd.xlane.f32.xlu1 %v5087_v62  ;;  %v5056_v56 = vpop.permute.xlu1 %5055 }
0x26b2   :  { %v5073_v24 = vmul.f32 %v5056_v56, %v8378_v17  ;;  %v5084_v26 = vsel %vm353_vm0, %v5070_v52, 0.0 }
0x26b3   :  { %v5054_v43 = vpop.permute.xlu0 %5053  ;;  %5082 = vadd.xlane.f32.xlu0 %v5081_v46 }
0x26b4   :  { %v5093_v23 = vsel %vm353_vm0, %v5073_v24, 0.0  ;;  %v5072_v5 = vmul.f32 %v5054_v43, %v8387_v58 }
0x26b5   :  { %5094 = vadd.xlane.f32.xlu1 %v5093_v23 }
0x26b6   :  { %v5090_v4 = vsel %vm353_vm0, %v5072_v5, 0.0 }
0x26b7   :  { %5085 = vadd.xlane.f32.xlu0 %v5084_v26  ;;  %v5058_v6 = vpop.permute.xlu0 %5057 }
0x26b8   :  { %v5074_v30 = vmul.f32 %v5058_v6, %v8395_v39 }
0x26ba   :  { %v5096_v16 = vsel %vm353_vm0, %v5074_v30, 0.0 }
0x26bb   :  { %5091 = vadd.xlane.f32.xlu0 %v5090_v4 }
0x26bf   :  { %5097 = vadd.xlane.f32.xlu0 %v5096_v16 }
0x2738   :  { %v5077_v42 = vpop.xlane.xlu1 %5076 }
0x2739   :  { %v5110_v29 = vrot.slane %v5077_v42, %v6978_v12 }
0x273c   :  { %v5080_v27 = vpop.xlane.xlu0 %5079 }
0x273d   :  { %v5114_v51 = vrot.slane %v5080_v27, %v6978_v12 }
0x273e   :  { %v5089_v19 = vpop.xlane.xlu1 %5088 }
0x273f   :  { %v5139_v31 = vsel %vm420_vm1, %v5114_v51, %v5110_v29  ;;  %v5126_v37 = vrot.slane %v5089_v19, %v6978_v12 }
0x2740   :  { %v5083_v47 = vpop.xlane.xlu0 %5082 }
0x2741   :  { %v5118_v60 = vrot.slane %v5083_v47, %v6978_v12 }
0x2742   :  { %v5095_v40 = vpop.xlane.xlu1 %5094 }
0x2743   :  { %v5140_v25 = vsel %vm422_vm2, %v5118_v60, %v5139_v31  ;;  %v5134_v11 = vrot.slane %v5095_v40, %v6978_v12 }
0x2744   :  { %v5086_v57 = vpop.xlane.xlu0 %5085 }
0x2745   :  { %v5122_v63 = vrot.slane %v5086_v57, %v6978_v12 }
0x2747   :  { %v5141_v13 = vsel %vm424_vm3, %v5122_v63, %v5140_v25 }
0x2748   :  { %v5092_v61 = vpop.xlane.xlu0 %5091  ;;  %v5142_v38 = vsel %vm426_vm4, %v5126_v37, %v5141_v13 }
0x2749   :  { %v5130_v53 = vrot.slane %v5092_v61, %v6978_v12 }
0x274b   :  { %v5143_v18 = vsel %vm428_vm5, %v5130_v53, %v5142_v38 }
0x274c   :  { %v5098_v10 = vpop.xlane.xlu0 %5097  ;;  %v5144_v32 = vsel %vm430_vm6, %v5134_v11, %v5143_v18 }
0x274d   :  { %v5138_v8 = vrot.slane %v5098_v10, %v6978_v12 }
0x274f   :  { %v5145_v62 = vsel %vm432_vm7, %v5138_v8, %v5144_v32 }
0x2750   :  { %v5147_v56 = vsel %vm435_vm8, %v5145_v62, -inf }
0x2751   :  { %5148 = vmax.xlane.f32.xlu1 %v5147_v56 }
0x27de   :  { %v5149_v52 = vpop.xlane.xlu1 %5148 }
0x27df   :  { %v5154_v24 = vrot.slane %v5149_v52, %v6986_v15  ;;  %v5158_v46 = vrot.slane %v5149_v52, %v7074_v33  ;;  %v5162_v43 = vrot.slane %v5149_v52, %v7077_v34  ;;  %v5170_v23 = vrot.slane %v5149_v52, %v7086_v44 }
0x27e0   :  { %v5178_v5 = vrot.slane %v5149_v52, %v7094_v55  ;;  %v5166_v30 = vrot.slane %v5149_v52, %v7080_v36  ;;  %v5174_v63 = vrot.slane %v5149_v52, %v7090_v50  ;;  %v5182_v53 = vrot.slane %v5149_v52, %v7098_v59 }
0x27e1   :  { %v5191_v26 = vsub.f32 %v5077_v42, %v5154_v24  ;;  %v5192_v6 = vsub.f32 %v5080_v27, %v5158_v46  ;;  %v5193_v4 = vsub.f32 %v5083_v47, %v5162_v43  ;;  %v5195_v16 = vsub.f32 %v5089_v19, %v5170_v23 }
0x27e2   :  { %v5197_v29 = vsub.f32 %v5095_v40, %v5178_v5  ;;  %v5194_v25 = vsub.f32 %v5086_v57, %v5166_v30  ;;  %v5196_v42 = vsub.f32 %v5092_v61, %v5174_v63  ;;  %v5198_v47 = vsub.f32 %v5098_v10, %v5182_v53 }
0x27e3   :  { %v5199_v51 = vmul.f32 1.442695, %v5191_v26  ;;  %v5201_v60 = vmul.f32 1.442695, %v5192_v6  ;;  %v5207_v31 = vmul.f32 1.442695, %v5195_v16 }
0x27e4   :  { %v5203_v13 = vmul.f32 1.442695, %v5193_v4  ;;  %v5211_v37 = vmul.f32 1.442695, %v5197_v29  ;;  %v5205_v27 = vmul.f32 1.442695, %v5194_v25 }
0x27e5   :  { %6760 = vpow2.f32 %v5199_v51  ;;  %v5209_v19 = vmul.f32 1.442695, %v5196_v42  ;;  %v5213_v18 = vmul.f32 1.442695, %v5198_v47 }
0x27e6   :  { %6762 = vpow2.f32 %v5201_v60 }
0x27e7   :  { %6764 = vpow2.f32 %v5207_v31 }
0x27e8   :  { %6766 = vpow2.f32 %v5203_v13 }
0x27e9   :  { %6768 = vpow2.f32 %v5211_v37 }
0x27ea   :  { %6770 = vpow2.f32 %v5205_v27 }
0x27eb   :  { %6772 = vpow2.f32 %v5209_v19 }
0x27ec   :  { %6774 = vpow2.f32 %v5213_v18 }
0x27ef   :  { %v6761_v38 = vpop.eup %6760 }
0x27f0   :  { %v6763_v40 = vpop.eup %6762  ;;  %5224 = vperm.xlu0 %6614, %v6761_v38  }
0x27f1   :  { %5227 = vperm.xlu1 %6613, %v6763_v40   ;;  %v6765_v57 = vpop.eup %6764 }
0x27f2   :  { %v6767_v11 = vpop.eup %6766 }
0x27f3   :  { %v6769_v8 = vpop.eup %6768 }
0x27f4   :  { %5236 = vperm.xlu0 %6614, %v6765_v57   ;;  %v6771_v32 = vpop.eup %6770 }
0x27f5   :  { %5230 = vperm.xlu1 %6613, %v6767_v11   ;;  %v6773_v61 = vpop.eup %6772 }
0x27f6   :  { %v6775_v10 = vpop.eup %6774 }
0x27f8   :  { %5242 = vperm.xlu0 %6614, %v6769_v8  }
0x27f9   :  { %5233 = vperm.xlu1 %6613, %v6771_v32  }
0x27fd   :  { %5239 = vperm.xlu1 %6613, %v6773_v61  }
0x2801   :  { %5245 = vperm.xlu1 %6613, %v6775_v10  }
0x286f   :  { %v5225_v56 = vpop.permute.xlu0 %5224 }
0x2870   :  { %v5228_v62 = vpop.permute.xlu1 %5227  ;;  %v5250_v46 = vrot.slane %v5225_v56, %v6978_v12 }
0x2871   :  { %v5254_v24 = vrot.slane %v5228_v62, %v6978_v12 }
0x2873   :  { %v5237_v23 = vpop.permute.xlu0 %5236  ;;  %v5279_v26 = vsel %vm420_vm1, %v5254_v24, %v5250_v46 }
0x2874   :  { %v5231_v52 = vpop.permute.xlu1 %5230  ;;  %v5266_v16 = vrot.slane %v5237_v23, %v6978_v12  ;;  %v4162_v23 = vmax.f32 %v8142_v45, 0.0 }
0x2875   :  { %v5258_v43 = vrot.slane %v5231_v52, %v6978_v12 }
0x2877   :  { %v5280_v30 = vsel %vm422_vm2, %v5258_v43, %v5279_v26  ;;  %v5243_v60 = vpop.permute.xlu0 %5242 }
0x2878   :  { %v5234_v5 = vpop.permute.xlu1 %5233  ;;  %v5274_v25 = vrot.slane %v5243_v60, %v6978_v12 }
0x2879   :  { %v5262_v6 = vrot.slane %v5234_v5, %v6978_v12 }
0x287b   :  { %v5281_v4 = vsel %vm424_vm3, %v5262_v6, %v5280_v30 }
0x287c   :  { %v5240_v51 = vpop.permute.xlu1 %5239  ;;  %v5282_v31 = vsel %vm426_vm4, %v5266_v16, %v5281_v4 }
0x287d   :  { %v5270_v29 = vrot.slane %v5240_v51, %v6978_v12 }
0x287f   :  { %v5283_v63 = vsel %vm428_vm5, %v5270_v29, %v5282_v31 }
0x2880   :  { %v5246_v13 = vpop.permute.xlu1 %5245  ;;  %v5284_v53 = vsel %vm430_vm6, %v5274_v25, %v5283_v63 }
0x2881   :  { %v5278_v37 = vrot.slane %v5246_v13, %v6978_v12  ;;  %v2592_v12 = vmax.f32 %v7722_v9, 0.0 }
0x2883   :  { %v5285_v42 = vsel %vm432_vm7, %v5278_v37, %v5284_v53 }
0x2884   :  { %v5287_v27 = vsel %vm435_vm8, %v5285_v42, 0.0 }
0x2885   :  { %5288 = vadd.xlane.f32.xlu0 %v5287_v27 }
0x2912   :  { %v5289_v47 = vpop.xlane.xlu0 %5288 }
0x2913   :  { %6776 = vrcp.f32 %v5289_v47 }
0x291d   :  { %v6777_v19 = vpop.eup %6776 }
0x291e   :  { %v5323_v18 = vrot.slane %v6777_v19, %v7098_v59  ;;  %v5295_v62 = vrot.slane %v6777_v19, %v6986_v15  ;;  %v5299_v24 = vrot.slane %v6777_v19, %v7074_v33  ;;  %v5303_v43 = vrot.slane %v6777_v19, %v7077_v34 }
0x291f   :  { %v5307_v59 = vrot.slane %v6777_v19, %v7080_v36  ;;  %v5311_v33 = vrot.slane %v6777_v19, %v7086_v44  ;;  %v5315_v9 = vrot.slane %v6777_v19, %v7090_v50  ;;  %v5445_v36 = vld [vmem:[%s8629_s4] sm:$0xff]  ;;  %v5446_v44 = vld [vmem:[%s8629_s4 + $0x8] sm:$0xff]  ;;  %v5447_v50 = vld [vmem:[%s8629_s4 + $0x10] sm:$0xff] }
0x2920   :  { %v5339_v56 = vmul.f32 %v6775_v10, %v5323_v18  ;;  %v5332_v52 = vmul.f32 %v6761_v38, %v5295_v62  ;;  %v5333_v46 = vmul.f32 %v6763_v40, %v5299_v24  ;;  %v5334_v5 = vmul.f32 %v6767_v11, %v5303_v43  ;;  %v5537_v11 = vld [vmem:[%s8631_s6] sm:$0xff] }
0x2921   :  { %v5335_v15 = vmul.f32 %v6771_v32, %v5307_v59  ;;  %v5336_v38 = vmul.f32 %v6765_v57, %v5311_v33  ;;  %v5337_v34 = vmul.f32 %v6773_v61, %v5315_v9  ;;  %v5319_v40 = vrot.slane %v6777_v19, %v7094_v55  ;;  %v5448_v55 = vld [vmem:[%s8629_s4 + $0x18] sm:$0xff] }
0x2922   :  { %5377 = vperm.xlu0 %6614, %v5339_v56   ;;  %5342 = vperm.xlu1 %6613, %v5332_v52   ;;  %v6576_v45 = vpack.c.bf16 %v5446_v44, %v5445_v36  ;;  %v6579_v57 = vpack.c.bf16 %v5448_v55, %v5447_v50 }
0x2923   :  { %v5338_v10 = vmul.f32 %v6769_v8, %v5319_v40  ;;  %v5538_v8 = vld [vmem:[%s8631_s6 + $0x8] sm:$0xff] }
0x2924   :  { %6577 = vmatpush3.bf16.msra.mxu1 %v6576_v45  ;;  %v6582_v32 = vpack.c.bf16 %v5538_v8, %v5537_v11 }
0x2925   :  { %6578 = vmatprep.subr.bf16.mxu1 %v6865_v22 }
0x2926   :  { %2594 = vrot.lane.b32.xlu0 %v2592_v12, %s6869_s3  ;;  %5347 = vperm.xlu1 %6613, %v5333_v46  }
0x2927   :  { %6583 = vmatpush3.bf16.msra.mxu0 %v6582_v32 }
0x2928   :  { %6580 = vmatpush3.bf16.msra.mxu1 %v6579_v57  ;;  %6584 = vmatprep.subr.bf16.mxu0 %v6865_v22 }
0x2929   :  { %6587 = vmatprep.subr.bf16.mxu1 %v6865_v22 }
0x292a   :  { %4164 = vrot.lane.b32.xlu0 %v4162_v23, %s6869_s3  ;;  %5352 = vperm.xlu1 %6613, %v5334_v5  }
0x292e   :  { %5357 = vperm.xlu1 %6613, %v5335_v15  }
0x2932   :  { %5362 = vperm.xlu1 %6613, %v5336_v38  }
0x2936   :  { %5367 = vperm.xlu1 %6613, %v5337_v34  }
0x293a   :  { %5372 = vperm.xlu1 %6613, %v5338_v10  }
0x293e   :  { %5632 = vrot.lane.b32.xlu1 %v8317_v54, %s6869_s3 }
0x29a1   :  { %v5378_v61 = vpop.permute.xlu0 %5377  ;;  %v5343_v26 = vpop.permute.xlu1 %5342 }
0x29a2   :  { %v5380_v16 = vmul.f32 %v5343_v26, %v8347_v41  ;;  %v5387_v37 = vmul.f32 %v5378_v61, %v8395_v39 }
0x29a4   :  { %v5388_v63 = vsel %vm353_vm0, %v5380_v16, 0.0  ;;  %v5437_v19 = vsel %vm353_vm0, %v5387_v37, 0.0 }
0x29a5   :  { %v2595_v6 = vpop.permute.xlu0 %2594  ;;  %v5348_v30 = vpop.permute.xlu1 %5347  ;;  %v5438_v12 = vrot.slane %v5437_v19, 4 }
0x29a6   :  { %2597 = vst.msk [vmem:[#allocation3 + $0x10] sm:$0xff] %vm238_vm11, %v2595_v6  ;;  %v5381_v4 = vmul.f32 %v5348_v30, %v8353_v28  ;;  %v5389_v28 = vrot.slane %v5388_v63, 4 }
0x29a7   :  { %v5439_v38 = vadd.f32 %v5438_v12, %v5437_v19  ;;  %v5621_v19 = vld [vmem:[%s8633_s8] sm:$0xff] }
0x29a8   :  { %v5395_v51 = vsel %vm353_vm0, %v5381_v4, 0.0  ;;  %v5390_v56 = vadd.f32 %v5389_v28, %v5388_v63 }
0x29a9   :  { %v4165_v60 = vpop.permute.xlu0 %4164  ;;  %v5353_v29 = vpop.permute.xlu1 %5352  ;;  %v5396_v25 = vrot.slane %v5395_v51, 4  ;;  %v5440_v11 = vrot.slane %v5439_v38, 2 }
0x29aa   :  { %4167 = vst.msk [vmem:[#allocation3 + $0x20] sm:$0xff] %vm238_vm11, %v4165_v60  ;;  %v5382_v31 = vmul.f32 %v5353_v29, %v8359_v21 }
0x29ab   :  { %v5397_v27 = vadd.f32 %v5396_v25, %v5395_v51  ;;  %v5441_v60 = vadd.f32 %v5440_v11, %v5439_v38  ;;  %v5444_v38 = vld [vmem:[#allocation2 + $0x30] sm:$0xff] }
0x29ac   :  { %v5402_v13 = vsel %vm353_vm0, %v5382_v31, 0.0 }
0x29ad   :  { %v5403_v53 = vrot.slane %v5402_v13, 4  ;;  %v5358_v42 = vpop.permute.xlu1 %5357  ;;  %v5398_v46 = vrot.slane %v5397_v27, 2 }
0x29ae   :  { %v5383_v41 = vmul.f32 %v5358_v42, %v8373_v48  ;;  %v5391_v48 = vrot.slane %v5390_v56, 2  ;;  %v5442_v42 = vrot.slane %v5441_v60, 1 }
0x29af   :  { %v5404_v18 = vadd.f32 %v5403_v53, %v5402_v13  ;;  %v5399_v9 = vadd.f32 %v5398_v46, %v5397_v27 }
0x29b0   :  { %v5409_v47 = vsel %vm353_vm0, %v5383_v41, 0.0  ;;  %v5392_v44 = vadd.f32 %v5391_v48, %v5390_v56 }
0x29b1   :  { %v5410_v62 = vrot.slane %v5409_v47, 4  ;;  %v5363_v21 = vpop.permute.xlu1 %5362  ;;  %v5405_v43 = vrot.slane %v5404_v18, 2  ;;  %v5400_v8 = vrot.slane %v5399_v9, 1 }
0x29b2   :  { %v5384_v52 = vmul.f32 %v5363_v21, %v8364_v7  ;;  %v5393_v6 = vrot.slane %v5392_v44, 1 }
0x29b3   :  { %v5411_v24 = vadd.f32 %v5410_v62, %v5409_v47  ;;  %v5406_v40 = vadd.f32 %v5405_v43, %v5404_v18  ;;  %v5401_v29 = vadd.f32 %v5400_v8, %v5399_v9  ;;  %v5622_v18 = vld [vmem:[%s8633_s8 + $0x8] sm:$0xff]  ;;  %v5624_v43 = vld [vmem:[%s8633_s8 + $0x18] sm:$0xff] }
0x29b4   :  { %v5416_v39 = vsel %vm353_vm0, %v5384_v52, 0.0  ;;  %v5443_v52 = vadd.f32 %v5442_v42, %v5441_v60  ;;  %v6588_v12 = vpack.c.bf16 %v5622_v18, %v5621_v19  ;;  %v1807_v60 = vmax.f32 %v7477_v14, 0.0 }
0x29b5   :  { %v5417_v23 = vrot.slane %v5416_v39, 4  ;;  %v5368_v5 = vpop.permute.xlu1 %5367  ;;  %v5412_v59 = vrot.slane %v5411_v24, 2 }
0x29b6   :  { %v5385_v15 = vmul.f32 %v5368_v5, %v8387_v58  ;;  %v5407_v58 = vrot.slane %v5406_v40, 1 }
0x29b7   :  { %v5418_v33 = vadd.f32 %v5417_v23, %v5416_v39  ;;  %v5413_v45 = vadd.f32 %v5412_v59, %v5411_v24  ;;  %v5623_v39 = vld [vmem:[%s8633_s8 + $0x10] sm:$0xff] }
0x29b8   :  { %v5423_v34 = vsel %vm353_vm0, %v5385_v15, 0.0  ;;  %v5408_v31 = vadd.f32 %v5407_v58, %v5406_v40  ;;  %v6591_v5 = vpack.c.bf16 %v5624_v43, %v5623_v39  ;;  %v5539_v59 = vld [vmem:[%s8631_s6 + $0x10] sm:$0xff]  ;;  %v5540_v15 = vld [vmem:[%s8631_s6 + $0x18] sm:$0xff] }
0x29b9   :  { %v5419_v10 = vrot.slane %v5418_v33, 2  ;;  %v5424_v7 = vrot.slane %v5423_v34, 4  ;;  %v5373_v36 = vpop.permute.xlu1 %5372  ;;  %v5414_v30 = vrot.slane %v5413_v45, 1 }
0x29ba   :  { %v5386_v50 = vmul.f32 %v5373_v36, %v8378_v17  ;;  %v5394_v17 = vadd.f32 %v5393_v6, %v5392_v44 }
0x29bb   :  { %v5420_v55 = vadd.f32 %v5419_v10, %v5418_v33  ;;  %v5425_v57 = vadd.f32 %v5424_v7, %v5423_v34  ;;  %v5415_v13 = vadd.f32 %v5414_v30, %v5413_v45  ;;  %v6585_v33 = vpack.c.bf16 %v5540_v15, %v5539_v59  ;;  %v6042_v10 = vld [vmem:[%s8634_s9] ss:$0 sm:$0xff] }
0x29bc   :  { %v5430_v32 = vsel %vm353_vm0, %v5386_v50, 0.0  ;;  %v5457_v28 = vsel %vm420_vm1, %v5401_v29, %v5394_v17  ;;  %v6040_v45 = vld [vmem:[%s8632_s7] ss:$0 sm:$0xff]  ;;  %v3377_v29 = vmax.f32 %v7897_v35, 0.0 }
0x29bd   :  { %v5426_v61 = vrot.slane %v5425_v57, 2  ;;  %v5431_v26 = vrot.slane %v5430_v32, 4  ;;  %v5421_v4 = vrot.slane %v5420_v55, 1  ;;  %v5458_v27 = vsel %vm422_vm2, %v5408_v31, %v5457_v28  ;;  %v5633_v48 = vpop.permute.xlu1 %5632  ;;  %6586 = vmatpush3.bf16.msra.mxu0 %v6585_v33 }
0x29be   :  { %v5459_v62 = vsel %vm424_vm3, %v5415_v13, %v5458_v27  ;;  %v4947_v31 = vmax.f32 %v8317_v54, 0.0 }
0x29bf   :  { %v5427_v16 = vadd.f32 %v5426_v61, %v5425_v57  ;;  %v5432_v51 = vadd.f32 %v5431_v26, %v5430_v32  ;;  %v5422_v37 = vadd.f32 %v5421_v4, %v5420_v55 }
0x29c1   :  { %v5428_v63 = vrot.slane %v5427_v16, 1  ;;  %v5433_v25 = vrot.slane %v5432_v51, 2  ;;  %v5460_v21 = vsel %vm426_vm4, %v5422_v37, %v5459_v62 }
0x29c3   :  { %v5434_v53 = vadd.f32 %v5433_v25, %v5432_v51  ;;  %v5429_v41 = vadd.f32 %v5428_v63, %v5427_v16  ;;  %v1022_v51 = vmax.f32 %v7294_v49, 0.0 }
0x29c5   :  { %v5435_v47 = vrot.slane %v5434_v53, 1  ;;  %v5461_v24 = vsel %vm428_vm5, %v5429_v41, %v5460_v21 }
0x29c7   :  { %v5436_v56 = vadd.f32 %v5435_v47, %v5434_v53 }
0x29c9   :  { %v5462_v46 = vsel %vm430_vm6, %v5436_v56, %v5461_v24 }
0x29ca   :  { %v5463_v23 = vsel %vm432_vm7, %v5443_v52, %v5462_v46 }
0x29cb   :  { %6411 = vmatmul.mubr.msk.f32.vlgmr.msra.gmra.mrb[30].mxu1 %vm238_vm11, %v5463_v23 }
0x29cc   :  { %6589 = vmatpush3.bf16.msra.mxu1 %v6588_v12  ;;  %6432 = vmatprep.mubr.msk.f32.mxu1 %vm6866_vm9, %v6867_v20 }
0x29cd   :  { %6590 = vmatprep.subr.bf16.mxu1 %v6865_v22 }
0x29d0   :  { %6592 = vmatpush3.bf16.msra.mxu1 %v6591_v5 }
0x29d3   :  { %6433 = vmatmul.mubr.msk.f32.vlgmr.msra.gmra.mrb[32].mxu1 %vm238_vm11, %v5633_v48 }
0x2a9e   :  { %v5532_v9 = vpop.f32.mrb[30].mxu1 }
0x2a9f   :  { %v5536_v34 = vadd.f32 %v5532_v9, %v5444_v38  ;;  %v6412_v40 = vpop.f32.mrb[31].mxu1 }
0x2aa1   :  { %6422 = vmatmul.mubr.msk.f32.vlgmr.msra.gmra.mrb[20].mxu0 %vm238_vm11, %v5536_v34 }
0x2aa6   :  { %v5702_v7 = vpop.f32.mrb[32].mxu1 }
0x2aa7   :  { %v5703_v36 = vadd.f32 %v6042_v10, %v5702_v7  ;;  %v6434_v44 = vpop.f32.mrb[33].mxu1 }
0x2aa9   :  { %5714 = vrot.lane.b32.xlu1 %v5703_v36, %s6868_s20 }
0x2b1b   :  { %v5715_v26 = vpop.permute.xlu1 %5714 }
0x2b74   :  { %v5617_v50 = vpop.f32.mrb[20].mxu0 }
0x2b75   :  { %v5618_v55 = vadd.f32 %v6040_v45, %v5617_v50  ;;  %v6423_v57 = vpop.f32.mrb[21].mxu0 }
0x2b77   :  { %v5706_v11 = vadd.f32 %v5703_v36, %v5618_v55 }
0x2b79   :  { %v6044_v8 = vmul.f32 -1.442695, %v5706_v11 }
0x2b7b   :  { %6778 = vpow2.f32 %v6044_v8 }
0x2b85   :  { %v6779_v32 = vpop.eup %6778 }
0x2b86   :  { %v5710_v58 = vadd.f32 1.0, %v6779_v32 }
0x2b88   :  { %6780 = vrcp.f32 %v5710_v58 }
0x2b92   :  { %v6781_v61 = vpop.eup %6780 }
0x2b93   :  { %v5717_v6 = vmul.f32 %v6781_v61, %v5715_v26  ;;  %v5724_v63 = vsub.f32 1.0, %v6781_v61  ;;  %v5730_v17 = vmul.f32 %v6781_v61, %v8317_v54 }
0x2b95   :  { %5719 = vrot.lane.b32.xlu1 %v5717_v6, %s6868_s20 }
0x2c07   :  { %v5720_v30 = vpop.permute.xlu1 %5719 }
0x2c08   :  { %v5722_v4 = vadd.f32 %v5720_v30, %v5618_v55 }
0x2c0a   :  { %6782 = vtanh.f32 %v5722_v4 }
0x2c14   :  { %v6783_v16 = vpop.eup %6782 }
0x2c15   :  { %5726 = vrot.lane.b32.xlu1 %v6783_v16, %s6869_s3 }
0x2c19   :  { %1024 = vrot.lane.b32.xlu1 %v1022_v51, %s6869_s3 }
0x2c1d   :  { %1809 = vrot.lane.b32.xlu1 %v1807_v60, %s6869_s3 }
0x2c21   :  { %3379 = vrot.lane.b32.xlu1 %v3377_v29, %s6869_s3 }
0x2c25   :  { %4949 = vrot.lane.b32.xlu1 %v4947_v31, %s6869_s3 }
0x2c87   :  { %v5727_v25 = vpop.permute.xlu1 %5726 }
0x2c88   :  { %v5729_v13 = vmul.f32 %v5727_v25, %v5724_v63 }
0x2c8a   :  { %v5731_v49 = vadd.f32 %v5730_v17, %v5729_v13 }
0x2c8b   :  { %v1025_v37 = vpop.permute.xlu1 %1024 }
0x2c8c   :  { %v5732_v53 = vmax.f32 %v5731_v49, 0.0  ;;  %1027 = vst.msk [vmem:[#allocation3] sm:$0xff] %vm238_vm11, %v1025_v37 }
0x2c8e   :  { %5734 = vrot.lane.b32.xlu0 %v5732_v53, %s6869_s3 }
0x2c8f   :  { %v1810_v14 = vpop.permute.xlu1 %1809 }
0x2c90   :  { %1812 = vst.msk [vmem:[#allocation3 + $0x8] sm:$0xff] %vm238_vm11, %v1810_v14 }
0x2c93   :  { %v3380_v35 = vpop.permute.xlu1 %3379 }
0x2c94   :  { %3382 = vst.msk [vmem:[#allocation3 + $0x18] sm:$0xff] %vm238_vm11, %v3380_v35 }
0x2c97   :  { %v4950_v42 = vpop.permute.xlu1 %4949 }
0x2c98   :  { %4952 = vst.msk [vmem:[#allocation3 + $0x28] sm:$0xff] %vm238_vm11, %v4950_v42 }
0x2d00   :  { %v5735_v28 = vpop.permute.xlu0 %5734 }
0x2d01   :  { %5737 = vst.msk [vmem:[#allocation3 + $0x30] sm:$0xff] %vm238_vm11, %v5735_v28 }
0x2d02   :  { %6858 = dma.done.wait [#allocation5], 512 }
0x2d03   :  { %6859 = vsyncadd [#allocation5], 4294966784  ;;  %6593 = vmatprep.subr.bf16.mxu0 %v6865_v22  ;;  %v6594_v54 = vpack.c.bf16 %v6959_v1, %v6954_v0  ;;  %6443 = vmatprep.mubr.msk.f32.mxu0 %vm6866_vm9, %v6867_v20  ;;  %v6597_v41 = vpack.c.bf16 %v6969_v3, %v6964_v2  ;;  %v5741_v27 = vld [vmem:[#allocation3] sm:$0xff]  ;;  %v5742_v47 = vld [vmem:[#allocation3 + $0x8] sm:$0xff]  ;;  %s6871_s9 = smov [#allocation9]  }
0x2d04   :  { %v5743_v0 = vld [vmem:[#allocation3 + $0x10] sm:$0xff]  ;;  %v5744_v1 = vld [vmem:[#allocation3 + $0x18] sm:$0xff]  ;;  %v5745_v2 = vld [vmem:[#allocation3 + $0x20] sm:$0xff] }
0x2d05   :  { %6595 = vmatpush3.bf16.msra.mxu0 %v6594_v54  ;;  %v5746_v3 = vld [vmem:[#allocation3 + $0x28] sm:$0xff]  ;;  %v6045_v19 = vld [vmem:[%s8636_s11] ss:$0 sm:$0xff]  ;;  %s5969_s11 = sshll.u32 %s6871_s9, 4  ;;  %s5970_s11 = int_to_ptr.vmem [resolvable:$true] %s5969_s11 }
0x2d06   :  { %6596 = vmatprep.subr.bf16.mxu0 %v6865_v22  ;;  %s6834_s20 = scalar_lea.vmem %s5970_s11, 896  ;;  %p6839_p9 = scmp.lt.s32.totalorder %s5970_s11, %s5970_s11 }
0x2d07   :  { %p6835_p8 = scmp.ne.s32.totalorder %s5970_s11, %s6834_s20  ;;  %p6840_p10 = scmp.lt.s32.totalorder %s6834_s20, %s6834_s20 }
0x2d08   :  { %v5747_v22 = vld [vmem:[#allocation3 + $0x30] sm:$0xff] }
0x2d09   :  { %6598 = vmatpush3.bf16.msra.mxu0 %v6597_v41  ;;  %p6841_p11 = por %p6840_p10, %p6839_p9 }
0x2d0b   :  { %p6842_p12 = pnand %p6841_p11, %p6835_p8 }
0x2d0c   :  { %6444 = vmatmul.mubr.msk.f32.vlgmr.msra.gmra.mrb[22].mxu0 %vm238_vm11, %v5741_v27 }
0x2d0d   :  { %6446 = vmatprep.mubr.msk.f32.mxu0 %vm6866_vm9, %v6867_v20 }
0x2d10   :  { %6447 = vmatmul.mubr.msk.f32.gmra.mrb[24].mxu0 %vm238_vm11, %v5742_v47 }
0x2d11   :  { %6449 = vmatprep.mubr.msk.f32.mxu0 %vm6866_vm9, %v6867_v20 }
0x2d14   :  { %6450 = vmatmul.mubr.msk.f32.gmra.mrb[26].mxu0 %vm238_vm11, %v5743_v0 }
0x2d15   :  { %6452 = vmatprep.mubr.msk.f32.mxu0 %vm6866_vm9, %v6867_v20 }
0x2d18   :  { %6453 = vmatmul.mubr.msk.f32.gmra.mrb[28].mxu0 %vm238_vm11, %v5744_v1 }
0x2d19   :  { %6455 = vmatprep.mubr.msk.f32.mxu0 %vm6866_vm9, %v6867_v20 }
0x2d1c   :  { %6456 = vmatmul.mubr.msk.f32.gmra.mrb[30].mxu0 %vm238_vm11, %v5745_v2 }
0x2d1d   :  { %6458 = vmatprep.mubr.msk.f32.mxu0 %vm6866_vm9, %v6867_v20 }
0x2d20   :  { %6459 = vmatmul.mubr.msk.f32.gmra.mrb[32].mxu0 %vm238_vm11, %v5746_v3 }
0x2d21   :  { %6461 = vmatprep.mubr.msk.f32.mxu0 %vm6866_vm9, %v6867_v20 }
0x2d24   :  { %6462 = vmatmul.mubr.msk.f32.gmra.mrb[34].mxu0 %vm238_vm11, %v5747_v22 }
0x2ddf   :  { %v5846_v18 = vpop.f32.mrb[22].mxu0 }
0x2de0   :  { %v8578_v62 = vadd.f32 %v6045_v19, %v5846_v18  ;;  %v6445_v21 = vpop.f32.mrb[23].mxu0 }
0x2de2   :  { %5880 = vmax.xlane.f32.xlu0 %v8578_v62 }
0x2de3   :  { %v5851_v56 = vpop.f32.mrb[24].mxu0 }
0x2de4   :  { %v8581_v52 = vadd.f32 %v6045_v19, %v5851_v56  ;;  %v6448_v24 = vpop.f32.mrb[25].mxu0 }
0x2de6   :  { %5882 = vmax.xlane.f32.xlu0 %v8581_v52 }
0x2de7   :  { %v5856_v20 = vpop.f32.mrb[26].mxu0 }
0x2de8   :  { %v8584_v12 = vadd.f32 %v6045_v19, %v5856_v20  ;;  %v6451_v46 = vpop.f32.mrb[27].mxu0 }
0x2dea   :  { %5884 = vmax.xlane.f32.xlu1 %v8584_v12 }
0x2deb   :  { %v5861_v39 = vpop.f32.mrb[28].mxu0 }
0x2dec   :  { %v8587_v43 = vadd.f32 %v6045_v19, %v5861_v39  ;;  %v6454_v23 = vpop.f32.mrb[29].mxu0 }
0x2dee   :  { %5886 = vmax.xlane.f32.xlu1 %v8587_v43 }
0x2def   :  { %v5866_v5 = vpop.f32.mrb[30].mxu0 }
0x2df0   :  { %v8590_v48 = vadd.f32 %v6045_v19, %v5866_v5  ;;  %v6457_v59 = vpop.f32.mrb[31].mxu0 }
0x2df2   :  { %5888 = vmax.xlane.f32.xlu0 %v8590_v48 }
0x2df3   :  { %v5871_v15 = vpop.f32.mrb[32].mxu0 }
0x2df4   :  { %v8593_v33 = vadd.f32 %v6045_v19, %v5871_v15  ;;  %v6460_v38 = vpop.f32.mrb[33].mxu0 }
0x2df6   :  { %5890 = vmax.xlane.f32.xlu1 %v8593_v33 }
0x2df7   :  { %v5876_v9 = vpop.f32.mrb[34].mxu0 }
0x2df8   :  { %v8596_v34 = vadd.f32 %v6045_v19, %v5876_v9  ;;  %v6463_v40 = vpop.f32.mrb[35].mxu0 }
0x2dfa   :  { %5892 = vmax.xlane.f32.xlu0 %v8596_v34 }
0x2e6f   :  { %v5881_v10 = vpop.xlane.xlu0 %5880 }
0x2e70   :  { %v5894_v7 = vsub.f32 %v8578_v62, %v5881_v10 }
0x2e72   :  { %v5901_v36 = vmul.f32 1.442695, %v5894_v7 }
0x2e73   :  { %v5883_v44 = vpop.xlane.xlu0 %5882 }
0x2e74   :  { %6784 = vpow2.f32 %v5901_v36  ;;  %v5895_v45 = vsub.f32 %v8581_v52, %v5883_v44 }
0x2e76   :  { %v5903_v50 = vmul.f32 1.442695, %v5895_v45 }
0x2e77   :  { %v5885_v55 = vpop.xlane.xlu1 %5884 }
0x2e78   :  { %6786 = vpow2.f32 %v5903_v50  ;;  %v5896_v57 = vsub.f32 %v8584_v12, %v5885_v55 }
0x2e7a   :  { %v5905_v11 = vmul.f32 1.442695, %v5896_v57 }
0x2e7b   :  { %v5887_v8 = vpop.xlane.xlu1 %5886 }
0x2e7c   :  { %6788 = vpow2.f32 %v5905_v11  ;;  %v5897_v32 = vsub.f32 %v8587_v43, %v5887_v8 }
0x2e7e   :  { %v6785_v58 = vpop.eup %6784  ;;  %v5907_v61 = vmul.f32 1.442695, %v5897_v32 }
0x2e7f   :  { %v5889_v26 = vpop.xlane.xlu0 %5888  ;;  %5915 = vadd.xlane.f32.xlu1 %v6785_v58 }
0x2e80   :  { %6790 = vpow2.f32 %v5907_v61  ;;  %v5898_v6 = vsub.f32 %v8590_v48, %v5889_v26 }
0x2e82   :  { %v6787_v30 = vpop.eup %6786  ;;  %v5909_v4 = vmul.f32 1.442695, %v5898_v6 }
0x2e83   :  { %v5891_v16 = vpop.xlane.xlu1 %5890  ;;  %5917 = vadd.xlane.f32.xlu0 %v6787_v30 }
0x2e84   :  { %6792 = vpow2.f32 %v5909_v4  ;;  %v5899_v51 = vsub.f32 %v8593_v33, %v5891_v16 }
0x2e86   :  { %v6789_v60 = vpop.eup %6788  ;;  %v5911_v29 = vmul.f32 1.442695, %v5899_v51 }
0x2e87   :  { %5919 = vadd.xlane.f32.xlu1 %v6789_v60  ;;  %v5893_v31 = vpop.xlane.xlu0 %5892 }
0x2e88   :  { %6794 = vpow2.f32 %v5911_v29  ;;  %v5900_v63 = vsub.f32 %v8596_v34, %v5893_v31 }
0x2e8a   :  { %v6791_v25 = vpop.eup %6790  ;;  %v5913_v17 = vmul.f32 1.442695, %v5900_v63 }
0x2e8b   :  { %5921 = vadd.xlane.f32.xlu0 %v6791_v25 }
0x2e8c   :  { %6796 = vpow2.f32 %v5913_v17 }
0x2e8e   :  { %v6793_v13 = vpop.eup %6792 }
0x2e8f   :  { %5923 = vadd.xlane.f32.xlu1 %v6793_v13 }
0x2e92   :  { %v6795_v49 = vpop.eup %6794 }
0x2e93   :  { %5925 = vadd.xlane.f32.xlu0 %v6795_v49 }
0x2e96   :  { %v6797_v37 = vpop.eup %6796 }
0x2e97   :  { %5927 = vadd.xlane.f32.xlu1 %v6797_v37 }
0x2f0c   :  { %v5916_v53 = vpop.xlane.xlu1 %5915 }
0x2f0d   :  { %6798 = vlog2.f32 %v5916_v53 }
0x2f10   :  { %v5918_v14 = vpop.xlane.xlu0 %5917 }
0x2f11   :  { %6800 = vlog2.f32 %v5918_v14 }
0x2f14   :  { %v5920_v35 = vpop.xlane.xlu1 %5919 }
0x2f15   :  { %6802 = vlog2.f32 %v5920_v35 }
0x2f17   :  { %v6799_v42 = vpop.eup %6798 }
0x2f18   :  { %v5930_v28 = vmul.f32 0.6931472, %v6799_v42  ;;  %v5922_v54 = vpop.xlane.xlu0 %5921 }
0x2f19   :  { %6804 = vlog2.f32 %v5922_v54 }
0x2f1a   :  { %v5943_v41 = vadd.f32 %v5930_v28, %v5881_v10 }
0x2f1b   :  { %v6801_v27 = vpop.eup %6800 }
0x2f1c   :  { %v5950_v47 = vsub.f32 %v8578_v62, %v5943_v41  ;;  %v5932_v0 = vmul.f32 0.6931472, %v6801_v27  ;;  %v5924_v1 = vpop.xlane.xlu1 %5923 }
0x2f1d   :  { %6806 = vlog2.f32 %v5924_v1 }
0x2f1e   :  { %5957 = vst [vmem:[#allocation9] sm:$0xff] %v5950_v47  ;;  %v5944_v2 = vadd.f32 %v5932_v0, %v5883_v44 }
0x2f1f   :  { %v6803_v3 = vpop.eup %6802 }
0x2f20   :  { %v5951_v22 = vsub.f32 %v8581_v52, %v5944_v2  ;;  %v5934_v19 = vmul.f32 0.6931472, %v6803_v3  ;;  %v5926_v18 = vpop.xlane.xlu0 %5925 }
0x2f21   :  { %6808 = vlog2.f32 %v5926_v18 }
0x2f22   :  { %5958 = vst [vmem:[#allocation9 + $0x8] sm:$0xff] %v5951_v22  ;;  %v5945_v21 = vadd.f32 %v5934_v19, %v5885_v55 }
0x2f23   :  { %v6805_v56 = vpop.eup %6804 }
0x2f24   :  { %v5952_v24 = vsub.f32 %v8584_v12, %v5945_v21  ;;  %v5936_v20 = vmul.f32 0.6931472, %v6805_v56  ;;  %v5928_v46 = vpop.xlane.xlu1 %5927 }
0x2f25   :  { %6810 = vlog2.f32 %v5928_v46 }
0x2f26   :  { %5959 = vst [vmem:[#allocation9 + $0x10] sm:$0xff] %v5952_v24  ;;  %v5946_v62 = vadd.f32 %v5936_v20, %v5887_v8 }
0x2f27   :  { %v6807_v39 = vpop.eup %6806 }
0x2f28   :  { %v5953_v23 = vsub.f32 %v8587_v43, %v5946_v62  ;;  %v5938_v5 = vmul.f32 0.6931472, %v6807_v39 }
0x2f2a   :  { %5960 = vst [vmem:[#allocation9 + $0x18] sm:$0xff] %v5953_v23  ;;  %v5947_v59 = vadd.f32 %v5938_v5, %v5889_v26 }
0x2f2b   :  { %v6809_v52 = vpop.eup %6808 }
0x2f2c   :  { %v5954_v15 = vsub.f32 %v8590_v48, %v5947_v59  ;;  %v5940_v38 = vmul.f32 0.6931472, %v6809_v52 }
0x2f2e   :  { %5961 = vst [vmem:[#allocation9 + $0x20] sm:$0xff] %v5954_v15  ;;  %v5948_v9 = vadd.f32 %v5940_v38, %v5891_v16 }
0x2f2f   :  { %v6811_v40 = vpop.eup %6810 }
0x2f30   :  { %v5955_v12 = vsub.f32 %v8593_v33, %v5948_v9  ;;  %v5942_v10 = vmul.f32 0.6931472, %v6811_v40 }
0x2f32   :  { %5962 = vst [vmem:[#allocation9 + $0x28] sm:$0xff] %v5955_v12  ;;  %v5949_v7 = vadd.f32 %v5942_v10, %v5893_v31 }
0x2f34   :  { %v5956_v43 = vsub.f32 %v8596_v34, %v5949_v7 }
0x2f36   :  { %5963 = vst [vmem:[#allocation9 + $0x30] sm:$0xff] %v5956_v43 }
0x2f37   :  { %6845 = shalt.err (!%p6842_p12)
}
0x2f38   :  { %s6846_s14 = scalar_lea.hbm %s8637_s12, 896 }
0x2f39   :  { %p6847_p13 = scmp.ne.s32.totalorder %s8637_s12, %s6846_s14  ;;  %p6850_p0 = scmp.lt.u32.totalorder %s6846_s14, %s8637_s12 }
0x2f3b   :  { %p6852_p1 = pnand %p6850_p0, %p6847_p13 }
0x2f3d   :  { %6855 = shalt.err (!%p6852_p1)
}
0x2f3e   :  { %s6872_s19 = smov 128   ;;  %s6873_s21 = smov 8  }
0x2f3f   :  { %5975 = dma.vmem_to_hbm [thread:$0]  %s5970_s11, 896, %s8637_s12, [#allocation8], %s6872_s19, %s6872_s19, %s6873_s21  }
0x2f40   :  { %6860 = dma.done.wait [#allocation8], 896  }
0x2f41   :  { %6861 = vsyncadd [#allocation8], 4294966400 }
0x2f42   :  { %5979 = vsyncpa [#allocation7], 1 }
0x2f43   :  { %5980 = vsyncpa [#allocation8], 1 }
0x2f44   :  { %5981 = vsyncmov [#allocation5] }
0x2f47   :  { %s5982_s23 = vpop.sfrf %5981 }
0x2f48   :  { %p6053_p2 = scmp.ne.s32.totalorder %s5982_s23, 0 }
0x2f4a   :  { %5986 = shalt.err (%p6053_p2)  }

</bundles_post_ra>
